<compile_context>
chip_gen: v7x
topology: tpu7x:2x2x1
jax: 0.10.0
libtpu: 0.0.40
codegen_flags: <defaults>
</compile_context>

<pallas_src>
import math

import jax
import jax.numpy as jnp
from jax.experimental import pallas as pl
from jax.experimental.pallas import tpu as pltpu  # noqa: F401  (TPU backend assumed)

# ---- hyperparameters implied by the module (hp.num_hidden etc.), small shapes ----
VOCAB = 50        # vocab size of the BERT encoder embedding
SEQ = 8           # sequence length
HID = 32          # hp.num_hidden
NUM_HEADS = 4
HEAD_DIM = HID // NUM_HEADS
FFN = 64
N_LAYERS = 2
LN_EPS = 1e-6     # TODO(synk): verify against reference (PyTorch default is 1e-5)


def _layernorm(x, g, b):
    mu = jnp.mean(x, axis=-1, keepdims=True)
    var = jnp.mean(jnp.square(x - mu), axis=-1, keepdims=True)
    return (x - mu) * jax.lax.rsqrt(var + LN_EPS) * g + b


def _gelu(x):
    # TODO(synk): tanh approximation (BERT-style); PyTorch nn.GELU default is exact erf.
    c = math.sqrt(2.0 / math.pi)
    return 0.5 * x * (1.0 + jnp.tanh(c * (x + 0.044715 * x * x * x)))


# ----------------------------- Pallas kernels ------------------------------ #

def fused_forward_kernel(x_ref, mb_ref,
                         wqkv_ref, bqkv_ref, wo_ref, bo_ref,
                         g1_ref, be1_ref, w1_ref, bf1_ref,
                         w2_ref, bf2_ref, g2_ref, be2_ref,
                         lw_ref, lb_ref,
                         sim_ref, cls_ref):
    """Both encoder stacks (concat'd on batch), all layers, and the sim head."""
    TB, S, H = x_ref.shape           # TB = 2*B (x1 rows then x2 rows)
    B = TB // 2

    x = x_ref[...].reshape(TB * S, H)      # activations resident across layers
    mb = mb_ref[...]                       # (TB, S) additive attention mask bias
    scale = 1.0 / math.sqrt(HEAD_DIM)

    for l in range(N_LAYERS):              # static, fully unrolled layer loop
        # Fused Q|K|V projection: one (H, 3H) matmul instead of three.
        qkv = (jnp.dot(x, wqkv_ref[l], preferred_element_type=jnp.float32)
               + bqkv_ref[l])              # (TB*S, 3H)
        qkv3 = qkv.reshape(TB, S, 3 * H)   # split leading dim only (no lane moves)

        wo = wo_ref[l]
        attn = jnp.zeros((TB * S, H), jnp.float32)
        for h in range(NUM_HEADS):         # static head loop, batched over TB
            lo = h * HEAD_DIM
            qh = qkv3[:, :, lo:lo + HEAD_DIM]
            kh = qkv3[:, :, H + lo:H + lo + HEAD_DIM]
            vh = qkv3[:, :, 2 * H + lo:2 * H + lo + HEAD_DIM]

            s = jnp.einsum('bqd,bkd->bqk', qh, kh,
                           preferred_element_type=jnp.float32) * scale
            s = s + mb[:, None, :]
            s = s - jnp.max(s, axis=-1, keepdims=True)
            p = jnp.exp(s)
            p = p * pl.reciprocal(jnp.sum(p, axis=-1, keepdims=True), approx=True)
            ctx = jnp.einsum('bqk,bkd->bqd', p, vh,
                             preferred_element_type=jnp.float32)   # (TB, S, HD)

            # Fold this head's output projection straight into the accumulator;
            # avoids concatenating 8-lane head slices.
            attn = attn + jnp.dot(ctx.reshape(TB * S, HEAD_DIM),
                                  wo[lo:lo + HEAD_DIM, :],
                                  preferred_element_type=jnp.float32)

        attn = attn + bo_ref[l]
        h1 = _layernorm(x + attn, g1_ref[l], be1_ref[l])

        ff = _gelu(jnp.dot(h1, w1_ref[l], preferred_element_type=jnp.float32)
                   + bf1_ref[l])
        ff = jnp.dot(ff, w2_ref[l], preferred_element_type=jnp.float32) + bf2_ref[l]
        x = _layernorm(h1 + ff, g2_ref[l], be2_ref[l])

    # CLS embeddings for both inputs, then fused similarity head.
    cls = x.reshape(TB, S, H)[:, 0, :]           # (TB, H)
    cls_ref[...] = cls

    c1 = cls[:B]
    c2 = cls[B:]
    d = jnp.square(c1 - c2)                      # MSELoss(reduction='none')
    sim_ref[...] = (jnp.sum(d * lw_ref[...], axis=-1, keepdims=True)
                    + lb_ref[...])               # Linear(H, 1)


def sim_head_kernel(x1_ref, x2_ref, w_ref, b_ref, o_ref):
    """Standalone head for mode=2 (inputs are already CLS embeddings)."""
    d = jnp.square(x1_ref[...] - x2_ref[...])
    o_ref[...] = jnp.sum(d * w_ref[...], axis=-1, keepdims=True) + b_ref[...]


# ----------------------------- wrappers ------------------------------------ #

def fused_forward(x_emb, mask_bias, params):
    TB, S, H = x_emb.shape
    B = TB // 2

    # Rough advisory cost estimate for the XLA scheduler.
    rows = TB * S
    flops_layer = (2 * rows * H * 3 * H                       # fused QKV
                   + NUM_HEADS * (2 * TB * S * S * HEAD_DIM * 2   # scores + ctx
                                  + 2 * rows * HEAD_DIM * H)      # out-proj
                   + 2 * (2 * rows * H * FFN))                # FFN
    flops = N_LAYERS * flops_layer + 3 * B * H
    transc = N_LAYERS * (TB * NUM_HEADS * S * S + rows * FFN + 3 * rows)
    bytes_acc = (sum(int(v.size) * 4 for k, v in params.items()
                     if k not in ("tok_emb", "pos_emb"))
                 + (x_emb.size + mask_bias.size + TB * H + B) * 4)

    sim, cls = pl.pallas_call(
        fused_forward_kernel,
        out_shape=(jax.ShapeDtypeStruct((B, 1), jnp.float32),
                   jax.ShapeDtypeStruct((TB, H), jnp.float32)),
        cost_estimate=pl.CostEstimate(flops=flops, transcendentals=transc,
                                      bytes_accessed=bytes_acc),
    )(x_emb, mask_bias,
      params["wqkv"], params["bqkv"], params["wo"], params["bo"],
      params["g1"], params["be1"], params["w1"], params["bf1"],
      params["w2"], params["bf2"], params["g2"], params["be2"],
      params["lin_w"], params["lin_b"])
    return sim, cls


def sim_head(c1, c2, w, b):
    B, H = c1.shape
    return pl.pallas_call(
        sim_head_kernel,
        out_shape=jax.ShapeDtypeStruct((B, 1), jnp.float32),
    )(c1, c2, w, b)


def similarity_forward(params, x1, x1_pos, x2, x2_pos, mode=0):
    if mode in (0, 1):
        B = x1.shape[0]
        tokens = jnp.concatenate([x1, x2], axis=0)            # (2B, S)
        pos = jnp.concatenate([x1_pos, x2_pos], axis=0)
        # glue: embedding lookups (gather) + padding-mask bias
        x_emb = params["tok_emb"][tokens] + params["pos_emb"][pos]      # (2B,S,H)
        mask_bias = jnp.where(tokens > 0, 0.0, -1e9).astype(jnp.float32)  # (2B,S)
        sim, cls = fused_forward(x_emb, mask_bias, params)
        # TODO(synk): BERTEncoder also returns attention list / intermediate xs;
        # they are unused by SimilarityModel.forward so not materialized here.
        if mode == 1:
            return cls[:B], cls[B:]
        return jnp.squeeze(sim, axis=1)                        # (B,)
    # mode == 2: x1, x2 are already CLS embeddings
    out = sim_head(x1, x2, params["lin_w"], params["lin_b"])
    return jnp.squeeze(out, axis=1)


# ----------------------------- params --------------------------------------- #

def _xavier_uniform(key, shape):
    limit = math.sqrt(6.0 / (shape[-2] + shape[-1]))
    return jax.random.uniform(key, shape, jnp.float32, -limit, limit)


def init_params(key):
    keys = jax.random.split(key, 3 + N_LAYERS)
    params = {
        "tok_emb": 0.02 * jax.random.normal(keys[0], (VOCAB, HID), jnp.float32),
        "pos_emb": 0.02 * jax.random.normal(keys[1], (SEQ, HID), jnp.float32),
        "lin_w": _xavier_uniform(keys[2], (1, HID)),  # nn.Linear(hp.num_hidden, 1)
        "lin_b": jnp.zeros((1, 1), jnp.float32),
    }
    wqkv, wo, w1, w2 = [], [], [], []
    for i in range(N_LAYERS):
        lk = jax.random.split(keys[3 + i], 6)
        wq = _xavier_uniform(lk[0], (HID, HID))
        wk = _xavier_uniform(lk[1], (HID, HID))
        wv = _xavier_uniform(lk[2], (HID, HID))
        wqkv.append(jnp.concatenate([wq, wk, wv], axis=1))     # fused (H, 3H)
        wo.append(_xavier_uniform(lk[3], (HID, HID)))
        w1.append(_xavier_uniform(lk[4], (HID, FFN)))
        w2.append(_xavier_uniform(lk[5], (FFN, HID)))
    L = N_LAYERS
    params.update({
        "wqkv": jnp.stack(wqkv), "bqkv": jnp.zeros((L, 1, 3 * HID), jnp.float32),
        "wo": jnp.stack(wo), "bo": jnp.zeros((L, 1, HID), jnp.float32),
        "g1": jnp.ones((L, 1, HID), jnp.float32),
        "be1": jnp.zeros((L, 1, HID), jnp.float32),
        "w1": jnp.stack(w1), "bf1": jnp.zeros((L, 1, FFN), jnp.float32),
        "w2": jnp.stack(w2), "bf2": jnp.zeros((L, 1, HID), jnp.float32),
        "g2": jnp.ones((L, 1, HID), jnp.float32),
        "be2": jnp.zeros((L, 1, HID), jnp.float32),
    })
    return params


if __name__ == "__main__":
    key = jax.random.PRNGKey(0)
    pkey, k1, k2 = jax.random.split(key, 3)
    params = init_params(pkey)

    B = 2
    x1 = jax.random.randint(k1, (B, SEQ), 1, VOCAB, dtype=jnp.int32)
    x2 = jax.random.randint(k2, (B, SEQ), 1, VOCAB, dtype=jnp.int32)
    pos = jnp.tile(jnp.arange(SEQ, dtype=jnp.int32)[None, :], (B, 1))

    out = similarity_forward(params, x1, pos, x2, pos, mode=0)
    out = jax.block_until_ready(out)
    assert out.shape == (B,) and out.dtype == jnp.float32
    print("KERNEL_OK")
</pallas_src>

<mosaic_0001>
module attributes {stable_mosaic.version = 11 : i64} {
  func.func @fused_forward_kernel(%arg0: memref<4x8x32xf32, #tpu.memory_space<vmem>>, %arg1: memref<4x8xf32, #tpu.memory_space<vmem>>, %arg2: memref<2x32x96xf32, #tpu.memory_space<vmem>>, %arg3: memref<2x1x96xf32, #tpu.memory_space<vmem>>, %arg4: memref<2x32x32xf32, #tpu.memory_space<vmem>>, %arg5: memref<2x1x32xf32, #tpu.memory_space<vmem>>, %arg6: memref<2x1x32xf32, #tpu.memory_space<vmem>>, %arg7: memref<2x1x32xf32, #tpu.memory_space<vmem>>, %arg8: memref<2x32x64xf32, #tpu.memory_space<vmem>>, %arg9: memref<2x1x64xf32, #tpu.memory_space<vmem>>, %arg10: memref<2x64x32xf32, #tpu.memory_space<vmem>>, %arg11: memref<2x1x32xf32, #tpu.memory_space<vmem>>, %arg12: memref<2x1x32xf32, #tpu.memory_space<vmem>>, %arg13: memref<2x1x32xf32, #tpu.memory_space<vmem>>, %arg14: memref<1x32xf32, #tpu.memory_space<vmem>>, %arg15: memref<1x1xf32, #tpu.memory_space<vmem>>, %arg16: memref<2x1xf32, #tpu.memory_space<vmem>>, %arg17: memref<4x32xf32, #tpu.memory_space<vmem>>) attributes {dimension_semantics = [], scalar_prefetch = 0 : i64, scratch_operands = 0 : i64, tpu.core_type = #tpu.core_type<tc>} {
    %c0 = arith.constant 0 : index
    %c0_0 = arith.constant 0 : index
    %c0_1 = arith.constant 0 : index
    %0 = vector.load %arg0[%c0, %c0_0, %c0_1] : memref<4x8x32xf32, #tpu.memory_space<vmem>>, vector<4x8x32xf32>
    %1 = vector.shape_cast %0 : vector<4x8x32xf32> to vector<32x32xf32>
    %c0_2 = arith.constant 0 : index
    %c0_3 = arith.constant 0 : index
    %2 = vector.load %arg1[%c0_2, %c0_3] : memref<4x8xf32, #tpu.memory_space<vmem>>, vector<4x8xf32>
    %c0_4 = arith.constant 0 : index
    %c0_5 = arith.constant 0 : index
    %c0_6 = arith.constant 0 : index
    %3 = vector.load %arg2[%c0_4, %c0_5, %c0_6] : memref<2x32x96xf32, #tpu.memory_space<vmem>>, vector<1x32x96xf32>
    %4 = vector.shape_cast %3 : vector<1x32x96xf32> to vector<32x96xf32>
    %cst = arith.constant dense<0.000000e+00> : vector<32x96xf32>
    %5 = tpu.matmul %1, %4, %cst {dimension_numbers = #tpu.dot_dimension_numbers<[1], [0], [0], [1], [0, 0, 1, 1], [], []>} : vector<32x32xf32>, vector<32x96xf32>, vector<32x96xf32> -> vector<32x96xf32>
    %c0_7 = arith.constant 0 : index
    %c0_8 = arith.constant 0 : index
    %c0_9 = arith.constant 0 : index
    %6 = vector.load %arg3[%c0_7, %c0_8, %c0_9] : memref<2x1x96xf32, #tpu.memory_space<vmem>>, vector<1x1x96xf32>
    %7 = vector.shape_cast %6 : vector<1x1x96xf32> to vector<1x96xf32>
    %8 = vector.broadcast %7 : vector<1x96xf32> to vector<32x96xf32>
    %9 = arith.addf %5, %8 : vector<32x96xf32>
    %10 = vector.shape_cast %9 : vector<32x96xf32> to vector<4x8x96xf32>
    %c0_10 = arith.constant 0 : index
    %c0_11 = arith.constant 0 : index
    %c0_12 = arith.constant 0 : index
    %11 = vector.load %arg4[%c0_10, %c0_11, %c0_12] : memref<2x32x32xf32, #tpu.memory_space<vmem>>, vector<1x32x32xf32>
    %12 = vector.shape_cast %11 : vector<1x32x32xf32> to vector<32x32xf32>
    %cst_13 = arith.constant 0.000000e+00 : f32
    %13 = vector.broadcast %cst_13 : f32 to vector<32x32xf32>
    %14 = vector.extract_strided_slice %10 {offsets = [0, 0, 0], sizes = [4, 8, 8], strides = [1, 1, 1]} : vector<4x8x96xf32> to vector<4x8x8xf32>
    %15 = vector.extract_strided_slice %10 {offsets = [0, 0, 32], sizes = [4, 8, 8], strides = [1, 1, 1]} : vector<4x8x96xf32> to vector<4x8x8xf32>
    %16 = vector.extract_strided_slice %10 {offsets = [0, 0, 64], sizes = [4, 8, 8], strides = [1, 1, 1]} : vector<4x8x96xf32> to vector<4x8x8xf32>
    "tpu.trace_start"() <{level = 10 : i32, message = "bqd,bkd->bqk"}> : () -> ()
    %cst_14 = arith.constant dense<0.000000e+00> : vector<4x8x8xf32>
    %17 = tpu.matmul %14, %15, %cst_14 {dimension_numbers = #tpu.dot_dimension_numbers<[2], [2], [1], [1], [0, 0, 0, 1, 1, 1], [0], [0]>} : vector<4x8x8xf32>, vector<4x8x8xf32>, vector<4x8x8xf32> -> vector<4x8x8xf32>
    "tpu.trace_stop"() : () -> ()
    %cst_15 = arith.constant 0.353553385 : f32
    %18 = vector.broadcast %cst_15 : f32 to vector<4x8x8xf32>
    %19 = arith.mulf %17, %18 : vector<4x8x8xf32>
    %20 = vector.shape_cast %2 : vector<4x8xf32> to vector<4x1x8xf32>
    %21 = vector.broadcast %20 : vector<4x1x8xf32> to vector<4x8x8xf32>
    %22 = arith.addf %19, %21 : vector<4x8x8xf32>
    %cst_16 = arith.constant dense<0xFF800000> : vector<4x8xf32>
    %23 = vector.multi_reduction <maximumf>, %22, %cst_16 [2] : vector<4x8x8xf32> to vector<4x8xf32>
    %24 = vector.shape_cast %23 : vector<4x8xf32> to vector<4x8x1xf32>
    %25 = vector.broadcast %24 : vector<4x8x1xf32> to vector<4x8x8xf32>
    %26 = arith.subf %22, %25 : vector<4x8x8xf32>
    %27 = math.exp %26 : vector<4x8x8xf32>
    %cst_17 = arith.constant dense<0.000000e+00> : vector<4x8xf32>
    %28 = vector.multi_reduction <add>, %27, %cst_17 [2] : vector<4x8x8xf32> to vector<4x8xf32>
    %29 = vector.shape_cast %28 : vector<4x8xf32> to vector<4x8x1xf32>
    %30 = tpu.reciprocal %29 {approx = true} : vector<4x8x1xf32> -> vector<4x8x1xf32>
    %31 = vector.broadcast %30 : vector<4x8x1xf32> to vector<4x8x8xf32>
    %32 = arith.mulf %27, %31 : vector<4x8x8xf32>
    "tpu.trace_start"() <{level = 10 : i32, message = "bqk,bkd->bqd"}> : () -> ()
    %cst_18 = arith.constant dense<0.000000e+00> : vector<4x8x8xf32>
    %33 = tpu.matmul %32, %16, %cst_18 {dimension_numbers = #tpu.dot_dimension_numbers<[2], [1], [1], [2], [0, 0, 0, 1, 1, 2], [0], [0]>} : vector<4x8x8xf32>, vector<4x8x8xf32>, vector<4x8x8xf32> -> vector<4x8x8xf32>
    "tpu.trace_stop"() : () -> ()
    %34 = vector.shape_cast %33 : vector<4x8x8xf32> to vector<32x8xf32>
    %35 = vector.extract_strided_slice %12 {offsets = [0, 0], sizes = [8, 32], strides = [1, 1]} : vector<32x32xf32> to vector<8x32xf32>
    %cst_19 = arith.constant dense<0.000000e+00> : vector<32x32xf32>
    %36 = tpu.matmul %34, %35, %cst_19 {dimension_numbers = #tpu.dot_dimension_numbers<[1], [0], [0], [1], [0, 0, 1, 1], [], []>} : vector<32x8xf32>, vector<8x32xf32>, vector<32x32xf32> -> vector<32x32xf32>
    %37 = arith.addf %13, %36 : vector<32x32xf32>
    %38 = vector.extract_strided_slice %10 {offsets = [0, 0, 8], sizes = [4, 8, 8], strides = [1, 1, 1]} : vector<4x8x96xf32> to vector<4x8x8xf32>
    %39 = vector.extract_strided_slice %10 {offsets = [0, 0, 40], sizes = [4, 8, 8], strides = [1, 1, 1]} : vector<4x8x96xf32> to vector<4x8x8xf32>
    %40 = vector.extract_strided_slice %10 {offsets = [0, 0, 72], sizes = [4, 8, 8], strides = [1, 1, 1]} : vector<4x8x96xf32> to vector<4x8x8xf32>
    "tpu.trace_start"() <{level = 10 : i32, message = "bqd,bkd->bqk"}> : () -> ()
    %cst_20 = arith.constant dense<0.000000e+00> : vector<4x8x8xf32>
    %41 = tpu.matmul %38, %39, %cst_20 {dimension_numbers = #tpu.dot_dimension_numbers<[2], [2], [1], [1], [0, 0, 0, 1, 1, 1], [0], [0]>} : vector<4x8x8xf32>, vector<4x8x8xf32>, vector<4x8x8xf32> -> vector<4x8x8xf32>
    "tpu.trace_stop"() : () -> ()
    %cst_21 = arith.constant 0.353553385 : f32
    %42 = vector.broadcast %cst_21 : f32 to vector<4x8x8xf32>
    %43 = arith.mulf %41, %42 : vector<4x8x8xf32>
    %44 = vector.shape_cast %2 : vector<4x8xf32> to vector<4x1x8xf32>
    %45 = vector.broadcast %44 : vector<4x1x8xf32> to vector<4x8x8xf32>
    %46 = arith.addf %43, %45 : vector<4x8x8xf32>
    %cst_22 = arith.constant dense<0xFF800000> : vector<4x8xf32>
    %47 = vector.multi_reduction <maximumf>, %46, %cst_22 [2] : vector<4x8x8xf32> to vector<4x8xf32>
    %48 = vector.shape_cast %47 : vector<4x8xf32> to vector<4x8x1xf32>
    %49 = vector.broadcast %48 : vector<4x8x1xf32> to vector<4x8x8xf32>
    %50 = arith.subf %46, %49 : vector<4x8x8xf32>
    %51 = math.exp %50 : vector<4x8x8xf32>
    %cst_23 = arith.constant dense<0.000000e+00> : vector<4x8xf32>
    %52 = vector.multi_reduction <add>, %51, %cst_23 [2] : vector<4x8x8xf32> to vector<4x8xf32>
    %53 = vector.shape_cast %52 : vector<4x8xf32> to vector<4x8x1xf32>
    %54 = tpu.reciprocal %53 {approx = true} : vector<4x8x1xf32> -> vector<4x8x1xf32>
    %55 = vector.broadcast %54 : vector<4x8x1xf32> to vector<4x8x8xf32>
    %56 = arith.mulf %51, %55 : vector<4x8x8xf32>
    "tpu.trace_start"() <{level = 10 : i32, message = "bqk,bkd->bqd"}> : () -> ()
    %cst_24 = arith.constant dense<0.000000e+00> : vector<4x8x8xf32>
    %57 = tpu.matmul %56, %40, %cst_24 {dimension_numbers = #tpu.dot_dimension_numbers<[2], [1], [1], [2], [0, 0, 0, 1, 1, 2], [0], [0]>} : vector<4x8x8xf32>, vector<4x8x8xf32>, vector<4x8x8xf32> -> vector<4x8x8xf32>
    "tpu.trace_stop"() : () -> ()
    %58 = vector.shape_cast %57 : vector<4x8x8xf32> to vector<32x8xf32>
    %59 = vector.extract_strided_slice %12 {offsets = [8, 0], sizes = [8, 32], strides = [1, 1]} : vector<32x32xf32> to vector<8x32xf32>
    %cst_25 = arith.constant dense<0.000000e+00> : vector<32x32xf32>
    %60 = tpu.matmul %58, %59, %cst_25 {dimension_numbers = #tpu.dot_dimension_numbers<[1], [0], [0], [1], [0, 0, 1, 1], [], []>} : vector<32x8xf32>, vector<8x32xf32>, vector<32x32xf32> -> vector<32x32xf32>
    %61 = arith.addf %37, %60 : vector<32x32xf32>
    %62 = vector.extract_strided_slice %10 {offsets = [0, 0, 16], sizes = [4, 8, 8], strides = [1, 1, 1]} : vector<4x8x96xf32> to vector<4x8x8xf32>
    %63 = vector.extract_strided_slice %10 {offsets = [0, 0, 48], sizes = [4, 8, 8], strides = [1, 1, 1]} : vector<4x8x96xf32> to vector<4x8x8xf32>
    %64 = vector.extract_strided_slice %10 {offsets = [0, 0, 80], sizes = [4, 8, 8], strides = [1, 1, 1]} : vector<4x8x96xf32> to vector<4x8x8xf32>
    "tpu.trace_start"() <{level = 10 : i32, message = "bqd,bkd->bqk"}> : () -> ()
    %cst_26 = arith.constant dense<0.000000e+00> : vector<4x8x8xf32>
    %65 = tpu.matmul %62, %63, %cst_26 {dimension_numbers = #tpu.dot_dimension_numbers<[2], [2], [1], [1], [0, 0, 0, 1, 1, 1], [0], [0]>} : vector<4x8x8xf32>, vector<4x8x8xf32>, vector<4x8x8xf32> -> vector<4x8x8xf32>
    "tpu.trace_stop"() : () -> ()
    %cst_27 = arith.constant 0.353553385 : f32
    %66 = vector.broadcast %cst_27 : f32 to vector<4x8x8xf32>
    %67 = arith.mulf %65, %66 : vector<4x8x8xf32>
    %68 = vector.shape_cast %2 : vector<4x8xf32> to vector<4x1x8xf32>
    %69 = vector.broadcast %68 : vector<4x1x8xf32> to vector<4x8x8xf32>
    %70 = arith.addf %67, %69 : vector<4x8x8xf32>
    %cst_28 = arith.constant dense<0xFF800000> : vector<4x8xf32>
    %71 = vector.multi_reduction <maximumf>, %70, %cst_28 [2] : vector<4x8x8xf32> to vector<4x8xf32>
    %72 = vector.shape_cast %71 : vector<4x8xf32> to vector<4x8x1xf32>
    %73 = vector.broadcast %72 : vector<4x8x1xf32> to vector<4x8x8xf32>
    %74 = arith.subf %70, %73 : vector<4x8x8xf32>
    %75 = math.exp %74 : vector<4x8x8xf32>
    %cst_29 = arith.constant dense<0.000000e+00> : vector<4x8xf32>
    %76 = vector.multi_reduction <add>, %75, %cst_29 [2] : vector<4x8x8xf32> to vector<4x8xf32>
    %77 = vector.shape_cast %76 : vector<4x8xf32> to vector<4x8x1xf32>
    %78 = tpu.reciprocal %77 {approx = true} : vector<4x8x1xf32> -> vector<4x8x1xf32>
    %79 = vector.broadcast %78 : vector<4x8x1xf32> to vector<4x8x8xf32>
    %80 = arith.mulf %75, %79 : vector<4x8x8xf32>
    "tpu.trace_start"() <{level = 10 : i32, message = "bqk,bkd->bqd"}> : () -> ()
    %cst_30 = arith.constant dense<0.000000e+00> : vector<4x8x8xf32>
    %81 = tpu.matmul %80, %64, %cst_30 {dimension_numbers = #tpu.dot_dimension_numbers<[2], [1], [1], [2], [0, 0, 0, 1, 1, 2], [0], [0]>} : vector<4x8x8xf32>, vector<4x8x8xf32>, vector<4x8x8xf32> -> vector<4x8x8xf32>
    "tpu.trace_stop"() : () -> ()
    %82 = vector.shape_cast %81 : vector<4x8x8xf32> to vector<32x8xf32>
    %83 = vector.extract_strided_slice %12 {offsets = [16, 0], sizes = [8, 32], strides = [1, 1]} : vector<32x32xf32> to vector<8x32xf32>
    %cst_31 = arith.constant dense<0.000000e+00> : vector<32x32xf32>
    %84 = tpu.matmul %82, %83, %cst_31 {dimension_numbers = #tpu.dot_dimension_numbers<[1], [0], [0], [1], [0, 0, 1, 1], [], []>} : vector<32x8xf32>, vector<8x32xf32>, vector<32x32xf32> -> vector<32x32xf32>
    %85 = arith.addf %61, %84 : vector<32x32xf32>
    %86 = vector.extract_strided_slice %10 {offsets = [0, 0, 24], sizes = [4, 8, 8], strides = [1, 1, 1]} : vector<4x8x96xf32> to vector<4x8x8xf32>
    %87 = vector.extract_strided_slice %10 {offsets = [0, 0, 56], sizes = [4, 8, 8], strides = [1, 1, 1]} : vector<4x8x96xf32> to vector<4x8x8xf32>
    %88 = vector.extract_strided_slice %10 {offsets = [0, 0, 88], sizes = [4, 8, 8], strides = [1, 1, 1]} : vector<4x8x96xf32> to vector<4x8x8xf32>
    "tpu.trace_start"() <{level = 10 : i32, message = "bqd,bkd->bqk"}> : () -> ()
    %cst_32 = arith.constant dense<0.000000e+00> : vector<4x8x8xf32>
    %89 = tpu.matmul %86, %87, %cst_32 {dimension_numbers = #tpu.dot_dimension_numbers<[2], [2], [1], [1], [0, 0, 0, 1, 1, 1], [0], [0]>} : vector<4x8x8xf32>, vector<4x8x8xf32>, vector<4x8x8xf32> -> vector<4x8x8xf32>
    "tpu.trace_stop"() : () -> ()
    %cst_33 = arith.constant 0.353553385 : f32
    %90 = vector.broadcast %cst_33 : f32 to vector<4x8x8xf32>
    %91 = arith.mulf %89, %90 : vector<4x8x8xf32>
    %92 = vector.shape_cast %2 : vector<4x8xf32> to vector<4x1x8xf32>
    %93 = vector.broadcast %92 : vector<4x1x8xf32> to vector<4x8x8xf32>
    %94 = arith.addf %91, %93 : vector<4x8x8xf32>
    %cst_34 = arith.constant dense<0xFF800000> : vector<4x8xf32>
    %95 = vector.multi_reduction <maximumf>, %94, %cst_34 [2] : vector<4x8x8xf32> to vector<4x8xf32>
    %96 = vector.shape_cast %95 : vector<4x8xf32> to vector<4x8x1xf32>
    %97 = vector.broadcast %96 : vector<4x8x1xf32> to vector<4x8x8xf32>
    %98 = arith.subf %94, %97 : vector<4x8x8xf32>
    %99 = math.exp %98 : vector<4x8x8xf32>
    %cst_35 = arith.constant dense<0.000000e+00> : vector<4x8xf32>
    %100 = vector.multi_reduction <add>, %99, %cst_35 [2] : vector<4x8x8xf32> to vector<4x8xf32>
    %101 = vector.shape_cast %100 : vector<4x8xf32> to vector<4x8x1xf32>
    %102 = tpu.reciprocal %101 {approx = true} : vector<4x8x1xf32> -> vector<4x8x1xf32>
    %103 = vector.broadcast %102 : vector<4x8x1xf32> to vector<4x8x8xf32>
    %104 = arith.mulf %99, %103 : vector<4x8x8xf32>
    "tpu.trace_start"() <{level = 10 : i32, message = "bqk,bkd->bqd"}> : () -> ()
    %cst_36 = arith.constant dense<0.000000e+00> : vector<4x8x8xf32>
    %105 = tpu.matmul %104, %88, %cst_36 {dimension_numbers = #tpu.dot_dimension_numbers<[2], [1], [1], [2], [0, 0, 0, 1, 1, 2], [0], [0]>} : vector<4x8x8xf32>, vector<4x8x8xf32>, vector<4x8x8xf32> -> vector<4x8x8xf32>
    "tpu.trace_stop"() : () -> ()
    %106 = vector.shape_cast %105 : vector<4x8x8xf32> to vector<32x8xf32>
    %107 = vector.extract_strided_slice %12 {offsets = [24, 0], sizes = [8, 32], strides = [1, 1]} : vector<32x32xf32> to vector<8x32xf32>
    %cst_37 = arith.constant dense<0.000000e+00> : vector<32x32xf32>
    %108 = tpu.matmul %106, %107, %cst_37 {dimension_numbers = #tpu.dot_dimension_numbers<[1], [0], [0], [1], [0, 0, 1, 1], [], []>} : vector<32x8xf32>, vector<8x32xf32>, vector<32x32xf32> -> vector<32x32xf32>
    %109 = arith.addf %85, %108 : vector<32x32xf32>
    %c0_38 = arith.constant 0 : index
    %c0_39 = arith.constant 0 : index
    %c0_40 = arith.constant 0 : index
    %110 = vector.load %arg5[%c0_38, %c0_39, %c0_40] : memref<2x1x32xf32, #tpu.memory_space<vmem>>, vector<1x1x32xf32>
    %111 = vector.shape_cast %110 : vector<1x1x32xf32> to vector<1x32xf32>
    %112 = vector.broadcast %111 : vector<1x32xf32> to vector<32x32xf32>
    %113 = arith.addf %109, %112 : vector<32x32xf32>
    %114 = arith.addf %1, %113 : vector<32x32xf32>
    %c0_41 = arith.constant 0 : index
    %c0_42 = arith.constant 0 : index
    %c0_43 = arith.constant 0 : index
    %115 = vector.load %arg6[%c0_41, %c0_42, %c0_43] : memref<2x1x32xf32, #tpu.memory_space<vmem>>, vector<1x1x32xf32>
    %116 = vector.shape_cast %115 : vector<1x1x32xf32> to vector<1x32xf32>
    %c0_44 = arith.constant 0 : index
    %c0_45 = arith.constant 0 : index
    %c0_46 = arith.constant 0 : index
    %117 = vector.load %arg7[%c0_44, %c0_45, %c0_46] : memref<2x1x32xf32, #tpu.memory_space<vmem>>, vector<1x1x32xf32>
    %118 = vector.shape_cast %117 : vector<1x1x32xf32> to vector<1x32xf32>
    %cst_47 = arith.constant dense<0.000000e+00> : vector<32xf32>
    %119 = vector.multi_reduction <add>, %114, %cst_47 [1] : vector<32x32xf32> to vector<32xf32>
    %120 = vector.shape_cast %119 : vector<32xf32> to vector<32x1xf32>
    %cst_48 = arith.constant 3.200000e+01 : f32
    %121 = vector.broadcast %cst_48 : f32 to vector<32x1xf32>
    %122 = arith.divf %120, %121 : vector<32x1xf32>
    %123 = vector.broadcast %122 : vector<32x1xf32> to vector<32x32xf32>
    %124 = arith.subf %114, %123 : vector<32x32xf32>
    %125 = arith.mulf %124, %124 : vector<32x32xf32>
    %cst_49 = arith.constant dense<0.000000e+00> : vector<32xf32>
    %126 = vector.multi_reduction <add>, %125, %cst_49 [1] : vector<32x32xf32> to vector<32xf32>
    %127 = vector.shape_cast %126 : vector<32xf32> to vector<32x1xf32>
    %cst_50 = arith.constant 3.200000e+01 : f32
    %128 = vector.broadcast %cst_50 : f32 to vector<32x1xf32>
    %129 = arith.divf %127, %128 : vector<32x1xf32>
    %130 = vector.broadcast %122 : vector<32x1xf32> to vector<32x32xf32>
    %131 = arith.subf %114, %130 : vector<32x32xf32>
    %cst_51 = arith.constant 9.99999997E-7 : f32
    %132 = vector.broadcast %cst_51 : f32 to vector<32x1xf32>
    %133 = arith.addf %129, %132 : vector<32x1xf32>
    %134 = math.rsqrt %133 : vector<32x1xf32>
    %135 = vector.broadcast %134 : vector<32x1xf32> to vector<32x32xf32>
    %136 = arith.mulf %131, %135 : vector<32x32xf32>
    %137 = vector.broadcast %116 : vector<1x32xf32> to vector<32x32xf32>
    %138 = arith.mulf %136, %137 : vector<32x32xf32>
    %139 = vector.broadcast %118 : vector<1x32xf32> to vector<32x32xf32>
    %140 = arith.addf %138, %139 : vector<32x32xf32>
    %c0_52 = arith.constant 0 : index
    %c0_53 = arith.constant 0 : index
    %c0_54 = arith.constant 0 : index
    %141 = vector.load %arg8[%c0_52, %c0_53, %c0_54] : memref<2x32x64xf32, #tpu.memory_space<vmem>>, vector<1x32x64xf32>
    %142 = vector.shape_cast %141 : vector<1x32x64xf32> to vector<32x64xf32>
    %cst_55 = arith.constant dense<0.000000e+00> : vector<32x64xf32>
    %143 = tpu.matmul %140, %142, %cst_55 {dimension_numbers = #tpu.dot_dimension_numbers<[1], [0], [0], [1], [0, 0, 1, 1], [], []>} : vector<32x32xf32>, vector<32x64xf32>, vector<32x64xf32> -> vector<32x64xf32>
    %c0_56 = arith.constant 0 : index
    %c0_57 = arith.constant 0 : index
    %c0_58 = arith.constant 0 : index
    %144 = vector.load %arg9[%c0_56, %c0_57, %c0_58] : memref<2x1x64xf32, #tpu.memory_space<vmem>>, vector<1x1x64xf32>
    %145 = vector.shape_cast %144 : vector<1x1x64xf32> to vector<1x64xf32>
    %146 = vector.broadcast %145 : vector<1x64xf32> to vector<32x64xf32>
    %147 = arith.addf %143, %146 : vector<32x64xf32>
    %cst_59 = arith.constant 5.000000e-01 : f32
    %148 = vector.broadcast %cst_59 : f32 to vector<32x64xf32>
    %149 = arith.mulf %148, %147 : vector<32x64xf32>
    %cst_60 = arith.constant 4.471500e-02 : f32
    %150 = vector.broadcast %cst_60 : f32 to vector<32x64xf32>
    %151 = arith.mulf %150, %147 : vector<32x64xf32>
    %152 = arith.mulf %151, %147 : vector<32x64xf32>
    %153 = arith.mulf %152, %147 : vector<32x64xf32>
    %154 = arith.addf %147, %153 : vector<32x64xf32>
    %cst_61 = arith.constant 0.797884583 : f32
    %155 = vector.broadcast %cst_61 : f32 to vector<32x64xf32>
    %156 = arith.mulf %155, %154 : vector<32x64xf32>
    %157 = math.tanh %156 : vector<32x64xf32>
    %cst_62 = arith.constant 1.000000e+00 : f32
    %158 = vector.broadcast %cst_62 : f32 to vector<32x64xf32>
    %159 = arith.addf %158, %157 : vector<32x64xf32>
    %160 = arith.mulf %149, %159 : vector<32x64xf32>
    %c0_63 = arith.constant 0 : index
    %c0_64 = arith.constant 0 : index
    %c0_65 = arith.constant 0 : index
    %161 = vector.load %arg10[%c0_63, %c0_64, %c0_65] : memref<2x64x32xf32, #tpu.memory_space<vmem>>, vector<1x64x32xf32>
    %162 = vector.shape_cast %161 : vector<1x64x32xf32> to vector<64x32xf32>
    %cst_66 = arith.constant dense<0.000000e+00> : vector<32x32xf32>
    %163 = tpu.matmul %160, %162, %cst_66 {dimension_numbers = #tpu.dot_dimension_numbers<[1], [0], [0], [1], [0, 0, 1, 1], [], []>} : vector<32x64xf32>, vector<64x32xf32>, vector<32x32xf32> -> vector<32x32xf32>
    %c0_67 = arith.constant 0 : index
    %c0_68 = arith.constant 0 : index
    %c0_69 = arith.constant 0 : index
    %164 = vector.load %arg11[%c0_67, %c0_68, %c0_69] : memref<2x1x32xf32, #tpu.memory_space<vmem>>, vector<1x1x32xf32>
    %165 = vector.shape_cast %164 : vector<1x1x32xf32> to vector<1x32xf32>
    %166 = vector.broadcast %165 : vector<1x32xf32> to vector<32x32xf32>
    %167 = arith.addf %163, %166 : vector<32x32xf32>
    %168 = arith.addf %140, %167 : vector<32x32xf32>
    %c0_70 = arith.constant 0 : index
    %c0_71 = arith.constant 0 : index
    %c0_72 = arith.constant 0 : index
    %169 = vector.load %arg12[%c0_70, %c0_71, %c0_72] : memref<2x1x32xf32, #tpu.memory_space<vmem>>, vector<1x1x32xf32>
    %170 = vector.shape_cast %169 : vector<1x1x32xf32> to vector<1x32xf32>
    %c0_73 = arith.constant 0 : index
    %c0_74 = arith.constant 0 : index
    %c0_75 = arith.constant 0 : index
    %171 = vector.load %arg13[%c0_73, %c0_74, %c0_75] : memref<2x1x32xf32, #tpu.memory_space<vmem>>, vector<1x1x32xf32>
    %172 = vector.shape_cast %171 : vector<1x1x32xf32> to vector<1x32xf32>
    %cst_76 = arith.constant dense<0.000000e+00> : vector<32xf32>
    %173 = vector.multi_reduction <add>, %168, %cst_76 [1] : vector<32x32xf32> to vector<32xf32>
    %174 = vector.shape_cast %173 : vector<32xf32> to vector<32x1xf32>
    %cst_77 = arith.constant 3.200000e+01 : f32
    %175 = vector.broadcast %cst_77 : f32 to vector<32x1xf32>
    %176 = arith.divf %174, %175 : vector<32x1xf32>
    %177 = vector.broadcast %176 : vector<32x1xf32> to vector<32x32xf32>
    %178 = arith.subf %168, %177 : vector<32x32xf32>
    %179 = arith.mulf %178, %178 : vector<32x32xf32>
    %cst_78 = arith.constant dense<0.000000e+00> : vector<32xf32>
    %180 = vector.multi_reduction <add>, %179, %cst_78 [1] : vector<32x32xf32> to vector<32xf32>
    %181 = vector.shape_cast %180 : vector<32xf32> to vector<32x1xf32>
    %cst_79 = arith.constant 3.200000e+01 : f32
    %182 = vector.broadcast %cst_79 : f32 to vector<32x1xf32>
    %183 = arith.divf %181, %182 : vector<32x1xf32>
    %184 = vector.broadcast %176 : vector<32x1xf32> to vector<32x32xf32>
    %185 = arith.subf %168, %184 : vector<32x32xf32>
    %cst_80 = arith.constant 9.99999997E-7 : f32
    %186 = vector.broadcast %cst_80 : f32 to vector<32x1xf32>
    %187 = arith.addf %183, %186 : vector<32x1xf32>
    %188 = math.rsqrt %187 : vector<32x1xf32>
    %189 = vector.broadcast %188 : vector<32x1xf32> to vector<32x32xf32>
    %190 = arith.mulf %185, %189 : vector<32x32xf32>
    %191 = vector.broadcast %170 : vector<1x32xf32> to vector<32x32xf32>
    %192 = arith.mulf %190, %191 : vector<32x32xf32>
    %193 = vector.broadcast %172 : vector<1x32xf32> to vector<32x32xf32>
    %194 = arith.addf %192, %193 : vector<32x32xf32>
    %c1 = arith.constant 1 : index
    %c0_81 = arith.constant 0 : index
    %c0_82 = arith.constant 0 : index
    %195 = vector.load %arg2[%c1, %c0_81, %c0_82] : memref<2x32x96xf32, #tpu.memory_space<vmem>>, vector<1x32x96xf32>
    %196 = vector.shape_cast %195 : vector<1x32x96xf32> to vector<32x96xf32>
    %cst_83 = arith.constant dense<0.000000e+00> : vector<32x96xf32>
    %197 = tpu.matmul %194, %196, %cst_83 {dimension_numbers = #tpu.dot_dimension_numbers<[1], [0], [0], [1], [0, 0, 1, 1], [], []>} : vector<32x32xf32>, vector<32x96xf32>, vector<32x96xf32> -> vector<32x96xf32>
    %c1_84 = arith.constant 1 : index
    %c0_85 = arith.constant 0 : index
    %c0_86 = arith.constant 0 : index
    %198 = vector.load %arg3[%c1_84, %c0_85, %c0_86] : memref<2x1x96xf32, #tpu.memory_space<vmem>>, vector<1x1x96xf32>
    %199 = vector.shape_cast %198 : vector<1x1x96xf32> to vector<1x96xf32>
    %200 = vector.broadcast %199 : vector<1x96xf32> to vector<32x96xf32>
    %201 = arith.addf %197, %200 : vector<32x96xf32>
    %202 = vector.shape_cast %201 : vector<32x96xf32> to vector<4x8x96xf32>
    %c1_87 = arith.constant 1 : index
    %c0_88 = arith.constant 0 : index
    %c0_89 = arith.constant 0 : index
    %203 = vector.load %arg4[%c1_87, %c0_88, %c0_89] : memref<2x32x32xf32, #tpu.memory_space<vmem>>, vector<1x32x32xf32>
    %204 = vector.shape_cast %203 : vector<1x32x32xf32> to vector<32x32xf32>
    %cst_90 = arith.constant 0.000000e+00 : f32
    %205 = vector.broadcast %cst_90 : f32 to vector<32x32xf32>
    %206 = vector.extract_strided_slice %202 {offsets = [0, 0, 0], sizes = [4, 8, 8], strides = [1, 1, 1]} : vector<4x8x96xf32> to vector<4x8x8xf32>
    %207 = vector.extract_strided_slice %202 {offsets = [0, 0, 32], sizes = [4, 8, 8], strides = [1, 1, 1]} : vector<4x8x96xf32> to vector<4x8x8xf32>
    %208 = vector.extract_strided_slice %202 {offsets = [0, 0, 64], sizes = [4, 8, 8], strides = [1, 1, 1]} : vector<4x8x96xf32> to vector<4x8x8xf32>
    "tpu.trace_start"() <{level = 10 : i32, message = "bqd,bkd->bqk"}> : () -> ()
    %cst_91 = arith.constant dense<0.000000e+00> : vector<4x8x8xf32>
    %209 = tpu.matmul %206, %207, %cst_91 {dimension_numbers = #tpu.dot_dimension_numbers<[2], [2], [1], [1], [0, 0, 0, 1, 1, 1], [0], [0]>} : vector<4x8x8xf32>, vector<4x8x8xf32>, vector<4x8x8xf32> -> vector<4x8x8xf32>
    "tpu.trace_stop"() : () -> ()
    %cst_92 = arith.constant 0.353553385 : f32
    %210 = vector.broadcast %cst_92 : f32 to vector<4x8x8xf32>
    %211 = arith.mulf %209, %210 : vector<4x8x8xf32>
    %212 = vector.shape_cast %2 : vector<4x8xf32> to vector<4x1x8xf32>
    %213 = vector.broadcast %212 : vector<4x1x8xf32> to vector<4x8x8xf32>
    %214 = arith.addf %211, %213 : vector<4x8x8xf32>
    %cst_93 = arith.constant dense<0xFF800000> : vector<4x8xf32>
    %215 = vector.multi_reduction <maximumf>, %214, %cst_93 [2] : vector<4x8x8xf32> to vector<4x8xf32>
    %216 = vector.shape_cast %215 : vector<4x8xf32> to vector<4x8x1xf32>
    %217 = vector.broadcast %216 : vector<4x8x1xf32> to vector<4x8x8xf32>
    %218 = arith.subf %214, %217 : vector<4x8x8xf32>
    %219 = math.exp %218 : vector<4x8x8xf32>
    %cst_94 = arith.constant dense<0.000000e+00> : vector<4x8xf32>
    %220 = vector.multi_reduction <add>, %219, %cst_94 [2] : vector<4x8x8xf32> to vector<4x8xf32>
    %221 = vector.shape_cast %220 : vector<4x8xf32> to vector<4x8x1xf32>
    %222 = tpu.reciprocal %221 {approx = true} : vector<4x8x1xf32> -> vector<4x8x1xf32>
    %223 = vector.broadcast %222 : vector<4x8x1xf32> to vector<4x8x8xf32>
    %224 = arith.mulf %219, %223 : vector<4x8x8xf32>
    "tpu.trace_start"() <{level = 10 : i32, message = "bqk,bkd->bqd"}> : () -> ()
    %cst_95 = arith.constant dense<0.000000e+00> : vector<4x8x8xf32>
    %225 = tpu.matmul %224, %208, %cst_95 {dimension_numbers = #tpu.dot_dimension_numbers<[2], [1], [1], [2], [0, 0, 0, 1, 1, 2], [0], [0]>} : vector<4x8x8xf32>, vector<4x8x8xf32>, vector<4x8x8xf32> -> vector<4x8x8xf32>
    "tpu.trace_stop"() : () -> ()
    %226 = vector.shape_cast %225 : vector<4x8x8xf32> to vector<32x8xf32>
    %227 = vector.extract_strided_slice %204 {offsets = [0, 0], sizes = [8, 32], strides = [1, 1]} : vector<32x32xf32> to vector<8x32xf32>
    %cst_96 = arith.constant dense<0.000000e+00> : vector<32x32xf32>
    %228 = tpu.matmul %226, %227, %cst_96 {dimension_numbers = #tpu.dot_dimension_numbers<[1], [0], [0], [1], [0, 0, 1, 1], [], []>} : vector<32x8xf32>, vector<8x32xf32>, vector<32x32xf32> -> vector<32x32xf32>
    %229 = arith.addf %205, %228 : vector<32x32xf32>
    %230 = vector.extract_strided_slice %202 {offsets = [0, 0, 8], sizes = [4, 8, 8], strides = [1, 1, 1]} : vector<4x8x96xf32> to vector<4x8x8xf32>
    %231 = vector.extract_strided_slice %202 {offsets = [0, 0, 40], sizes = [4, 8, 8], strides = [1, 1, 1]} : vector<4x8x96xf32> to vector<4x8x8xf32>
    %232 = vector.extract_strided_slice %202 {offsets = [0, 0, 72], sizes = [4, 8, 8], strides = [1, 1, 1]} : vector<4x8x96xf32> to vector<4x8x8xf32>
    "tpu.trace_start"() <{level = 10 : i32, message = "bqd,bkd->bqk"}> : () -> ()
    %cst_97 = arith.constant dense<0.000000e+00> : vector<4x8x8xf32>
    %233 = tpu.matmul %230, %231, %cst_97 {dimension_numbers = #tpu.dot_dimension_numbers<[2], [2], [1], [1], [0, 0, 0, 1, 1, 1], [0], [0]>} : vector<4x8x8xf32>, vector<4x8x8xf32>, vector<4x8x8xf32> -> vector<4x8x8xf32>
    "tpu.trace_stop"() : () -> ()
    %cst_98 = arith.constant 0.353553385 : f32
    %234 = vector.broadcast %cst_98 : f32 to vector<4x8x8xf32>
    %235 = arith.mulf %233, %234 : vector<4x8x8xf32>
    %236 = vector.shape_cast %2 : vector<4x8xf32> to vector<4x1x8xf32>
    %237 = vector.broadcast %236 : vector<4x1x8xf32> to vector<4x8x8xf32>
    %238 = arith.addf %235, %237 : vector<4x8x8xf32>
    %cst_99 = arith.constant dense<0xFF800000> : vector<4x8xf32>
    %239 = vector.multi_reduction <maximumf>, %238, %cst_99 [2] : vector<4x8x8xf32> to vector<4x8xf32>
    %240 = vector.shape_cast %239 : vector<4x8xf32> to vector<4x8x1xf32>
    %241 = vector.broadcast %240 : vector<4x8x1xf32> to vector<4x8x8xf32>
    %242 = arith.subf %238, %241 : vector<4x8x8xf32>
    %243 = math.exp %242 : vector<4x8x8xf32>
    %cst_100 = arith.constant dense<0.000000e+00> : vector<4x8xf32>
    %244 = vector.multi_reduction <add>, %243, %cst_100 [2] : vector<4x8x8xf32> to vector<4x8xf32>
    %245 = vector.shape_cast %244 : vector<4x8xf32> to vector<4x8x1xf32>
    %246 = tpu.reciprocal %245 {approx = true} : vector<4x8x1xf32> -> vector<4x8x1xf32>
    %247 = vector.broadcast %246 : vector<4x8x1xf32> to vector<4x8x8xf32>
    %248 = arith.mulf %243, %247 : vector<4x8x8xf32>
    "tpu.trace_start"() <{level = 10 : i32, message = "bqk,bkd->bqd"}> : () -> ()
    %cst_101 = arith.constant dense<0.000000e+00> : vector<4x8x8xf32>
    %249 = tpu.matmul %248, %232, %cst_101 {dimension_numbers = #tpu.dot_dimension_numbers<[2], [1], [1], [2], [0, 0, 0, 1, 1, 2], [0], [0]>} : vector<4x8x8xf32>, vector<4x8x8xf32>, vector<4x8x8xf32> -> vector<4x8x8xf32>
    "tpu.trace_stop"() : () -> ()
    %250 = vector.shape_cast %249 : vector<4x8x8xf32> to vector<32x8xf32>
    %251 = vector.extract_strided_slice %204 {offsets = [8, 0], sizes = [8, 32], strides = [1, 1]} : vector<32x32xf32> to vector<8x32xf32>
    %cst_102 = arith.constant dense<0.000000e+00> : vector<32x32xf32>
    %252 = tpu.matmul %250, %251, %cst_102 {dimension_numbers = #tpu.dot_dimension_numbers<[1], [0], [0], [1], [0, 0, 1, 1], [], []>} : vector<32x8xf32>, vector<8x32xf32>, vector<32x32xf32> -> vector<32x32xf32>
    %253 = arith.addf %229, %252 : vector<32x32xf32>
    %254 = vector.extract_strided_slice %202 {offsets = [0, 0, 16], sizes = [4, 8, 8], strides = [1, 1, 1]} : vector<4x8x96xf32> to vector<4x8x8xf32>
    %255 = vector.extract_strided_slice %202 {offsets = [0, 0, 48], sizes = [4, 8, 8], strides = [1, 1, 1]} : vector<4x8x96xf32> to vector<4x8x8xf32>
    %256 = vector.extract_strided_slice %202 {offsets = [0, 0, 80], sizes = [4, 8, 8], strides = [1, 1, 1]} : vector<4x8x96xf32> to vector<4x8x8xf32>
    "tpu.trace_start"() <{level = 10 : i32, message = "bqd,bkd->bqk"}> : () -> ()
    %cst_103 = arith.constant dense<0.000000e+00> : vector<4x8x8xf32>
    %257 = tpu.matmul %254, %255, %cst_103 {dimension_numbers = #tpu.dot_dimension_numbers<[2], [2], [1], [1], [0, 0, 0, 1, 1, 1], [0], [0]>} : vector<4x8x8xf32>, vector<4x8x8xf32>, vector<4x8x8xf32> -> vector<4x8x8xf32>
    "tpu.trace_stop"() : () -> ()
    %cst_104 = arith.constant 0.353553385 : f32
    %258 = vector.broadcast %cst_104 : f32 to vector<4x8x8xf32>
    %259 = arith.mulf %257, %258 : vector<4x8x8xf32>
    %260 = vector.shape_cast %2 : vector<4x8xf32> to vector<4x1x8xf32>
    %261 = vector.broadcast %260 : vector<4x1x8xf32> to vector<4x8x8xf32>
    %262 = arith.addf %259, %261 : vector<4x8x8xf32>
    %cst_105 = arith.constant dense<0xFF800000> : vector<4x8xf32>
    %263 = vector.multi_reduction <maximumf>, %262, %cst_105 [2] : vector<4x8x8xf32> to vector<4x8xf32>
    %264 = vector.shape_cast %263 : vector<4x8xf32> to vector<4x8x1xf32>
    %265 = vector.broadcast %264 : vector<4x8x1xf32> to vector<4x8x8xf32>
    %266 = arith.subf %262, %265 : vector<4x8x8xf32>
    %267 = math.exp %266 : vector<4x8x8xf32>
    %cst_106 = arith.constant dense<0.000000e+00> : vector<4x8xf32>
    %268 = vector.multi_reduction <add>, %267, %cst_106 [2] : vector<4x8x8xf32> to vector<4x8xf32>
    %269 = vector.shape_cast %268 : vector<4x8xf32> to vector<4x8x1xf32>
    %270 = tpu.reciprocal %269 {approx = true} : vector<4x8x1xf32> -> vector<4x8x1xf32>
    %271 = vector.broadcast %270 : vector<4x8x1xf32> to vector<4x8x8xf32>
    %272 = arith.mulf %267, %271 : vector<4x8x8xf32>
    "tpu.trace_start"() <{level = 10 : i32, message = "bqk,bkd->bqd"}> : () -> ()
    %cst_107 = arith.constant dense<0.000000e+00> : vector<4x8x8xf32>
    %273 = tpu.matmul %272, %256, %cst_107 {dimension_numbers = #tpu.dot_dimension_numbers<[2], [1], [1], [2], [0, 0, 0, 1, 1, 2], [0], [0]>} : vector<4x8x8xf32>, vector<4x8x8xf32>, vector<4x8x8xf32> -> vector<4x8x8xf32>
    "tpu.trace_stop"() : () -> ()
    %274 = vector.shape_cast %273 : vector<4x8x8xf32> to vector<32x8xf32>
    %275 = vector.extract_strided_slice %204 {offsets = [16, 0], sizes = [8, 32], strides = [1, 1]} : vector<32x32xf32> to vector<8x32xf32>
    %cst_108 = arith.constant dense<0.000000e+00> : vector<32x32xf32>
    %276 = tpu.matmul %274, %275, %cst_108 {dimension_numbers = #tpu.dot_dimension_numbers<[1], [0], [0], [1], [0, 0, 1, 1], [], []>} : vector<32x8xf32>, vector<8x32xf32>, vector<32x32xf32> -> vector<32x32xf32>
    %277 = arith.addf %253, %276 : vector<32x32xf32>
    %278 = vector.extract_strided_slice %202 {offsets = [0, 0, 24], sizes = [4, 8, 8], strides = [1, 1, 1]} : vector<4x8x96xf32> to vector<4x8x8xf32>
    %279 = vector.extract_strided_slice %202 {offsets = [0, 0, 56], sizes = [4, 8, 8], strides = [1, 1, 1]} : vector<4x8x96xf32> to vector<4x8x8xf32>
    %280 = vector.extract_strided_slice %202 {offsets = [0, 0, 88], sizes = [4, 8, 8], strides = [1, 1, 1]} : vector<4x8x96xf32> to vector<4x8x8xf32>
    "tpu.trace_start"() <{level = 10 : i32, message = "bqd,bkd->bqk"}> : () -> ()
    %cst_109 = arith.constant dense<0.000000e+00> : vector<4x8x8xf32>
    %281 = tpu.matmul %278, %279, %cst_109 {dimension_numbers = #tpu.dot_dimension_numbers<[2], [2], [1], [1], [0, 0, 0, 1, 1, 1], [0], [0]>} : vector<4x8x8xf32>, vector<4x8x8xf32>, vector<4x8x8xf32> -> vector<4x8x8xf32>
    "tpu.trace_stop"() : () -> ()
    %cst_110 = arith.constant 0.353553385 : f32
    %282 = vector.broadcast %cst_110 : f32 to vector<4x8x8xf32>
    %283 = arith.mulf %281, %282 : vector<4x8x8xf32>
    %284 = vector.shape_cast %2 : vector<4x8xf32> to vector<4x1x8xf32>
    %285 = vector.broadcast %284 : vector<4x1x8xf32> to vector<4x8x8xf32>
    %286 = arith.addf %283, %285 : vector<4x8x8xf32>
    %cst_111 = arith.constant dense<0xFF800000> : vector<4x8xf32>
    %287 = vector.multi_reduction <maximumf>, %286, %cst_111 [2] : vector<4x8x8xf32> to vector<4x8xf32>
    %288 = vector.shape_cast %287 : vector<4x8xf32> to vector<4x8x1xf32>
    %289 = vector.broadcast %288 : vector<4x8x1xf32> to vector<4x8x8xf32>
    %290 = arith.subf %286, %289 : vector<4x8x8xf32>
    %291 = math.exp %290 : vector<4x8x8xf32>
    %cst_112 = arith.constant dense<0.000000e+00> : vector<4x8xf32>
    %292 = vector.multi_reduction <add>, %291, %cst_112 [2] : vector<4x8x8xf32> to vector<4x8xf32>
    %293 = vector.shape_cast %292 : vector<4x8xf32> to vector<4x8x1xf32>
    %294 = tpu.reciprocal %293 {approx = true} : vector<4x8x1xf32> -> vector<4x8x1xf32>
    %295 = vector.broadcast %294 : vector<4x8x1xf32> to vector<4x8x8xf32>
    %296 = arith.mulf %291, %295 : vector<4x8x8xf32>
    "tpu.trace_start"() <{level = 10 : i32, message = "bqk,bkd->bqd"}> : () -> ()
    %cst_113 = arith.constant dense<0.000000e+00> : vector<4x8x8xf32>
    %297 = tpu.matmul %296, %280, %cst_113 {dimension_numbers = #tpu.dot_dimension_numbers<[2], [1], [1], [2], [0, 0, 0, 1, 1, 2], [0], [0]>} : vector<4x8x8xf32>, vector<4x8x8xf32>, vector<4x8x8xf32> -> vector<4x8x8xf32>
    "tpu.trace_stop"() : () -> ()
    %298 = vector.shape_cast %297 : vector<4x8x8xf32> to vector<32x8xf32>
    %299 = vector.extract_strided_slice %204 {offsets = [24, 0], sizes = [8, 32], strides = [1, 1]} : vector<32x32xf32> to vector<8x32xf32>
    %cst_114 = arith.constant dense<0.000000e+00> : vector<32x32xf32>
    %300 = tpu.matmul %298, %299, %cst_114 {dimension_numbers = #tpu.dot_dimension_numbers<[1], [0], [0], [1], [0, 0, 1, 1], [], []>} : vector<32x8xf32>, vector<8x32xf32>, vector<32x32xf32> -> vector<32x32xf32>
    %301 = arith.addf %277, %300 : vector<32x32xf32>
    %c1_115 = arith.constant 1 : index
    %c0_116 = arith.constant 0 : index
    %c0_117 = arith.constant 0 : index
    %302 = vector.load %arg5[%c1_115, %c0_116, %c0_117] : memref<2x1x32xf32, #tpu.memory_space<vmem>>, vector<1x1x32xf32>
    %303 = vector.shape_cast %302 : vector<1x1x32xf32> to vector<1x32xf32>
    %304 = vector.broadcast %303 : vector<1x32xf32> to vector<32x32xf32>
    %305 = arith.addf %301, %304 : vector<32x32xf32>
    %306 = arith.addf %194, %305 : vector<32x32xf32>
    %c1_118 = arith.constant 1 : index
    %c0_119 = arith.constant 0 : index
    %c0_120 = arith.constant 0 : index
    %307 = vector.load %arg6[%c1_118, %c0_119, %c0_120] : memref<2x1x32xf32, #tpu.memory_space<vmem>>, vector<1x1x32xf32>
    %308 = vector.shape_cast %307 : vector<1x1x32xf32> to vector<1x32xf32>
    %c1_121 = arith.constant 1 : index
    %c0_122 = arith.constant 0 : index
    %c0_123 = arith.constant 0 : index
    %309 = vector.load %arg7[%c1_121, %c0_122, %c0_123] : memref<2x1x32xf32, #tpu.memory_space<vmem>>, vector<1x1x32xf32>
    %310 = vector.shape_cast %309 : vector<1x1x32xf32> to vector<1x32xf32>
    %cst_124 = arith.constant dense<0.000000e+00> : vector<32xf32>
    %311 = vector.multi_reduction <add>, %306, %cst_124 [1] : vector<32x32xf32> to vector<32xf32>
    %312 = vector.shape_cast %311 : vector<32xf32> to vector<32x1xf32>
    %cst_125 = arith.constant 3.200000e+01 : f32
    %313 = vector.broadcast %cst_125 : f32 to vector<32x1xf32>
    %314 = arith.divf %312, %313 : vector<32x1xf32>
    %315 = vector.broadcast %314 : vector<32x1xf32> to vector<32x32xf32>
    %316 = arith.subf %306, %315 : vector<32x32xf32>
    %317 = arith.mulf %316, %316 : vector<32x32xf32>
    %cst_126 = arith.constant dense<0.000000e+00> : vector<32xf32>
    %318 = vector.multi_reduction <add>, %317, %cst_126 [1] : vector<32x32xf32> to vector<32xf32>
    %319 = vector.shape_cast %318 : vector<32xf32> to vector<32x1xf32>
    %cst_127 = arith.constant 3.200000e+01 : f32
    %320 = vector.broadcast %cst_127 : f32 to vector<32x1xf32>
    %321 = arith.divf %319, %320 : vector<32x1xf32>
    %322 = vector.broadcast %314 : vector<32x1xf32> to vector<32x32xf32>
    %323 = arith.subf %306, %322 : vector<32x32xf32>
    %cst_128 = arith.constant 9.99999997E-7 : f32
    %324 = vector.broadcast %cst_128 : f32 to vector<32x1xf32>
    %325 = arith.addf %321, %324 : vector<32x1xf32>
    %326 = math.rsqrt %325 : vector<32x1xf32>
    %327 = vector.broadcast %326 : vector<32x1xf32> to vector<32x32xf32>
    %328 = arith.mulf %323, %327 : vector<32x32xf32>
    %329 = vector.broadcast %308 : vector<1x32xf32> to vector<32x32xf32>
    %330 = arith.mulf %328, %329 : vector<32x32xf32>
    %331 = vector.broadcast %310 : vector<1x32xf32> to vector<32x32xf32>
    %332 = arith.addf %330, %331 : vector<32x32xf32>
    %c1_129 = arith.constant 1 : index
    %c0_130 = arith.constant 0 : index
    %c0_131 = arith.constant 0 : index
    %333 = vector.load %arg8[%c1_129, %c0_130, %c0_131] : memref<2x32x64xf32, #tpu.memory_space<vmem>>, vector<1x32x64xf32>
    %334 = vector.shape_cast %333 : vector<1x32x64xf32> to vector<32x64xf32>
    %cst_132 = arith.constant dense<0.000000e+00> : vector<32x64xf32>
    %335 = tpu.matmul %332, %334, %cst_132 {dimension_numbers = #tpu.dot_dimension_numbers<[1], [0], [0], [1], [0, 0, 1, 1], [], []>} : vector<32x32xf32>, vector<32x64xf32>, vector<32x64xf32> -> vector<32x64xf32>
    %c1_133 = arith.constant 1 : index
    %c0_134 = arith.constant 0 : index
    %c0_135 = arith.constant 0 : index
    %336 = vector.load %arg9[%c1_133, %c0_134, %c0_135] : memref<2x1x64xf32, #tpu.memory_space<vmem>>, vector<1x1x64xf32>
    %337 = vector.shape_cast %336 : vector<1x1x64xf32> to vector<1x64xf32>
    %338 = vector.broadcast %337 : vector<1x64xf32> to vector<32x64xf32>
    %339 = arith.addf %335, %338 : vector<32x64xf32>
    %cst_136 = arith.constant 5.000000e-01 : f32
    %340 = vector.broadcast %cst_136 : f32 to vector<32x64xf32>
    %341 = arith.mulf %340, %339 : vector<32x64xf32>
    %cst_137 = arith.constant 4.471500e-02 : f32
    %342 = vector.broadcast %cst_137 : f32 to vector<32x64xf32>
    %343 = arith.mulf %342, %339 : vector<32x64xf32>
    %344 = arith.mulf %343, %339 : vector<32x64xf32>
    %345 = arith.mulf %344, %339 : vector<32x64xf32>
    %346 = arith.addf %339, %345 : vector<32x64xf32>
    %cst_138 = arith.constant 0.797884583 : f32
    %347 = vector.broadcast %cst_138 : f32 to vector<32x64xf32>
    %348 = arith.mulf %347, %346 : vector<32x64xf32>
    %349 = math.tanh %348 : vector<32x64xf32>
    %cst_139 = arith.constant 1.000000e+00 : f32
    %350 = vector.broadcast %cst_139 : f32 to vector<32x64xf32>
    %351 = arith.addf %350, %349 : vector<32x64xf32>
    %352 = arith.mulf %341, %351 : vector<32x64xf32>
    %c1_140 = arith.constant 1 : index
    %c0_141 = arith.constant 0 : index
    %c0_142 = arith.constant 0 : index
    %353 = vector.load %arg10[%c1_140, %c0_141, %c0_142] : memref<2x64x32xf32, #tpu.memory_space<vmem>>, vector<1x64x32xf32>
    %354 = vector.shape_cast %353 : vector<1x64x32xf32> to vector<64x32xf32>
    %cst_143 = arith.constant dense<0.000000e+00> : vector<32x32xf32>
    %355 = tpu.matmul %352, %354, %cst_143 {dimension_numbers = #tpu.dot_dimension_numbers<[1], [0], [0], [1], [0, 0, 1, 1], [], []>} : vector<32x64xf32>, vector<64x32xf32>, vector<32x32xf32> -> vector<32x32xf32>
    %c1_144 = arith.constant 1 : index
    %c0_145 = arith.constant 0 : index
    %c0_146 = arith.constant 0 : index
    %356 = vector.load %arg11[%c1_144, %c0_145, %c0_146] : memref<2x1x32xf32, #tpu.memory_space<vmem>>, vector<1x1x32xf32>
    %357 = vector.shape_cast %356 : vector<1x1x32xf32> to vector<1x32xf32>
    %358 = vector.broadcast %357 : vector<1x32xf32> to vector<32x32xf32>
    %359 = arith.addf %355, %358 : vector<32x32xf32>
    %360 = arith.addf %332, %359 : vector<32x32xf32>
    %c1_147 = arith.constant 1 : index
    %c0_148 = arith.constant 0 : index
    %c0_149 = arith.constant 0 : index
    %361 = vector.load %arg12[%c1_147, %c0_148, %c0_149] : memref<2x1x32xf32, #tpu.memory_space<vmem>>, vector<1x1x32xf32>
    %362 = vector.shape_cast %361 : vector<1x1x32xf32> to vector<1x32xf32>
    %c1_150 = arith.constant 1 : index
    %c0_151 = arith.constant 0 : index
    %c0_152 = arith.constant 0 : index
    %363 = vector.load %arg13[%c1_150, %c0_151, %c0_152] : memref<2x1x32xf32, #tpu.memory_space<vmem>>, vector<1x1x32xf32>
    %364 = vector.shape_cast %363 : vector<1x1x32xf32> to vector<1x32xf32>
    %cst_153 = arith.constant dense<0.000000e+00> : vector<32xf32>
    %365 = vector.multi_reduction <add>, %360, %cst_153 [1] : vector<32x32xf32> to vector<32xf32>
    %366 = vector.shape_cast %365 : vector<32xf32> to vector<32x1xf32>
    %cst_154 = arith.constant 3.200000e+01 : f32
    %367 = vector.broadcast %cst_154 : f32 to vector<32x1xf32>
    %368 = arith.divf %366, %367 : vector<32x1xf32>
    %369 = vector.broadcast %368 : vector<32x1xf32> to vector<32x32xf32>
    %370 = arith.subf %360, %369 : vector<32x32xf32>
    %371 = arith.mulf %370, %370 : vector<32x32xf32>
    %cst_155 = arith.constant dense<0.000000e+00> : vector<32xf32>
    %372 = vector.multi_reduction <add>, %371, %cst_155 [1] : vector<32x32xf32> to vector<32xf32>
    %373 = vector.shape_cast %372 : vector<32xf32> to vector<32x1xf32>
    %cst_156 = arith.constant 3.200000e+01 : f32
    %374 = vector.broadcast %cst_156 : f32 to vector<32x1xf32>
    %375 = arith.divf %373, %374 : vector<32x1xf32>
    %376 = vector.broadcast %368 : vector<32x1xf32> to vector<32x32xf32>
    %377 = arith.subf %360, %376 : vector<32x32xf32>
    %cst_157 = arith.constant 9.99999997E-7 : f32
    %378 = vector.broadcast %cst_157 : f32 to vector<32x1xf32>
    %379 = arith.addf %375, %378 : vector<32x1xf32>
    %380 = math.rsqrt %379 : vector<32x1xf32>
    %381 = vector.broadcast %380 : vector<32x1xf32> to vector<32x32xf32>
    %382 = arith.mulf %377, %381 : vector<32x32xf32>
    %383 = vector.broadcast %362 : vector<1x32xf32> to vector<32x32xf32>
    %384 = arith.mulf %382, %383 : vector<32x32xf32>
    %385 = vector.broadcast %364 : vector<1x32xf32> to vector<32x32xf32>
    %386 = arith.addf %384, %385 : vector<32x32xf32>
    %387 = vector.shape_cast %386 : vector<32x32xf32> to vector<4x8x32xf32>
    %388 = vector.extract_strided_slice %387 {offsets = [0, 0, 0], sizes = [4, 1, 32], strides = [1, 1, 1]} : vector<4x8x32xf32> to vector<4x1x32xf32>
    %389 = vector.shape_cast %388 : vector<4x1x32xf32> to vector<4x32xf32>
    %c0_158 = arith.constant 0 : index
    %c0_159 = arith.constant 0 : index
    %390 = vector.load %arg17[%c0_158, %c0_159] : memref<4x32xf32, #tpu.memory_space<vmem>>, vector<4x32xf32>
    tpu.vector_store %arg17[%c0_158, %c0_159], %389 {strides = array<i32>} : memref<4x32xf32, #tpu.memory_space<vmem>>, vector<4x32xf32>,
    %391 = vector.extract_strided_slice %389 {offsets = [0, 0], sizes = [2, 32], strides = [1, 1]} : vector<4x32xf32> to vector<2x32xf32>
    %392 = vector.extract_strided_slice %389 {offsets = [2, 0], sizes = [2, 32], strides = [1, 1]} : vector<4x32xf32> to vector<2x32xf32>
    %393 = arith.subf %391, %392 : vector<2x32xf32>
    %394 = arith.mulf %393, %393 : vector<2x32xf32>
    %c0_160 = arith.constant 0 : index
    %c0_161 = arith.constant 0 : index
    %395 = vector.load %arg14[%c0_160, %c0_161] : memref<1x32xf32, #tpu.memory_space<vmem>>, vector<1x32xf32>
    %396 = vector.broadcast %395 : vector<1x32xf32> to vector<2x32xf32>
    %397 = arith.mulf %394, %396 : vector<2x32xf32>
    %cst_162 = arith.constant dense<0.000000e+00> : vector<2xf32>
    %398 = vector.multi_reduction <add>, %397, %cst_162 [1] : vector<2x32xf32> to vector<2xf32>
    %399 = vector.shape_cast %398 : vector<2xf32> to vector<2x1xf32>
    %c0_163 = arith.constant 0 : index
    %c0_164 = arith.constant 0 : index
    %400 = vector.load %arg15[%c0_163, %c0_164] : memref<1x1xf32, #tpu.memory_space<vmem>>, vector<1x1xf32>
    %401 = vector.broadcast %400 : vector<1x1xf32> to vector<2x1xf32>
    %402 = arith.addf %399, %401 : vector<2x1xf32>
    %c0_165 = arith.constant 0 : index
    %c0_166 = arith.constant 0 : index
    %403 = vector.load %arg16[%c0_165, %c0_166] : memref<2x1xf32, #tpu.memory_space<vmem>>, vector<2x1xf32>
    tpu.vector_store %arg16[%c0_165, %c0_166], %402 {strides = array<i32>} : memref<2x1xf32, #tpu.memory_space<vmem>>, vector<2x1xf32>,
    return
  }
}

</mosaic_0001>

<bundles_post_ra>
// kernel: tpu_custom_call.1
= control target key start
LH: loop header
LB: loop body
LE: loop exit
PB: predicated region body
PF: predicated region fallthrough
CT: control target
= control target key end

     0   :  { %s9746_s0 = inlined_call_operand.hbm [shape: f32[4,8,32], index: 0, kind: input, shape index: {}]   ;;  %s9747_s1 = inlined_call_operand.vmem [shape: f32[4,8], index: 1, kind: input, shape index: {}]   ;;  %s9748_s2 = inlined_call_operand.vmem [shape: f32[2,32,96], index: 2, kind: input, shape index: {}]   ;;  %s9749_s3 = inlined_call_operand.vmem [shape: f32[2,1,96], index: 3, kind: input, shape index: {}]   ;;  %s9750_s4 = inlined_call_operand.vmem [shape: f32[2,32,32], index: 4, kind: input, shape index: {}]   ;;  %s9751_s5 = inlined_call_operand.vmem [shape: f32[2,1,32], index: 5, kind: input, shape index: {}]   ;;  %s9752_s6 = inlined_call_operand.vmem [shape: f32[2,1,32], index: 6, kind: input, shape index: {}]   ;;  %s9753_s7 = inlined_call_operand.vmem [shape: f32[2,1,32], index: 7, kind: input, shape index: {}]   ;;  %s9754_s8 = inlined_call_operand.vmem [shape: f32[2,32,64], index: 8, kind: input, shape index: {}]   ;;  %s9755_s9 = inlined_call_operand.vmem [shape: f32[2,1,64], index: 9, kind: input, shape index: {}]   ;;  %s9756_s10 = inlined_call_operand.vmem [shape: f32[2,64,32], index: 10, kind: input, shape index: {}]   ;;  %s9757_s11 = inlined_call_operand.vmem [shape: f32[2,1,32], index: 11, kind: input, shape index: {}]   ;;  %s9758_s12 = inlined_call_operand.vmem [shape: f32[2,1,32], index: 12, kind: input, shape index: {}]   ;;  %s9759_s13 = inlined_call_operand.vmem [shape: f32[2,1,32], index: 13, kind: input, shape index: {}]   ;;  %s9760_s14 = inlined_call_operand.vmem [shape: f32[1,32], index: 14, kind: input, shape index: {}]   ;;  %s9761_s15 = inlined_call_operand.<no memory space> [shape: f32[1,1], index: 15, kind: input, shape index: {}]   ;;  %s9762_s16 = inlined_call_operand.vmem [shape: f32[2,1], index: 16, kind: output, shape index: {0}]   ;;  %s9763_s17 = inlined_call_operand.hbm [shape: f32[4,32], index: 17, kind: output, shape index: {1}]  }
   0x1   :  { %9771 = sst [smem:[#allocation9_spill]] %s9746_s0  ;;  %v23_v0 = vstv %s9761_s15 }
   0x2   :  { %9772 = sst [smem:[#allocation10_spill]] %s9747_s1  ;;  %24 = vst [vmem:[#allocation2] sm:$0x1] %v23_v0 }
   0x3   :  { %25 = vsyncpa [#allocation4], 0 }
   0x4   :  { %26 = vsyncpa [#allocation5], 0  ;;  %s8648_s26 = smov [#allocation3]   ;;  %s9773_s0 = sld [smem:[#allocation9_spill]] }
   0x5   :  { %s32_s27 = sshll.u32 %s8648_s26, 4  ;;  %s33_s27 = int_to_ptr.vmem [resolvable:$true] %s32_s27 }
   0xa   :  { %s8600_s30 = scalar_lea.hbm %s9773_s0, 512 }
   0xb   :  { %p8601_p0 = scmp.ne.s32.totalorder %s9773_s0, %s8600_s30  ;;  %p8604_p1 = scmp.lt.u32.totalorder %s8600_s30, %s9773_s0 }
   0xd   :  { %p8606_p2 = pnand %p8604_p1, %p8601_p0 }
   0xf   :  { %8609 = shalt.err (!%p8606_p2)
}
  0x10   :  { %s8610_s15 = scalar_lea.vmem %s33_s27, 512  ;;  %p8615_p4 = scmp.lt.s32.totalorder %s33_s27, %s33_s27 }
  0x11   :  { %p8611_p3 = scmp.ne.s32.totalorder %s33_s27, %s8610_s15  ;;  %p8616_p5 = scmp.lt.s32.totalorder %s8610_s15, %s8610_s15 }
  0x13   :  { %p8617_p6 = por %p8616_p5, %p8615_p4 }
  0x15   :  { %p8618_p7 = pnand %p8617_p6, %p8611_p3 }
  0x17   :  { %8621 = shalt.err (!%p8618_p7)
}
  0x18   :  { %s8649_s21 = smov 128   ;;  %s8650_s22 = smov 8  }
  0x19   :  { %38 = dma.hbm_to_vmem [thread:$0]  %s9773_s0, 512, %s33_s27, [#allocation4], %s8649_s21, %s8649_s21, %s8650_s22  }
  0x1a   :  { %8644 = dma.done.wait [#allocation4], 512  }
  0x1b   :  { %8645 = vsyncadd [#allocation4], 4294966784  ;;  %vm88_vm0 = vcmask 261120   ;;  %v77_v1 = vld [vmem:[%s9748_s2] sm:$0xff]  ;;  %v78_v2 = vld [vmem:[%s9748_s2 + $0x8] sm:$0xff]  ;;  %v8651_v11 = vmov 0.0   ;;  %v515_v27 = vlaneseq }
  0x1c   :  { %v79_v3 = vld [vmem:[%s9748_s2 + $0x10] sm:$0xff]  ;;  %v8310_v4 = vpack.c.bf16 %v78_v2, %v77_v1  ;;  %v80_v5 = vld [vmem:[%s9748_s2 + $0x18] sm:$0xff]  ;;  %v72_v6 = vld [vmem:[#allocation3] sm:$0xff]  ;;  %vm8652_vm1 = vmmov 0   ;;  %s8653_s20 = smov 96   ;;  %vm193_vm2 = vcmask 64512  }
  0x1d   :  { %v74_v7 = vld [vmem:[#allocation3 + $0x10] sm:$0xff]  ;;  %v8314_v8 = vpack.c.bf16 %v80_v5, %v79_v3  ;;  %7834 = vmatprep.mubr.msk.f32.mxu0 %vm88_vm0, %v72_v6  ;;  %v73_v9 = vld [vmem:[#allocation3 + $0x8] sm:$0xff]  ;;  %v75_v10 = vld [vmem:[#allocation3 + $0x18] sm:$0xff]  ;;  %v8654_v25 = vmov 1966171168   ;;  %v516_v29 = vshrl.u32 %v515_v27, 7 }
  0x1e   :  { %7837 = vmatprep.mubr.msk.f32.mxu1 %vm88_vm0, %v74_v7  ;;  %8311 = vmatprep.subr.bf16.mxu0 %v8310_v4  ;;  %v7403_v12 = vld [vmem:[%s9749_s3] ss:$0 sm:$0xff]  ;;  %v513_v26 = vunpack.c.l.s4 %v8654_v25  ;;  %s9774_s22 = sld [smem:[#allocation10_spill]]  ;;  %s8655_s23 = smov 64   ;;  %vm3549_vm3 = vcmask 523264   ;;  %vm7341_vm4 = vcmask 1041409  }
  0x1f   :  { %8374 = vmatprep.subr.bf16.mxu1 %v8310_v4  ;;  %8313 = vmatpush3.bf16.msra.mxu0 %v8310_v4  ;;  %v530_v32 = vsub.s32 0, %v516_v29  ;;  %s8656_s24 = smov 88   ;;  %s8657_s25 = smov 120   ;;  %vm7344_vm5 = vcmask 1042434   ;;  %vm7347_vm6 = vcmask 1043459   ;;  %vm7350_vm7 = vcmask 257024  }
  0x20   :  { %8376 = vmatpush3.bf16.msra.mxu1 %v8310_v4  ;;  %8315 = vmatprep.subr.bf16.mxu0 %v8314_v8  ;;  %v514_v28 = vunpack.c.0.s8 %v513_v26  ;;  %s8658_s26 = smov 56   ;;  %s8659_s28 = smov 80   ;;  %vm7370_vm8 = vcmask 254976  }
  0x21   :  { %8375 = vmatprep.subr.bf16.mxu1 %v8314_v8  ;;  %s8660_s29 = smov 112   ;;  %s8661_s30 = smov 48  }
  0x22   :  { %v517_v30 = vsub.s32 %v514_v28, %v516_v29  ;;  %s9769_s0 = smov 104   ;;  %s9767_s15 = smov 72  }
  0x23   :  { %8317 = vmatpush3.bf16.msra.mxu0 %v8314_v8  ;;  %s9765_s18 = smov 40  }
  0x24   :  { %8377 = vmatpush3.bf16.msra.mxu1 %v8314_v8  ;;  %7855 = vmatprep.subr.mxu0 %v8651_v11  ;;  %v7416_v31 = vld.sshfl [vmem:[%s9774_s22] sm:$0x33 pattern:$0x75316420] }
  0x25   :  { %7840 = vmatprep.subr.mxu1 %v8651_v11  ;;  %v518_v33 = vrot.slane %v7416_v31, %v517_v30  ;;  %v511_v37 = vcombine.high %v7416_v31, %v7416_v31 }
  0x26   :  { %7835 = vmatmul.mubr.msk.f32.vlgmr.msra.gmra.mrb[0].mxu0 %vm88_vm0, %v73_v9 }
  0x27   :  { %7838 = vmatmul.mubr.msk.f32.vlgmr.msra.gmra.mrb[0].mxu1 %vm88_vm0, %v75_v10  ;;  %7857 = vmatprep.mubr.msk.f32.mxu0 %vm8652_vm1, %v8651_v11  ;;  %v8839_v34 = vrot.slane %v518_v33, %v530_v32  ;;  %v526_v35 = vcombine.high %v518_v33, %v518_v33  ;;  %v525_v38 = vrot.slane %v511_v37, %v517_v30 }
  0x28   :  { %7842 = vmatprep.mubr.msk.f32.mxu1 %vm8652_vm1, %v8651_v11 }
  0x29   :  { %v8841_v36 = vrot.slane %v526_v35, %v530_v32  ;;  %v527_v39 = vcombine.high %v525_v38, %v525_v38  ;;  %v8846_v47 = vrot.slane %v525_v38, %v530_v32 }
  0x2b   :  { %v8843_v40 = vrot.slane %v527_v39, %v530_v32 }
  0xf9   :  { %v7836_v13 = vpop.f32.mrb[0].mxu0 }
  0xfa   :  { %v7839_v14 = vpop.f32.mrb[0].mxu1  ;;  %v167_v16 = vpop.f32.mrb[1].mxu0  ;;  %v8806_v20 = vadd.f32 %v7836_v13, %v7403_v12 }
  0xfb   :  { %v8796_v15 = vadd.f32 %v7839_v14, %v7403_v12  ;;  %v177_v17 = vpop.f32.mrb[1].mxu1  ;;  %v8798_v18 = vadd.f32 %v7403_v12, %v167_v16 }
  0xfc   :  { %v8804_v19 = vadd.f32 %v7403_v12, %v177_v17 }
  0xfd   :  { %423 = vrot.lane.b32.xlu1 %v8796_v15, %s8653_s20  ;;  %191 = vrot.lane.b32.xlu0 %v8798_v18, %s8653_s20 }
 0x101   :  { %346 = vrot.lane.b32.xlu1 %v8804_v19, %s8653_s20  ;;  %269 = vrot.lane.b32.xlu0 %v8806_v20, %s8653_s20 }
 0x16f   :  { %v424_v21 = vpop.permute.xlu1 %423  ;;  %v192_v22 = vpop.permute.xlu0 %191 }
 0x170   :  { %7856 = vmatpush3.xpose.msk.msra.mxu0 %vm193_vm2, %v424_v21  ;;  %7841 = vmatpush3.xpose.msk.msra.mxu1 %vm193_vm2, %v192_v22 }
 0x171   :  { %7865 = vmatprep.subr.mxu0 %v8651_v11  ;;  %7845 = vmatprep.subr.mxu1 %v8651_v11 }
 0x173   :  { %7858 = vmatmul.mubr.msk.f32.vlgmr.msra.gmra.mrb[2].mxu0 %vm193_vm2, %v8796_v15  ;;  %7843 = vmatmul.mubr.msk.f32.vlgmr.msra.gmra.mrb[2].mxu1 %vm193_vm2, %v8798_v18  ;;  %v270_v23 = vpop.permute.xlu0 %269  ;;  %v347_v24 = vpop.permute.xlu1 %346 }
 0x174   :  { %7867 = vmatprep.mubr.msk.f32.mxu0 %vm8652_vm1, %v8651_v11  ;;  %7846 = vmatpush3.xpose.msk.msra.mxu1 %vm193_vm2, %v270_v23 }
 0x175   :  { %7847 = vmatprep.mubr.msk.f32.mxu1 %vm8652_vm1, %v8651_v11  ;;  %7850 = vmatprep.subr.mxu1 %v8651_v11 }
 0x177   :  { %7848 = vmatmul.mubr.msk.f32.vlgmr.msra.gmra.mrb[4].mxu1 %vm193_vm2, %v8806_v20 }
 0x178   :  { %7851 = vmatpush3.xpose.msk.msra.mxu1 %vm193_vm2, %v347_v24  ;;  %7852 = vmatprep.mubr.msk.f32.mxu1 %vm8652_vm1, %v8651_v11 }
 0x179   :  { %7860 = vmatprep.subr.mxu1 %v8651_v11 }
 0x17b   :  { %7853 = vmatmul.mubr.msk.f32.vlgmr.msra.gmra.mrb[6].mxu1 %vm193_vm2, %v8804_v19 }
 0x17c   :  { %7862 = vmatprep.mubr.msk.f32.mxu1 %vm8652_vm1, %v8651_v11 }
 0x246   :  { %v495_v41 = vpop.f32.mrb[2].mxu0  ;;  %v264_v43 = vpop.f32.mrb[2].mxu1 }
 0x247   :  { %v502_v42 = vmul.f32 0.35355338, %v495_v41  ;;  %v7859_v44 = vpop.f32.mrb[3].mxu0  ;;  %v7844_v45 = vpop.f32.mrb[3].mxu1  ;;  %v499_v12 = vmul.f32 0.35355338, %v264_v43 }
 0x249   :  { %v551_v46 = vadd.f32 %v8843_v40, %v502_v42  ;;  %v548_v13 = vadd.f32 %v8839_v34, %v499_v12 }
 0x24a   :  { %v341_v48 = vpop.f32.mrb[4].mxu1 }
 0x24b   :  { %v561_v49 = vsel %vm193_vm2, %v551_v46, -inf  ;;  %v500_v50 = vmul.f32 0.35355338, %v341_v48  ;;  %v7849_v51 = vpop.f32.mrb[5].mxu1  ;;  %v552_v14 = vsel %vm193_vm2, %v548_v13, -inf }
 0x24c   :  { %562 = vmax.xlane.f32.xlu1 %v561_v49 }
 0x24d   :  { %v549_v52 = vadd.f32 %v8846_v47, %v500_v50 }
 0x24e   :  { %v418_v53 = vpop.f32.mrb[6].mxu1 }
 0x24f   :  { %v7854_v54 = vpop.f32.mrb[7].mxu1  ;;  %v555_v55 = vsel %vm193_vm2, %v549_v52, -inf  ;;  %v501_v56 = vmul.f32 0.35355338, %v418_v53 }
 0x250   :  { %556 = vmax.xlane.f32.xlu0 %v555_v55 }
 0x251   :  { %v8860_v57 = vadd.f32 %v8841_v36, %v501_v56 }
 0x253   :  { %v558_v58 = vsel %vm193_vm2, %v8860_v57, -inf }
 0x25d   :  { %672 = vrot.lane.b32.xlu1 %v8806_v20, %s8655_s23 }
 0x261   :  { %980 = vrot.lane.b32.xlu1 %v8806_v20, %s8656_s24 }
 0x265   :  { %978 = vrot.lane.b32.xlu1 %v8806_v20, %s8657_s25 }
 0x269   :  { %1134 = vrot.lane.b32.xlu1 %v8796_v15, %s8657_s25 }
 0x28d   :  { %559 = vmax.xlane.f32.xlu1 %v558_v58 }
 0x29e   :  { %596 = vrot.lane.b32.xlu1 %v8798_v18, %s8655_s23 }
 0x2a2   :  { %902 = vrot.lane.b32.xlu1 %v8798_v18, %s8656_s24 }
 0x2a6   :  { %900 = vrot.lane.b32.xlu1 %v8798_v18, %s8657_s25 }
 0x2aa   :  { %1056 = vrot.lane.b32.xlu1 %v8804_v19, %s8657_s25 }
 0x2d9   :  { %v563_v59 = vpop.xlane.xlu1 %562 }
 0x2da   :  { %v567_v60 = vsub.f32 %v551_v46, %v563_v59 }
 0x2dc   :  { %v574_v61 = vmul.f32 1.442695, %v567_v60 }
 0x2dd   :  { %v673_v62 = vpop.permute.xlu1 %672  ;;  %v557_v63 = vpop.xlane.xlu0 %556 }
 0x2de   :  { %8420 = vpow2.f32 %v574_v61  ;;  %7866 = vmatpush3.msra.mxu0 %v673_v62  ;;  %v565_v0 = vsub.f32 %v549_v52, %v557_v63 }
 0x2df   :  { %7875 = vmatprep.subr.mxu0 %v8651_v11 }
 0x2e0   :  { %v570_v1 = vmul.f32 1.442695, %v565_v0 }
 0x2e1   :  { %v981_v6 = vpop.permute.xlu1 %980 }
 0x2e2   :  { %8422 = vpow2.f32 %v570_v1 }
 0x2e5   :  { %v979_v7 = vpop.permute.xlu1 %978 }
 0x2e8   :  { %v8421_v2 = vpop.eup %8420 }
 0x2e9   :  { %v585_v3 = vsel %vm193_vm2, %v8421_v2, 0.0  ;;  %v1135_v8 = vpop.permute.xlu1 %1134 }
 0x2ea   :  { %586 = vadd.xlane.f32.xlu0 %v585_v3 }
 0x2ec   :  { %v8423_v4 = vpop.eup %8422 }
 0x2ed   :  { %v579_v5 = vsel %vm193_vm2, %v8423_v4, 0.0 }
 0x2ee   :  { %580 = vadd.xlane.f32.xlu0 %v579_v5 }
 0x304   :  { %824 = vrot.lane.b32.xlu0 %v8796_v15, %s8655_s23 }
 0x308   :  { %1136 = vrot.lane.b32.xlu0 %v8796_v15, %s8656_s24 }
 0x31a   :  { %v560_v9 = vpop.xlane.xlu1 %559 }
 0x31b   :  { %v566_v27 = vsub.f32 %v8860_v57, %v560_v9 }
 0x31d   :  { %v572_v30 = vmul.f32 1.442695, %v566_v27 }
 0x31e   :  { %v597_v10 = vpop.permute.xlu1 %596 }
 0x31f   :  { %7861 = vmatpush3.msra.mxu1 %v597_v10 }
 0x320   :  { %7870 = vmatprep.subr.mxu1 %v8651_v11 }
 0x322   :  { %v903_v50 = vpop.permute.xlu1 %902 }
 0x326   :  { %v901_v53 = vpop.permute.xlu1 %900 }
 0x327   :  { %553 = vmax.xlane.f32.xlu0 %v552_v14 }
 0x32a   :  { %v1057_v62 = vpop.permute.xlu1 %1056 }
 0x377   :  { %v587_v16 = vpop.xlane.xlu0 %586 }
 0x37b   :  { %v581_v17 = vpop.xlane.xlu0 %580 }
 0x37c   :  { %8424 = vrcp.f32 %v581_v17 }
 0x37d   :  { %8426 = vrcp.f32 %v587_v16 }
 0x37f   :  { %v825_v24 = vpop.permute.xlu0 %824 }
 0x383   :  { %v1137_v26 = vpop.permute.xlu0 %1136 }
 0x386   :  { %v8425_v21 = vpop.eup %8424 }
 0x387   :  { %v593_v22 = vmul.f32 %v8425_v21, %v8423_v4  ;;  %v8427_v23 = vpop.eup %8426 }
 0x388   :  { %v595_v25 = vmul.f32 %v8427_v23, %v8421_v2 }
 0x389   :  { %7868 = vmatmul.mubr.msk.f32.vlgmr.msra.gmra.mrb[4].mxu0 %vm193_vm2, %v593_v22 }
 0x38a   :  { %7876 = vmatpush3.msra.mxu0 %v825_v24  ;;  %7877 = vmatprep.mubr.msk.f32.mxu0 %vm8652_vm1, %v8651_v11 }
 0x38b   :  { %7885 = vmatprep.subr.mxu0 %v8651_v11 }
 0x38d   :  { %7878 = vmatmul.mubr.msk.f32.vlgmr.msra.gmra.mrb[6].mxu0 %vm193_vm2, %v595_v25 }
 0x38e   :  { %7887 = vmatprep.mubr.msk.f32.mxu0 %vm8652_vm1, %v8651_v11 }
 0x391   :  { %7886 = vmatpush3.xpose.msk.msra.mxu0 %vm193_vm2, %v981_v6 }
 0x392   :  { %7895 = vmatprep.subr.mxu0 %v8651_v11 }
 0x394   :  { %7888 = vmatmul.mubr.msk.f32.vlgmr.msra.gmra.mrb[8].mxu0 %vm193_vm2, %v979_v7 }
 0x395   :  { %7896 = vmatpush3.xpose.msk.msra.mxu0 %vm193_vm2, %v1137_v26  ;;  %7897 = vmatprep.mubr.msk.f32.mxu0 %vm8652_vm1, %v8651_v11 }
 0x396   :  { %7905 = vmatprep.subr.mxu0 %v8651_v11 }
 0x398   :  { %7898 = vmatmul.mubr.msk.f32.vlgmr.msra.gmra.mrb[10].mxu0 %vm193_vm2, %v1135_v8 }
 0x399   :  { %7907 = vmatprep.mubr.msk.f32.mxu0 %vm8652_vm1, %v8651_v11 }
 0x3b4   :  { %v554_v28 = vpop.xlane.xlu0 %553 }
 0x3b5   :  { %v564_v29 = vsub.f32 %v548_v13, %v554_v28 }
 0x3b7   :  { %v568_v31 = vmul.f32 1.442695, %v564_v29 }
 0x3b9   :  { %8428 = vpow2.f32 %v568_v31 }
 0x3ba   :  { %8430 = vpow2.f32 %v572_v30 }
 0x3c3   :  { %v8429_v32 = vpop.eup %8428 }
 0x3c4   :  { %v576_v33 = vsel %vm193_vm2, %v8429_v32, 0.0  ;;  %v8431_v35 = vpop.eup %8430 }
 0x3c5   :  { %577 = vadd.xlane.f32.xlu0 %v576_v33  ;;  %v582_v37 = vsel %vm193_vm2, %v8431_v35, 0.0 }
 0x3c9   :  { %583 = vadd.xlane.f32.xlu0 %v582_v37 }
 0x3df   :  { %748 = vrot.lane.b32.xlu0 %v8804_v19, %s8655_s23 }
 0x3e3   :  { %1058 = vrot.lane.b32.xlu0 %v8804_v19, %s8656_s24 }
 0x452   :  { %v578_v38 = vpop.xlane.xlu0 %577 }
 0x453   :  { %8432 = vrcp.f32 %v578_v38 }
 0x456   :  { %v584_v39 = vpop.xlane.xlu0 %583 }
 0x457   :  { %8434 = vrcp.f32 %v584_v39 }
 0x45a   :  { %v749_v45 = vpop.permute.xlu0 %748 }
 0x45c   :  { %v8906_v41 = vpop.f32.mrb[4].mxu0 }
 0x45d   :  { %v8433_v42 = vpop.eup %8432  ;;  %v7869_v43 = vpop.f32.mrb[5].mxu0 }
 0x45e   :  { %v592_v44 = vmul.f32 %v8433_v42, %v8429_v32  ;;  %v1059_v57 = vpop.permute.xlu0 %1058 }
 0x460   :  { %7863 = vmatmul.mubr.msk.f32.vlgmr.msra.gmra.mrb[8].mxu1 %vm193_vm2, %v592_v44  ;;  %v8909_v46 = vpop.f32.mrb[6].mxu0 }
 0x461   :  { %v8435_v48 = vpop.eup %8434  ;;  %7871 = vmatpush3.msra.mxu1 %v749_v45  ;;  %v7879_v49 = vpop.f32.mrb[7].mxu0  ;;  %7872 = vmatprep.mubr.msk.f32.mxu1 %vm8652_vm1, %v8651_v11 }
 0x462   :  { %v594_v51 = vmul.f32 %v8435_v48, %v8431_v35  ;;  %7880 = vmatprep.subr.mxu1 %v8651_v11 }
 0x464   :  { %7873 = vmatmul.mubr.msk.f32.vlgmr.msra.gmra.mrb[10].mxu1 %vm193_vm2, %v594_v51 }
 0x465   :  { %7882 = vmatprep.mubr.msk.f32.mxu1 %vm8652_vm1, %v8651_v11 }
 0x467   :  { %v1052_v52 = vpop.f32.mrb[8].mxu0 }
 0x468   :  { %v1213_v54 = vmul.f32 0.35355338, %v1052_v52  ;;  %7881 = vmatpush3.xpose.msk.msra.mxu1 %vm193_vm2, %v903_v50  ;;  %v7889_v55 = vpop.f32.mrb[9].mxu0 }
 0x469   :  { %7890 = vmatprep.subr.mxu1 %v8651_v11 }
 0x46a   :  { %v1217_v56 = vadd.f32 %v1213_v54, %v8846_v47 }
 0x46b   :  { %7883 = vmatmul.mubr.msk.f32.vlgmr.msra.gmra.mrb[12].mxu1 %vm193_vm2, %v901_v53  ;;  %v1208_v58 = vpop.f32.mrb[10].mxu0 }
 0x46c   :  { %v1215_v59 = vmul.f32 0.35355338, %v1208_v58  ;;  %7891 = vmatpush3.xpose.msk.msra.mxu1 %vm193_vm2, %v1059_v57  ;;  %v7899_v60 = vpop.f32.mrb[11].mxu0  ;;  %v1223_v61 = vsel %vm193_vm2, %v1217_v56, -inf  ;;  %7892 = vmatprep.mubr.msk.f32.mxu1 %vm8652_vm1, %v8651_v11 }
 0x46d   :  { %1224 = vmax.xlane.f32.xlu0 %v1223_v61  ;;  %7900 = vmatprep.subr.mxu1 %v8651_v11 }
 0x46e   :  { %v1219_v63 = vadd.f32 %v1215_v59, %v8843_v40 }
 0x46f   :  { %7893 = vmatmul.mubr.msk.f32.vlgmr.msra.gmra.mrb[14].mxu1 %vm193_vm2, %v1057_v62 }
 0x470   :  { %v1229_v0 = vsel %vm193_vm2, %v1219_v63, -inf  ;;  %7902 = vmatprep.mubr.msk.f32.mxu1 %vm8652_vm1, %v8651_v11 }
 0x471   :  { %1230 = vmax.xlane.f32.xlu1 %v1229_v0 }
 0x482   :  { %1340 = vrot.lane.b32.xlu1 %v8806_v20, %s8658_s26 }
 0x486   :  { %1764 = vrot.lane.b32.xlu1 %v8798_v18, %s8659_s28 }
 0x48a   :  { %1762 = vrot.lane.b32.xlu1 %v8798_v18, %s8660_s29 }
 0x48e   :  { %1840 = vrot.lane.b32.xlu1 %v8806_v20, %s8660_s29 }
 0x492   :  { %1918 = vrot.lane.b32.xlu1 %v8804_v19, %s8660_s29 }
 0x496   :  { %1996 = vrot.lane.b32.xlu1 %v8796_v15, %s8660_s29 }
 0x4fa   :  { %v1225_v1 = vpop.xlane.xlu0 %1224 }
 0x4fb   :  { %v1233_v2 = vsub.f32 %v1217_v56, %v1225_v1 }
 0x4fd   :  { %v1238_v3 = vmul.f32 1.442695, %v1233_v2 }
 0x4fe   :  { %v1231_v4 = vpop.xlane.xlu1 %1230 }
 0x4ff   :  { %8436 = vpow2.f32 %v1238_v3  ;;  %v1235_v5 = vsub.f32 %v1219_v63, %v1231_v4 }
 0x501   :  { %v1242_v6 = vmul.f32 1.442695, %v1235_v5 }
 0x502   :  { %v1341_v7 = vpop.permute.xlu1 %1340 }
 0x503   :  { %8438 = vpow2.f32 %v1242_v6  ;;  %7906 = vmatpush3.msra.mxu0 %v1341_v7 }
 0x504   :  { %7915 = vmatprep.subr.mxu0 %v8651_v11 }
 0x506   :  { %v1765_v35 = vpop.permute.xlu1 %1764 }
 0x509   :  { %v8437_v8 = vpop.eup %8436 }
 0x50a   :  { %v1247_v9 = vsel %vm193_vm2, %v8437_v8, 0.0  ;;  %v1763_v43 = vpop.permute.xlu1 %1762 }
 0x50b   :  { %1248 = vadd.xlane.f32.xlu0 %v1247_v9 }
 0x50d   :  { %v8439_v10 = vpop.eup %8438 }
 0x50e   :  { %v1253_v12 = vsel %vm193_vm2, %v8439_v10, 0.0  ;;  %v1841_v45 = vpop.permute.xlu1 %1840 }
 0x50f   :  { %1254 = vadd.xlane.f32.xlu0 %v1253_v12 }
 0x512   :  { %v1919_v49 = vpop.permute.xlu1 %1918 }
 0x516   :  { %v1997_v51 = vpop.permute.xlu1 %1996 }
 0x525   :  { %1492 = vrot.lane.b32.xlu0 %v8796_v15, %s8658_s26 }
 0x529   :  { %1842 = vrot.lane.b32.xlu0 %v8806_v20, %s8659_s28 }
 0x52d   :  { %1920 = vrot.lane.b32.xlu0 %v8804_v19, %s8659_s28 }
 0x531   :  { %1998 = vrot.lane.b32.xlu0 %v8796_v15, %s8659_s28 }
 0x533   :  { %v8954_v13 = vpop.f32.mrb[8].mxu1 }
 0x534   :  { %v7864_v14 = vpop.f32.mrb[9].mxu1 }
 0x537   :  { %v8956_v16 = vpop.f32.mrb[10].mxu1 }
 0x538   :  { %v7874_v17 = vpop.f32.mrb[11].mxu1 }
 0x53e   :  { %v974_v21 = vpop.f32.mrb[12].mxu1 }
 0x53f   :  { %v7884_v22 = vpop.f32.mrb[13].mxu1  ;;  %v1212_v27 = vmul.f32 0.35355338, %v974_v21 }
 0x541   :  { %v1216_v29 = vadd.f32 %v1212_v27, %v8839_v34 }
 0x542   :  { %v1130_v23 = vpop.f32.mrb[14].mxu1 }
 0x543   :  { %v1214_v24 = vmul.f32 0.35355338, %v1130_v23  ;;  %v7894_v25 = vpop.f32.mrb[15].mxu1  ;;  %v1220_v30 = vsel %vm193_vm2, %v1216_v29, -inf }
 0x545   :  { %v1218_v26 = vadd.f32 %v1214_v24, %v8841_v36 }
 0x547   :  { %v1226_v28 = vsel %vm193_vm2, %v1218_v26, -inf }
 0x548   :  { %1227 = vmax.xlane.f32.xlu1 %v1226_v28 }
 0x550   :  { %1221 = vmax.xlane.f32.xlu0 %v1220_v30 }
 0x559   :  { %1264 = vrot.lane.b32.xlu1 %v8798_v18, %s8658_s26 }
 0x598   :  { %v1249_v31 = vpop.xlane.xlu0 %1248 }
 0x599   :  { %8440 = vrcp.f32 %v1249_v31 }
 0x59c   :  { %v1255_v32 = vpop.xlane.xlu0 %1254 }
 0x59d   :  { %8442 = vrcp.f32 %v1255_v32 }
 0x5a0   :  { %v1493_v38 = vpop.permute.xlu0 %1492 }
 0x5a3   :  { %v8441_v33 = vpop.eup %8440 }
 0x5a4   :  { %v1261_v37 = vmul.f32 %v8441_v33, %v8437_v8  ;;  %v1843_v44 = vpop.permute.xlu0 %1842 }
 0x5a6   :  { %7908 = vmatmul.mubr.msk.f32.vlgmr.msra.gmra.mrb[12].mxu0 %vm193_vm2, %v1261_v37 }
 0x5a7   :  { %v8443_v39 = vpop.eup %8442  ;;  %7916 = vmatpush3.msra.mxu0 %v1493_v38  ;;  %7917 = vmatprep.mubr.msk.f32.mxu0 %vm8652_vm1, %v8651_v11 }
 0x5a8   :  { %v1263_v42 = vmul.f32 %v8443_v39, %v8439_v10  ;;  %7936 = vmatprep.subr.mxu0 %v8651_v11  ;;  %v1921_v48 = vpop.permute.xlu0 %1920  ;;  %v187_v39 = vld [vmem:[%s9750_s4 + $0x8] sm:$0xff] }
 0x5aa   :  { %7918 = vmatmul.mubr.msk.f32.vlgmr.msra.gmra.mrb[14].mxu0 %vm193_vm2, %v1263_v42  ;;  %v186_v42 = vld [vmem:[%s9750_s4] sm:$0xff] }
 0x5ab   :  { %7938 = vmatprep.mubr.msk.f32.mxu0 %vm8652_vm1, %v8651_v11 }
 0x5ac   :  { %v1999_v50 = vpop.permute.xlu0 %1998 }
 0x5ae   :  { %7937 = vmatpush3.xpose.msk.msra.mxu0 %vm193_vm2, %v1765_v35 }
 0x5af   :  { %7941 = vmatprep.subr.mxu0 %v8651_v11 }
 0x5b1   :  { %7939 = vmatmul.mubr.msk.f32.vlgmr.msra.gmra.mrb[16].mxu0 %vm193_vm2, %v1763_v43 }
 0x5b2   :  { %7942 = vmatpush3.xpose.msk.msra.mxu0 %vm193_vm2, %v1843_v44  ;;  %7943 = vmatprep.mubr.msk.f32.mxu0 %vm8652_vm1, %v8651_v11 }
 0x5b3   :  { %7946 = vmatprep.subr.mxu0 %v8651_v11 }
 0x5b5   :  { %7944 = vmatmul.mubr.msk.f32.vlgmr.msra.gmra.mrb[18].mxu0 %vm193_vm2, %v1841_v45 }
 0x5b6   :  { %7947 = vmatpush3.xpose.msk.msra.mxu0 %vm193_vm2, %v1921_v48  ;;  %7948 = vmatprep.mubr.msk.f32.mxu0 %vm8652_vm1, %v8651_v11 }
 0x5b7   :  { %7951 = vmatprep.subr.mxu0 %v8651_v11 }
 0x5b9   :  { %7949 = vmatmul.mubr.msk.f32.vlgmr.msra.gmra.mrb[20].mxu0 %vm193_vm2, %v1919_v49 }
 0x5ba   :  { %7952 = vmatpush3.xpose.msk.msra.mxu0 %vm193_vm2, %v1999_v50  ;;  %7953 = vmatprep.mubr.msk.f32.mxu0 %vm8652_vm1, %v8651_v11 }
 0x5bb   :  { %7961 = vmatprep.subr.mxu0 %v8651_v11 }
 0x5bd   :  { %7954 = vmatmul.mubr.msk.f32.vlgmr.msra.gmra.mrb[22].mxu0 %vm193_vm2, %v1997_v51 }
 0x5be   :  { %7963 = vmatprep.mubr.msk.f32.mxu0 %vm8652_vm1, %v8651_v11 }
 0x5d5   :  { %v1228_v52 = vpop.xlane.xlu1 %1227 }
 0x5d6   :  { %v1234_v54 = vsub.f32 %v1218_v26, %v1228_v52 }
 0x5d8   :  { %v1240_v57 = vmul.f32 1.442695, %v1234_v54 }
 0x5d9   :  { %v1265_v53 = vpop.permute.xlu1 %1264 }
 0x5da   :  { %7901 = vmatpush3.msra.mxu1 %v1265_v53 }
 0x5db   :  { %7910 = vmatprep.subr.mxu1 %v8651_v11 }
 0x5dd   :  { %v1222_v55 = vpop.xlane.xlu0 %1221 }
 0x5de   :  { %v1232_v56 = vsub.f32 %v1216_v29, %v1222_v55 }
 0x5e0   :  { %v1236_v58 = vmul.f32 1.442695, %v1232_v56 }
 0x5e2   :  { %8444 = vpow2.f32 %v1236_v58 }
 0x5e3   :  { %8446 = vpow2.f32 %v1240_v57 }
 0x5ec   :  { %v8445_v59 = vpop.eup %8444 }
 0x5ed   :  { %v1244_v60 = vsel %vm193_vm2, %v8445_v59, 0.0  ;;  %v8447_v61 = vpop.eup %8446 }
 0x5ee   :  { %1245 = vadd.xlane.f32.xlu0 %v1244_v60  ;;  %v1250_v62 = vsel %vm193_vm2, %v8447_v61, 0.0 }
 0x5f2   :  { %1251 = vadd.xlane.f32.xlu0 %v1250_v62 }
 0x608   :  { %1416 = vrot.lane.b32.xlu0 %v8804_v19, %s8658_s26 }
 0x679   :  { %v8996_v63 = vpop.f32.mrb[12].mxu0 }
 0x67a   :  { %v7909_v0 = vpop.f32.mrb[13].mxu0 }
 0x67b   :  { %v1246_v1 = vpop.xlane.xlu0 %1245 }
 0x67c   :  { %8448 = vrcp.f32 %v1246_v1 }
 0x67d   :  { %v8998_v2 = vpop.f32.mrb[14].mxu0 }
 0x67e   :  { %v7919_v3 = vpop.f32.mrb[15].mxu0 }
 0x67f   :  { %v1252_v4 = vpop.xlane.xlu0 %1251 }
 0x680   :  { %8450 = vrcp.f32 %v1252_v4 }
 0x683   :  { %v1417_v14 = vpop.permute.xlu0 %1416 }
 0x684   :  { %v1836_v5 = vpop.f32.mrb[16].mxu0 }
 0x685   :  { %v2074_v6 = vmul.f32 0.35355338, %v1836_v5  ;;  %v7940_v7 = vpop.f32.mrb[17].mxu0 }
 0x686   :  { %v8449_v8 = vpop.eup %8448 }
 0x687   :  { %v2078_v9 = vadd.f32 %v2074_v6, %v8839_v34  ;;  %v1260_v10 = vmul.f32 %v8449_v8, %v8445_v59 }
 0x688   :  { %v1914_v12 = vpop.f32.mrb[18].mxu0 }
 0x689   :  { %v2075_v17 = vmul.f32 0.35355338, %v1914_v12  ;;  %v7945_v21 = vpop.f32.mrb[19].mxu0  ;;  %v2082_v22 = vsel %vm193_vm2, %v2078_v9, -inf  ;;  %7903 = vmatmul.mubr.msk.f32.vlgmr.msra.gmra.mrb[16].mxu1 %vm193_vm2, %v1260_v10 }
 0x68a   :  { %v8451_v23 = vpop.eup %8450  ;;  %2083 = vmax.xlane.f32.xlu1 %v2082_v22  ;;  %7911 = vmatpush3.msra.mxu1 %v1417_v14 }
 0x68b   :  { %7912 = vmatprep.mubr.msk.f32.mxu1 %vm8652_vm1, %v8651_v11  ;;  %v2079_v24 = vadd.f32 %v2075_v17, %v8846_v47  ;;  %v1262_v25 = vmul.f32 %v8451_v23, %v8447_v61  ;;  %7920 = vmatprep.subr.mxu1 %v187_v39 }
 0x68c   :  { %v1992_v26 = vpop.f32.mrb[20].mxu0 }
 0x68d   :  { %v2076_v27 = vmul.f32 0.35355338, %v1992_v26  ;;  %v7950_v28 = vpop.f32.mrb[21].mxu0  ;;  %v2085_v29 = vsel %vm193_vm2, %v2079_v24, -inf  ;;  %7913 = vmatmul.mubr.msk.f32.vlgmr.msra.gmra.mrb[18].mxu1 %vm193_vm2, %v1262_v25 }
 0x68e   :  { %2086 = vmax.xlane.f32.xlu0 %v2085_v29  ;;  %7921 = vmatpush3.msra.mxu1 %v187_v39 }
 0x68f   :  { %v2080_v30 = vadd.f32 %v2076_v27, %v8841_v36  ;;  %7928 = vmatprep.subr.mxu1 %v186_v42 }
 0x690   :  { %v2070_v31 = vpop.f32.mrb[22].mxu0 }
 0x691   :  { %v2077_v32 = vmul.f32 0.35355338, %v2070_v31  ;;  %v7955_v33 = vpop.f32.mrb[23].mxu0  ;;  %v2088_v35 = vsel %vm193_vm2, %v2080_v30, -inf }
 0x692   :  { %2089 = vmax.xlane.f32.xlu1 %v2088_v35 }
 0x693   :  { %v2081_v37 = vadd.f32 %v2077_v32, %v8843_v40 }
 0x695   :  { %v2091_v38 = vsel %vm193_vm2, %v2081_v37, -inf }
 0x696   :  { %2092 = vmax.xlane.f32.xlu0 %v2091_v38 }
 0x6a3   :  { %2126 = vrot.lane.b32.xlu1 %v8798_v18, %s8661_s30 }
 0x717   :  { %v2084_v43 = vpop.xlane.xlu1 %2083 }
 0x718   :  { %v2094_v44 = vsub.f32 %v2078_v9, %v2084_v43 }
 0x71a   :  { %v2098_v45 = vmul.f32 1.442695, %v2094_v44 }
 0x71b   :  { %v2087_v48 = vpop.xlane.xlu0 %2086 }
 0x71c   :  { %8452 = vpow2.f32 %v2098_v45  ;;  %v2095_v49 = vsub.f32 %v2079_v24, %v2087_v48 }
 0x71e   :  { %v2100_v50 = vmul.f32 1.442695, %v2095_v49 }
 0x71f   :  { %v2090_v51 = vpop.xlane.xlu1 %2089 }
 0x720   :  { %8454 = vpow2.f32 %v2100_v50  ;;  %v2096_v52 = vsub.f32 %v2080_v30, %v2090_v51 }
 0x722   :  { %v2102_v53 = vmul.f32 1.442695, %v2096_v52 }
 0x723   :  { %v2093_v54 = vpop.xlane.xlu0 %2092  ;;  %v2127_v7 = vpop.permute.xlu1 %2126 }
 0x724   :  { %8456 = vpow2.f32 %v2102_v53  ;;  %v2097_v55 = vsub.f32 %v2081_v37, %v2093_v54 }
 0x726   :  { %v8453_v56 = vpop.eup %8452  ;;  %v2104_v57 = vmul.f32 1.442695, %v2097_v55 }
 0x727   :  { %v2106_v58 = vsel %vm193_vm2, %v8453_v56, 0.0 }
 0x728   :  { %8458 = vpow2.f32 %v2104_v57  ;;  %2107 = vadd.xlane.f32.xlu1 %v2106_v58 }
 0x72a   :  { %v8455_v59 = vpop.eup %8454 }
 0x72b   :  { %v2109_v60 = vsel %vm193_vm2, %v8455_v59, 0.0 }
 0x72c   :  { %2110 = vadd.xlane.f32.xlu0 %v2109_v60 }
 0x72e   :  { %v9022_v61 = vpop.eup %8456 }
 0x72f   :  { %v2112_v62 = vsel %vm193_vm2, %v9022_v61, 0.0 }
 0x730   :  { %2113 = vadd.xlane.f32.xlu1 %v2112_v62 }
 0x732   :  { %v9026_v0 = vpop.eup %8458 }
 0x733   :  { %v2115_v1 = vsel %vm193_vm2, %v9026_v0, 0.0 }
 0x734   :  { %2116 = vadd.xlane.f32.xlu0 %v2115_v1 }
 0x741   :  { %2278 = vrot.lane.b32.xlu1 %v8804_v19, %s8661_s30 }
 0x745   :  { %2354 = vrot.lane.b32.xlu1 %v8796_v15, %s8661_s30 }
 0x749   :  { %2531 = vrot.lane.b32.xlu1 %v8798_v18, %s9769_s0 }
 0x74a   :  { %2202 = vrot.lane.b32.xlu0 %v8806_v20, %s8661_s30 }
 0x74d   :  { %2609 = vrot.lane.b32.xlu1 %v8806_v20, %s9769_s0 }
 0x74e   :  { %2533 = vrot.lane.b32.xlu0 %v8798_v18, %s9767_s15 }
 0x751   :  { %2767 = vrot.lane.b32.xlu1 %v8796_v15, %s9767_s15 }
 0x752   :  { %2611 = vrot.lane.b32.xlu0 %v8806_v20, %s9767_s15 }
 0x755   :  { %2765 = vrot.lane.b32.xlu1 %v8796_v15, %s9769_s0 }
 0x756   :  { %2689 = vrot.lane.b32.xlu0 %v8804_v19, %s9767_s15 }
 0x75a   :  { %2687 = vrot.lane.b32.xlu0 %v8804_v19, %s9769_s0 }
 0x75c   :  { %v1336_v3 = vpop.f32.mrb[16].mxu1 }
 0x75d   :  { %v7904_v4 = vpop.f32.mrb[17].mxu1  ;;  %7922 = vmatprep.mubr.msk.f32.mxu1 %vm193_vm2, %v1336_v3 }
 0x75e   :  { %7923 = vmatmul.mubr.msk.f32.vlgmr.msra.gmra.mrb[20].mxu1 %vm193_vm2, %v8996_v63 }
 0x75f   :  { %7929 = vmatpush3.msra.mxu1 %v186_v42 }
 0x760   :  { %v1488_v5 = vpop.f32.mrb[18].mxu1  ;;  %7956 = vmatprep.subr.mxu1 %v8651_v11 }
 0x761   :  { %v7914_v6 = vpop.f32.mrb[19].mxu1  ;;  %7925 = vmatprep.mubr.msk.f32.mxu1 %vm193_vm2, %v1488_v5 }
 0x762   :  { %7926 = vmatmul.mubr.msk.f32.gmra.mrb[22].mxu1 %vm193_vm2, %v8998_v2 }
 0x763   :  { %7930 = vmatprep.mubr.msk.f32.mxu1 %vm193_vm2, %v8954_v13 }
 0x766   :  { %7931 = vmatmul.mubr.msk.f32.vlgmr.msra.gmra.mrb[20].mxu1 %vm193_vm2, %v8906_v41 }
 0x767   :  { %7957 = vmatpush3.msra.mxu1 %v2127_v7  ;;  %7933 = vmatprep.mubr.msk.f32.mxu1 %vm193_vm2, %v8956_v16  ;;  %v188_v16 = vld [vmem:[%s9750_s4 + $0x10] sm:$0xff] }
 0x768   :  { %7966 = vmatprep.subr.mxu1 %v8651_v11 }
 0x76a   :  { %7934 = vmatmul.mubr.msk.f32.gmra.mrb[22].mxu1 %vm193_vm2, %v8909_v46 }
 0x76b   :  { %7958 = vmatprep.mubr.msk.f32.mxu1 %vm8652_vm1, %v8651_v11 }
 0x7b5   :  { %v2108_v63 = vpop.xlane.xlu1 %2107 }
 0x7b6   :  { %8460 = vrcp.f32 %v2108_v63 }
 0x7b9   :  { %v2111_v2 = vpop.xlane.xlu0 %2110 }
 0x7ba   :  { %8462 = vrcp.f32 %v2111_v2 }
 0x7bd   :  { %v2114_v13 = vpop.xlane.xlu1 %2113 }
 0x7be   :  { %8464 = vrcp.f32 %v2114_v13 }
 0x7c0   :  { %v8461_v8 = vpop.eup %8460 }
 0x7c1   :  { %v2122_v41 = vmul.f32 %v8461_v8, %v8453_v56  ;;  %v2117_v9 = vpop.xlane.xlu0 %2116  ;;  %v2279_v10 = vpop.permute.xlu1 %2278 }
 0x7c2   :  { %8466 = vrcp.f32 %v2117_v9 }
 0x7c3   :  { %7959 = vmatmul.mubr.msk.f32.vlgmr.msra.gmra.mrb[24].mxu1 %vm193_vm2, %v2122_v41 }
 0x7c4   :  { %v8463_v46 = vpop.eup %8462  ;;  %7967 = vmatpush3.msra.mxu1 %v2279_v10  ;;  %7968 = vmatprep.mubr.msk.f32.mxu1 %vm8652_vm1, %v8651_v11 }
 0x7c5   :  { %v2203_v12 = vpop.permute.xlu0 %2202  ;;  %v2355_v14 = vpop.permute.xlu1 %2354  ;;  %v2123_v17 = vmul.f32 %v8463_v46, %v8455_v59  ;;  %7976 = vmatprep.subr.mxu1 %v188_v16 }
 0x7c6   :  { %7962 = vmatpush3.msra.mxu0 %v2203_v12 }
 0x7c7   :  { %7964 = vmatmul.mubr.msk.f32.vlgmr.msra.gmra.mrb[24].mxu0 %vm193_vm2, %v2123_v17  ;;  %7971 = vmatprep.subr.mxu0 %v8651_v11 }
 0x7c8   :  { %v8465_v21 = vpop.eup %8464  ;;  %7972 = vmatpush3.msra.mxu0 %v2355_v14  ;;  %7973 = vmatprep.mubr.msk.f32.mxu0 %vm8652_vm1, %v8651_v11 }
 0x7c9   :  { %v2532_v22 = vpop.permute.xlu1 %2531  ;;  %v2124_v23 = vmul.f32 %v8465_v21, %v9022_v61  ;;  %7984 = vmatprep.subr.mxu0 %v8651_v11  ;;  %v2534_v25 = vpop.permute.xlu0 %2533 }
 0x7cb   :  { %7969 = vmatmul.mubr.msk.f32.vlgmr.msra.gmra.mrb[26].mxu1 %vm193_vm2, %v2124_v23 }
 0x7cc   :  { %v8467_v24 = vpop.eup %8466  ;;  %7977 = vmatpush3.msra.mxu1 %v188_v16 }
 0x7cd   :  { %v2125_v26 = vmul.f32 %v8467_v24, %v9026_v0  ;;  %7994 = vmatprep.subr.mxu1 %v8651_v11  ;;  %v2610_v27 = vpop.permute.xlu1 %2609  ;;  %v2612_v28 = vpop.permute.xlu0 %2611 }
 0x7cf   :  { %7974 = vmatmul.mubr.msk.f32.vlgmr.msra.gmra.mrb[26].mxu0 %vm193_vm2, %v2125_v26 }
 0x7d0   :  { %7985 = vmatpush3.xpose.msk.msra.mxu0 %vm193_vm2, %v2534_v25  ;;  %7986 = vmatprep.mubr.msk.f32.mxu0 %vm8652_vm1, %v8651_v11 }
 0x7d1   :  { %7989 = vmatprep.subr.mxu0 %v8651_v11  ;;  %v2768_v29 = vpop.permute.xlu1 %2767  ;;  %v2690_v35 = vpop.permute.xlu0 %2689 }
 0x7d3   :  { %7987 = vmatmul.mubr.msk.f32.vlgmr.msra.gmra.mrb[28].mxu0 %vm193_vm2, %v2532_v22 }
 0x7d4   :  { %7990 = vmatpush3.xpose.msk.msra.mxu0 %vm193_vm2, %v2612_v28  ;;  %7991 = vmatprep.mubr.msk.f32.mxu0 %vm8652_vm1, %v8651_v11 }
 0x7d5   :  { %7999 = vmatprep.subr.mxu0 %v8651_v11  ;;  %v2766_v30 = vpop.permute.xlu1 %2765  ;;  %v2688_v44 = vpop.permute.xlu0 %2687 }
 0x7d7   :  { %7992 = vmatmul.mubr.msk.f32.vlgmr.msra.gmra.mrb[30].mxu0 %vm193_vm2, %v2610_v27 }
 0x7d8   :  { %8000 = vmatpush3.xpose.msk.msra.mxu0 %vm193_vm2, %v2768_v29  ;;  %8001 = vmatprep.mubr.msk.f32.mxu0 %vm8652_vm1, %v8651_v11  ;;  %v189_v29 = vld [vmem:[%s9750_s4 + $0x18] sm:$0xff] }
 0x7d9   :  { %8009 = vmatprep.subr.mxu0 %v8651_v11 }
 0x7db   :  { %8002 = vmatmul.mubr.msk.f32.vlgmr.msra.gmra.mrb[32].mxu0 %vm193_vm2, %v2766_v30 }
 0x7dc   :  { %8011 = vmatprep.mubr.msk.f32.mxu0 %vm8652_vm1, %v8651_v11 }
 0x896   :  { %v2198_v31 = vpop.f32.mrb[24].mxu1 }
 0x897   :  { %v7960_v32 = vpop.f32.mrb[25].mxu1  ;;  %7978 = vmatprep.mubr.msk.f32.mxu1 %vm193_vm2, %v2198_v31 }
 0x89a   :  { %v2274_v33 = vpop.f32.mrb[24].mxu0 }
 0x89b   :  { %v7965_v37 = vpop.f32.mrb[25].mxu0  ;;  %7979 = vmatmul.mubr.msk.f32.vlgmr.msra.gmra.mrb[20].mxu1 %vm193_vm2, %v2274_v33 }
 0x89c   :  { %7995 = vmatpush3.xpose.msk.msra.mxu1 %vm193_vm2, %v2690_v35 }
 0x89d   :  { %8004 = vmatprep.subr.mxu1 %v8651_v11 }
 0x89e   :  { %v2350_v38 = vpop.f32.mrb[26].mxu1 }
 0x89f   :  { %v7970_v39 = vpop.f32.mrb[27].mxu1  ;;  %7981 = vmatprep.mubr.msk.f32.mxu1 %vm193_vm2, %v2350_v38 }
 0x8a2   :  { %v2426_v42 = vpop.f32.mrb[26].mxu0 }
 0x8a3   :  { %v7975_v43 = vpop.f32.mrb[27].mxu0  ;;  %7982 = vmatmul.mubr.msk.f32.gmra.mrb[22].mxu1 %vm193_vm2, %v2426_v42 }
 0x8a4   :  { %7996 = vmatprep.mubr.msk.f32.mxu1 %vm8652_vm1, %v8651_v11 }
 0x8a6   :  { %v2605_v45 = vpop.f32.mrb[28].mxu0 }
 0x8a7   :  { %v2843_v48 = vmul.f32 0.35355338, %v2605_v45  ;;  %v7988_v49 = vpop.f32.mrb[29].mxu0  ;;  %7997 = vmatmul.mubr.msk.f32.vlgmr.msra.gmra.mrb[28].mxu1 %vm193_vm2, %v2688_v44 }
 0x8a8   :  { %8006 = vmatprep.mubr.msk.f32.mxu1 %vm8652_vm1, %v8651_v11 }
 0x8a9   :  { %v2847_v50 = vadd.f32 %v2843_v48, %v8839_v34 }
 0x8aa   :  { %v2683_v51 = vpop.f32.mrb[30].mxu0 }
 0x8ab   :  { %v2844_v52 = vmul.f32 0.35355338, %v2683_v51  ;;  %v7993_v53 = vpop.f32.mrb[31].mxu0  ;;  %v2851_v54 = vsel %vm193_vm2, %v2847_v50, -inf }
 0x8ac   :  { %2852 = vmax.xlane.f32.xlu0 %v2851_v54  ;;  %v7473_v53 = vld [vmem:[%s9751_s5] ss:$0 sm:$0xff] }
 0x8ad   :  { %v2848_v55 = vadd.f32 %v2844_v52, %v8846_v47 }
 0x8ae   :  { %v2839_v56 = vpop.f32.mrb[32].mxu0 }
 0x8af   :  { %v8003_v57 = vpop.f32.mrb[33].mxu0  ;;  %v2854_v58 = vsel %vm193_vm2, %v2848_v55, -inf  ;;  %v2846_v6 = vmul.f32 0.35355338, %v2839_v56 }
 0x8b0   :  { %2855 = vmax.xlane.f32.xlu1 %v2854_v58  ;;  %v8596_v58 = vld [vmem:[#allocation3 + $0x8] sm:$0xff] }
 0x8b1   :  { %v2850_v8 = vadd.f32 %v2846_v6, %v8843_v40  ;;  %v8598_v6 = vld [vmem:[#allocation3 + $0x10] sm:$0xff] }
 0x939   :  { %v2853_v59 = vpop.xlane.xlu0 %2852 }
 0x93a   :  { %v2863_v60 = vsub.f32 %v2847_v50, %v2853_v59 }
 0x93c   :  { %v2867_v61 = vmul.f32 1.442695, %v2863_v60  ;;  %v8597_v60 = vld [vmem:[#allocation3] sm:$0xff] }
 0x93d   :  { %v2856_v1 = vpop.xlane.xlu1 %2855 }
 0x93e   :  { %8468 = vpow2.f32 %v2867_v61  ;;  %v2864_v3 = vsub.f32 %v2848_v55, %v2856_v1 }
 0x940   :  { %v2869_v4 = vmul.f32 1.442695, %v2864_v3 }
 0x942   :  { %8470 = vpow2.f32 %v2869_v4 }
 0x948   :  { %v8469_v62 = vpop.eup %8468 }
 0x949   :  { %v2875_v0 = vsel %vm193_vm2, %v8469_v62, 0.0 }
 0x94a   :  { %2876 = vadd.xlane.f32.xlu1 %v2875_v0 }
 0x94c   :  { %v8471_v41 = vpop.eup %8470 }
 0x95b   :  { %2895 = vrot.lane.b32.xlu1 %v8798_v18, %s9765_s18  ;;  %v2860_v18 = vsel %vm193_vm2, %v2850_v8, -inf }
 0x95f   :  { %3047 = vrot.lane.b32.xlu1 %v8804_v19, %s9765_s18  ;;  %v2878_v19 = vsel %vm193_vm2, %v8471_v41, 0.0 }
 0x97a   :  { %v2761_v5 = vpop.f32.mrb[28].mxu1 }
 0x97b   :  { %v2845_v7 = vmul.f32 0.35355338, %v2761_v5  ;;  %v7998_v63 = vpop.f32.mrb[29].mxu1 }
 0x97d   :  { %v2849_v2 = vadd.f32 %v2845_v7, %v8841_v36 }
 0x97f   :  { %v2857_v13 = vsel %vm193_vm2, %v2849_v2, -inf }
 0x980   :  { %2858 = vmax.xlane.f32.xlu0 %v2857_v13 }
 0x984   :  { %2861 = vmax.xlane.f32.xlu0 %v2860_v18 }
 0x988   :  { %2879 = vadd.xlane.f32.xlu0 %v2878_v19 }
 0x9d7   :  { %v2877_v9 = vpop.xlane.xlu1 %2876 }
 0x9d8   :  { %8472 = vrcp.f32 %v2877_v9 }
 0x9db   :  { %v2896_v10 = vpop.permute.xlu1 %2895 }
 0x9dc   :  { %8005 = vmatpush3.msra.mxu1 %v2896_v10 }
 0x9dd   :  { %8014 = vmatprep.subr.mxu1 %v8651_v11 }
 0x9df   :  { %v3048_v12 = vpop.permute.xlu1 %3047 }
 0x9e2   :  { %v8473_v16 = vpop.eup %8472 }
 0x9e3   :  { %v2891_v46 = vmul.f32 %v8473_v16, %v8469_v62 }
 0x9e5   :  { %8007 = vmatmul.mubr.msk.f32.vlgmr.msra.gmra.mrb[30].mxu1 %vm193_vm2, %v2891_v46 }
 0x9e6   :  { %8015 = vmatpush3.msra.mxu1 %v3048_v12  ;;  %8016 = vmatprep.mubr.msk.f32.mxu1 %vm8652_vm1, %v8651_v11 }
 0x9e7   :  { %8024 = vmatprep.subr.mxu1 %v189_v29 }
 0xa0d   :  { %v2859_v14 = vpop.xlane.xlu0 %2858 }
 0xa0e   :  { %v2865_v17 = vsub.f32 %v2849_v2, %v2859_v14  ;;  %v8599_v2 = vld [vmem:[#allocation3 + $0x18] sm:$0xff] }
 0xa10   :  { %v2871_v21 = vmul.f32 1.442695, %v2865_v17 }
 0xa11   :  { %v2862_v22 = vpop.xlane.xlu0 %2861 }
 0xa12   :  { %8474 = vpow2.f32 %v2871_v21  ;;  %v2866_v23 = vsub.f32 %v2850_v8, %v2862_v22 }
 0xa14   :  { %v2873_v24 = vmul.f32 1.442695, %v2866_v23 }
 0xa15   :  { %v2880_v30 = vpop.xlane.xlu0 %2879 }
 0xa16   :  { %8476 = vpow2.f32 %v2873_v24 }
 0xa17   :  { %8478 = vrcp.f32 %v2880_v30 }
 0xa1c   :  { %v8475_v25 = vpop.eup %8474 }
 0xa1d   :  { %v2881_v26 = vsel %vm193_vm2, %v8475_v25, 0.0 }
 0xa1e   :  { %2882 = vadd.xlane.f32.xlu1 %v2881_v26 }
 0xa20   :  { %v8477_v27 = vpop.eup %8476 }
 0xa21   :  { %v2884_v28 = vsel %vm193_vm2, %v8477_v27, 0.0  ;;  %v8479_v33 = vpop.eup %8478 }
 0xa22   :  { %2885 = vadd.xlane.f32.xlu0 %v2884_v28  ;;  %v2892_v37 = vmul.f32 %v8479_v33, %v8471_v41 }
 0xa2f   :  { %3123 = vrot.lane.b32.xlu1 %v8796_v15, %s9765_s18 }
 0xa38   :  { %2971 = vrot.lane.b32.xlu0 %v8806_v20, %s9765_s18 }
 0xaab   :  { %v2883_v31 = vpop.xlane.xlu1 %2882 }
 0xaac   :  { %8480 = vrcp.f32 %v2883_v31  ;;  %v3390_v31 = vld [vmem:[%s9754_s8] sm:$0xff] }
 0xaaf   :  { %v2886_v32 = vpop.xlane.xlu0 %2885  ;;  %v3124_v38 = vpop.permute.xlu1 %3123 }
 0xab0   :  { %8482 = vrcp.f32 %v2886_v32  ;;  %v3391_v32 = vld [vmem:[%s9754_s8 + $0x8] sm:$0xff] }
 0xab1   :  { %v8318_v33 = vpack.c.bf16 %v3391_v32, %v3390_v31 }
 0xab3   :  { %v2972_v35 = vpop.permute.xlu0 %2971 }
 0xab4   :  { %8010 = vmatpush3.msra.mxu0 %v2972_v35  ;;  %v3392_v35 = vld [vmem:[%s9754_s8 + $0x10] sm:$0xff] }
 0xab5   :  { %8012 = vmatmul.mubr.msk.f32.vlgmr.msra.gmra.mrb[34].mxu0 %vm193_vm2, %v2892_v37  ;;  %8019 = vmatprep.subr.mxu0 %v8651_v11  ;;  %v3393_v37 = vld [vmem:[%s9754_s8 + $0x18] sm:$0xff] }
 0xab6   :  { %v8481_v15 = vpop.eup %8480  ;;  %8020 = vmatpush3.msra.mxu0 %v3124_v38  ;;  %8021 = vmatprep.mubr.msk.f32.mxu0 %vm8652_vm1, %v8651_v11  ;;  %v8322_v38 = vpack.c.bf16 %v3393_v37, %v3392_v35 }
 0xab7   :  { %v2893_v20 = vmul.f32 %v8481_v15, %v8475_v25  ;;  %8319 = vmatprep.subr.bf16.mxu0 %v8318_v33 }
 0xab8   :  { %v2967_v39 = vpop.f32.mrb[30].mxu1 }
 0xab9   :  { %v8008_v42 = vpop.f32.mrb[31].mxu1  ;;  %8017 = vmatmul.mubr.msk.f32.vlgmr.msra.gmra.mrb[32].mxu1 %vm193_vm2, %v2893_v20 }
 0xaba   :  { %v8483_v43 = vpop.eup %8482  ;;  %8026 = vmatprep.mubr.msk.f32.mxu1 %vm193_vm2, %v2967_v39  ;;  %8025 = vmatpush3.msra.mxu1 %v189_v29 }
 0xabb   :  { %v2894_v44 = vmul.f32 %v8483_v43, %v8477_v27 }
 0xabd   :  { %8022 = vmatmul.mubr.msk.f32.vlgmr.msra.gmra.mrb[36].mxu0 %vm193_vm2, %v2894_v44 }
 0xabe   :  { %8321 = vmatpush3.bf16.msra.mxu0 %v8318_v33 }
 0xabf   :  { %8323 = vmatprep.subr.bf16.mxu0 %v8322_v38 }
 0xac2   :  { %8325 = vmatpush3.bf16.msra.mxu0 %v8322_v38 }
 0xb88   :  { %v3043_v45 = vpop.f32.mrb[34].mxu0 }
 0xb89   :  { %v8013_v48 = vpop.f32.mrb[35].mxu0  ;;  %8027 = vmatmul.mubr.msk.f32.vlgmr.msra.gmra.mrb[20].mxu1 %vm193_vm2, %v3043_v45 }
 0xb8c   :  { %v3119_v49 = vpop.f32.mrb[32].mxu1 }
 0xb8d   :  { %v8018_v50 = vpop.f32.mrb[33].mxu1  ;;  %8029 = vmatprep.mubr.msk.f32.mxu1 %vm193_vm2, %v3119_v49 }
 0xb90   :  { %v3195_v51 = vpop.f32.mrb[36].mxu0 }
 0xb91   :  { %v8023_v52 = vpop.f32.mrb[37].mxu0  ;;  %8030 = vmatmul.mubr.msk.f32.gmra.mrb[22].mxu1 %vm193_vm2, %v3195_v51 }
 0xc5c   :  { %v8028_v54 = vpop.f32.mrb[20].mxu1 }
 0xc5d   :  { %v3308_v55 = vadd.f32 %v8028_v54, %v7473_v53  ;;  %v3277_v56 = vpop.f32.mrb[21].mxu1 }
 0xc5e   :  { %v3307_v57 = vadd.f32 %v7473_v53, %v3277_v56 }
 0xc5f   :  { %v3312_v59 = vadd.f32 %v8596_v58, %v3308_v55  ;;  %v7475_v58 = vld [vmem:[%s9753_s7] ss:$0 sm:$0xff] }
 0xc60   :  { %v3311_v61 = vadd.f32 %v8597_v60, %v3307_v57 }
 0xc61   :  { %v3320_v62 = vsel %vm88_vm0, %v3312_v59, 0.0 }
 0xc62   :  { %3321 = vadd.xlane.f32.xlu1 %v3320_v62  ;;  %v3317_v0 = vsel %vm88_vm0, %v3311_v61, 0.0 }
 0xc63   :  { %3318 = vadd.xlane.f32.xlu0 %v3317_v0 }
 0xc64   :  { %v8031_v1 = vpop.f32.mrb[22].mxu1 }
 0xc65   :  { %v3287_v3 = vpop.f32.mrb[23].mxu1  ;;  %v3310_v4 = vadd.f32 %v8031_v1, %v7473_v53 }
 0xc66   :  { %v3309_v5 = vadd.f32 %v7473_v53, %v3287_v3  ;;  %v7474_v53 = vld [vmem:[%s9752_s6] ss:$0 sm:$0xff] }
 0xc67   :  { %v3314_v13 = vadd.f32 %v8599_v2, %v3310_v4  ;;  %v3534_v2 = vld [vmem:[%s9756_s10] sm:$0xff] }
 0xc68   :  { %v3313_v7 = vadd.f32 %v8598_v6, %v3309_v5 }
 0xc69   :  { %v3326_v8 = vsel %vm88_vm0, %v3314_v13, 0.0 }
 0xc6a   :  { %v3323_v63 = vsel %vm88_vm0, %v3313_v7, 0.0 }
 0xc6b   :  { %3324 = vadd.xlane.f32.xlu0 %v3323_v63 }
 0xc6f   :  { %3327 = vadd.xlane.f32.xlu0 %v3326_v8 }
 0xcef   :  { %v3322_v18 = vpop.xlane.xlu1 %3321 }
 0xcf0   :  { %v3331_v41 = vmul.f32 0.03125, %v3322_v18  ;;  %v3319_v19 = vpop.xlane.xlu0 %3318  ;;  %v3536_v18 = vld [vmem:[%s9756_s10 + $0x10] sm:$0xff] }
 0xcf1   :  { %v3330_v9 = vmul.f32 0.03125, %v3319_v19 }
 0xcf2   :  { %v3335_v10 = vsub.f32 %v3312_v59, %v3331_v41  ;;  %v3537_v41 = vld [vmem:[%s9756_s10 + $0x18] sm:$0xff] }
 0xcf3   :  { %v3334_v16 = vsub.f32 %v3311_v61, %v3330_v9  ;;  %v8330_v19 = vpack.c.bf16 %v3537_v41, %v3536_v18  ;;  %v3538_v9 = vld [vmem:[%s9756_s10 + $0x20] sm:$0xff] }
 0xcf4   :  { %v3339_v46 = vmul.f32 %v3335_v10, %v3335_v10 }
 0xcf5   :  { %v3338_v12 = vmul.f32 %v3334_v16, %v3334_v16 }
 0xcf6   :  { %v3345_v14 = vsel %vm88_vm0, %v3339_v46, 0.0  ;;  %v3540_v46 = vld [vmem:[%s9756_s10 + $0x30] sm:$0xff] }
 0xcf7   :  { %3346 = vadd.xlane.f32.xlu0 %v3345_v14  ;;  %v3342_v17 = vsel %vm88_vm0, %v3338_v12, 0.0  ;;  %v3541_v12 = vld [vmem:[%s9756_s10 + $0x38] sm:$0xff] }
 0xcf8   :  { %3343 = vadd.xlane.f32.xlu1 %v3342_v17  ;;  %v3325_v21 = vpop.xlane.xlu0 %3324  ;;  %v8338_v14 = vpack.c.bf16 %v3541_v12, %v3540_v46  ;;  %v7476_v17 = vld [vmem:[%s9755_s9] ss:$0 sm:$0xff] }
 0xcf9   :  { %v3332_v22 = vmul.f32 0.03125, %v3325_v21 }
 0xcfb   :  { %v3336_v23 = vsub.f32 %v3313_v7, %v3332_v22 }
 0xcfc   :  { %v3328_v24 = vpop.xlane.xlu0 %3327 }
 0xcfd   :  { %v3333_v25 = vmul.f32 0.03125, %v3328_v24  ;;  %v3340_v26 = vmul.f32 %v3336_v23, %v3336_v23 }
 0xcff   :  { %v3337_v27 = vsub.f32 %v3314_v13, %v3333_v25  ;;  %v3348_v28 = vsel %vm88_vm0, %v3340_v26, 0.0  ;;  %v3535_v13 = vld [vmem:[%s9756_s10 + $0x8] sm:$0xff] }
 0xd00   :  { %3349 = vadd.xlane.f32.xlu1 %v3348_v28  ;;  %v8326_v8 = vpack.c.bf16 %v3535_v13, %v3534_v2 }
 0xd01   :  { %v3341_v29 = vmul.f32 %v3337_v27, %v3337_v27 }
 0xd02   :  { %8327 = vmatprep.subr.bf16.mxu1 %v8326_v8 }
 0xd03   :  { %v3351_v30 = vsel %vm88_vm0, %v3341_v29, 0.0  ;;  %8329 = vmatpush3.bf16.msra.mxu1 %v8326_v8  ;;  %v7481_v8 = vld [vmem:[%s9757_s11] ss:$0 sm:$0xff] }
 0xd04   :  { %3352 = vadd.xlane.f32.xlu0 %v3351_v30  ;;  %8331 = vmatprep.subr.bf16.mxu1 %v8330_v19 }
 0xd07   :  { %8333 = vmatpush3.bf16.msra.mxu1 %v8330_v19 }
 0xd84   :  { %v3347_v15 = vpop.xlane.xlu0 %3346 }
 0xd85   :  { %v3355_v20 = vmul.f32 0.03125, %v3347_v15  ;;  %v3344_v39 = vpop.xlane.xlu1 %3343 }
 0xd86   :  { %v3354_v42 = vmul.f32 0.03125, %v3344_v39 }
 0xd87   :  { %v3359_v43 = vadd.f32 1e-06, %v3355_v20 }
 0xd88   :  { %v3358_v44 = vadd.f32 1e-06, %v3354_v42 }
 0xd89   :  { %8484 = vrsqrt.f32 %v3359_v43 }
 0xd8a   :  { %8486 = vrsqrt.f32 %v3358_v44 }
 0xd8d   :  { %v3350_v45 = vpop.xlane.xlu1 %3349 }
 0xd8e   :  { %v3356_v48 = vmul.f32 0.03125, %v3350_v45 }
 0xd90   :  { %v3360_v49 = vadd.f32 1e-06, %v3356_v48 }
 0xd91   :  { %v3353_v50 = vpop.xlane.xlu0 %3352 }
 0xd92   :  { %8488 = vrsqrt.f32 %v3360_v49  ;;  %v3357_v51 = vmul.f32 0.03125, %v3353_v50 }
 0xd93   :  { %v8485_v52 = vpop.eup %8484 }
 0xd94   :  { %v8487_v54 = vpop.eup %8486  ;;  %v3367_v55 = vmul.f32 %v8485_v52, %v3335_v10  ;;  %v3361_v56 = vadd.f32 1e-06, %v3357_v51  ;;  %v3539_v10 = vld [vmem:[%s9756_s10 + $0x28] sm:$0xff] }
 0xd95   :  { %v3366_v57 = vmul.f32 %v8487_v54, %v3334_v16  ;;  %v8334_v16 = vpack.c.bf16 %v3539_v10, %v3538_v9 }
 0xd96   :  { %8490 = vrsqrt.f32 %v3361_v56  ;;  %v3377_v59 = vmul.f32 %v7474_v53, %v3367_v55 }
 0xd97   :  { %v3376_v60 = vmul.f32 %v7474_v53, %v3366_v57  ;;  %8335 = vmatprep.subr.bf16.mxu1 %v8334_v16 }
 0xd98   :  { %v9182_v62 = vadd.f32 %v7475_v58, %v3377_v59  ;;  %8337 = vmatpush3.bf16.msra.mxu1 %v8334_v16 }
 0xd99   :  { %v9180_v61 = vadd.f32 %v7475_v58, %v3376_v60  ;;  %8339 = vmatprep.subr.bf16.mxu1 %v8338_v14 }
 0xd9b   :  { %8040 = vmatprep.mubr.msk.f32.mxu0 %vm88_vm0, %v9180_v61 }
 0xd9c   :  { %v8489_v0 = vpop.eup %8488  ;;  %8041 = vmatmul.mubr.msk.f32.vlgmr.msra.gmra.mrb[38].mxu0 %vm88_vm0, %v9182_v62  ;;  %8341 = vmatpush3.bf16.msra.mxu1 %v8338_v14 }
 0xd9d   :  { %v3368_v1 = vmul.f32 %v8489_v0, %v3336_v23  ;;  %8087 = vmatprep.subr.mxu1 %v8651_v11 }
 0xd9f   :  { %v3378_v3 = vmul.f32 %v7474_v53, %v3368_v1 }
 0xda0   :  { %v8491_v4 = vpop.eup %8490 }
 0xda1   :  { %v9188_v5 = vadd.f32 %v7475_v58, %v3378_v3  ;;  %v3369_v6 = vmul.f32 %v8491_v4, %v3337_v27 }
 0xda3   :  { %8043 = vmatprep.mubr.msk.f32.mxu0 %vm88_vm0, %v9188_v5  ;;  %v3379_v7 = vmul.f32 %v7474_v53, %v3369_v6 }
 0xda5   :  { %v9192_v63 = vadd.f32 %v7475_v58, %v3379_v7 }
 0xda7   :  { %8044 = vmatmul.mubr.msk.f32.gmra.mrb[40].mxu0 %vm88_vm0, %v9192_v63 }
 0xe6f   :  { %v8042_v21 = vpop.f32.mrb[38].mxu0 }
 0xe70   :  { %v3485_v22 = vadd.f32 %v8042_v21, %v7476_v17  ;;  %v3479_v23 = vpop.f32.mrb[39].mxu0 }
 0xe71   :  { %v3480_v24 = vadd.f32 %v7476_v17, %v3479_v23 }
 0xe72   :  { %v3503_v25 = vmul.f32 0.044715, %v3485_v22  ;;  %v3499_v58 = vmul.f32 0.5, %v3485_v22 }
 0xe73   :  { %v3502_v26 = vmul.f32 0.044715, %v3480_v24  ;;  %v3498_v56 = vmul.f32 0.5, %v3480_v24 }
 0xe74   :  { %v3507_v27 = vmul.f32 %v3503_v25, %v3485_v22 }
 0xe75   :  { %v3506_v28 = vmul.f32 %v3502_v26, %v3480_v24 }
 0xe76   :  { %v3511_v29 = vmul.f32 %v3507_v27, %v3485_v22 }
 0xe77   :  { %v3510_v30 = vmul.f32 %v3506_v28, %v3480_v24 }
 0xe78   :  { %v3515_v31 = vadd.f32 %v3511_v29, %v3485_v22 }
 0xe79   :  { %v3514_v32 = vadd.f32 %v3510_v30, %v3480_v24 }
 0xe7a   :  { %v3519_v33 = vmul.f32 0.7978846, %v3515_v31  ;;  %v8045_v35 = vpop.f32.mrb[40].mxu0 }
 0xe7b   :  { %v3495_v37 = vadd.f32 %v8045_v35, %v7476_v17  ;;  %v3489_v38 = vpop.f32.mrb[41].mxu0  ;;  %v3518_v15 = vmul.f32 0.7978846, %v3514_v32 }
 0xe7c   :  { %8492 = vtanh.f32 %v3519_v33  ;;  %v3490_v20 = vadd.f32 %v7476_v17, %v3489_v38 }
 0xe7d   :  { %v3505_v39 = vmul.f32 0.044715, %v3495_v37  ;;  %8494 = vtanh.f32 %v3518_v15  ;;  %v3501_v7 = vmul.f32 0.5, %v3495_v37 }
 0xe7e   :  { %v3504_v42 = vmul.f32 0.044715, %v3490_v20  ;;  %v3500_v4 = vmul.f32 0.5, %v3490_v20 }
 0xe7f   :  { %v3509_v43 = vmul.f32 %v3505_v39, %v3495_v37 }
 0xe80   :  { %v3508_v44 = vmul.f32 %v3504_v42, %v3490_v20 }
 0xe81   :  { %v3513_v45 = vmul.f32 %v3509_v43, %v3495_v37 }
 0xe82   :  { %v3512_v48 = vmul.f32 %v3508_v44, %v3490_v20 }
 0xe83   :  { %v3517_v49 = vadd.f32 %v3513_v45, %v3495_v37  ;;  %v7488_v45 = vld [vmem:[%s9748_s2 + $0x20] sm:$0xff] }
 0xe84   :  { %v3516_v50 = vadd.f32 %v3512_v48, %v3490_v20  ;;  %v7489_v48 = vld [vmem:[%s9748_s2 + $0x28] sm:$0xff] }
 0xe85   :  { %v3521_v51 = vmul.f32 0.7978846, %v3517_v49  ;;  %v8342_v49 = vpack.c.bf16 %v7489_v48, %v7488_v45 }
 0xe86   :  { %v8493_v52 = vpop.eup %8492  ;;  %v3520_v53 = vmul.f32 0.7978846, %v3516_v50  ;;  %v7490_v50 = vld [vmem:[%s9748_s2 + $0x30] sm:$0xff] }
 0xe87   :  { %v8495_v54 = vpop.eup %8494  ;;  %v3527_v55 = vadd.f32 1.0, %v8493_v52  ;;  %8496 = vtanh.f32 %v3521_v51  ;;  %8343 = vmatprep.subr.bf16.mxu0 %v8342_v49  ;;  %v7491_v51 = vld [vmem:[%s9748_s2 + $0x38] sm:$0xff] }
 0xe88   :  { %v3526_v57 = vadd.f32 1.0, %v8495_v54  ;;  %8498 = vtanh.f32 %v3520_v53  ;;  %8345 = vmatpush3.bf16.msra.mxu0 %v8342_v49  ;;  %v8346_v52 = vpack.c.bf16 %v7491_v51, %v7490_v50 }
 0xe89   :  { %v3531_v60 = vmul.f32 %v3527_v55, %v3499_v58 }
 0xe8a   :  { %v3530_v59 = vmul.f32 %v3526_v57, %v3498_v56  ;;  %8347 = vmatprep.subr.bf16.mxu0 %v8346_v52 }
 0xe8c   :  { %8062 = vmatprep.mubr.msk.f32.mxu1 %vm3549_vm3, %v3530_v59  ;;  %8349 = vmatpush3.bf16.msra.mxu0 %v8346_v52 }
 0xe8d   :  { %8063 = vmatmul.mubr.msk.f32.vlgmr.msra.gmra.mrb[34].mxu1 %vm3549_vm3, %v3531_v60  ;;  %8082 = vmatprep.subr.mxu0 %v8651_v11 }
 0xe91   :  { %v8497_v0 = vpop.eup %8496 }
 0xe92   :  { %v8499_v1 = vpop.eup %8498  ;;  %v3529_v3 = vadd.f32 1.0, %v8497_v0 }
 0xe93   :  { %v3528_v6 = vadd.f32 1.0, %v8499_v1 }
 0xe94   :  { %v3533_v13 = vmul.f32 %v3529_v3, %v3501_v7  ;;  %v7486_v7 = vld [vmem:[%s9758_s12] ss:$0 sm:$0xff] }
 0xe95   :  { %v3532_v2 = vmul.f32 %v3528_v6, %v3500_v4 }
 0xe97   :  { %8065 = vmatprep.mubr.msk.f32.mxu1 %vm3549_vm3, %v3532_v2 }
 0xe98   :  { %8066 = vmatmul.mubr.msk.f32.gmra.mrb[36].mxu1 %vm3549_vm3, %v3533_v13 }
 0xe99   :  { %8089 = vmatprep.mubr.msk.f32.mxu1 %vm8652_vm1, %v8651_v11 }
 0xf60   :  { %v8064_v18 = vpop.f32.mrb[34].mxu1 }
 0xf61   :  { %v3634_v41 = vadd.f32 %v8064_v18, %v7481_v8  ;;  %v3628_v19 = vpop.f32.mrb[35].mxu1  ;;  %v7487_v18 = vld [vmem:[%s9759_s13] ss:$0 sm:$0xff] }
 0xf62   :  { %v3629_v9 = vadd.f32 %v7481_v8, %v3628_v19 }
 0xf63   :  { %v3648_v10 = vadd.f32 %v3634_v41, %v9182_v62 }
 0xf64   :  { %v3647_v16 = vadd.f32 %v3629_v9, %v9180_v61 }
 0xf65   :  { %v3656_v46 = vsel %vm88_vm0, %v3648_v10, 0.0 }
 0xf66   :  { %3657 = vadd.xlane.f32.xlu0 %v3656_v46  ;;  %v3653_v12 = vsel %vm88_vm0, %v3647_v16, 0.0 }
 0xf67   :  { %3654 = vadd.xlane.f32.xlu1 %v3653_v12 }
 0xf6b   :  { %v8067_v14 = vpop.f32.mrb[36].mxu1 }
 0xf6c   :  { %v3644_v17 = vadd.f32 %v8067_v14, %v7481_v8  ;;  %v3638_v21 = vpop.f32.mrb[37].mxu1 }
 0xf6d   :  { %v3639_v22 = vadd.f32 %v7481_v8, %v3638_v21 }
 0xf6e   :  { %v3650_v23 = vadd.f32 %v3644_v17, %v9192_v63 }
 0xf6f   :  { %v3649_v24 = vadd.f32 %v3639_v22, %v9188_v5 }
 0xf70   :  { %v3662_v25 = vsel %vm88_vm0, %v3650_v23, 0.0 }
 0xf71   :  { %3663 = vadd.xlane.f32.xlu0 %v3662_v25  ;;  %v3659_v62 = vsel %vm88_vm0, %v3649_v24, 0.0 }
 0xf72   :  { %3660 = vadd.xlane.f32.xlu1 %v3659_v62 }
 0xff3   :  { %v3658_v61 = vpop.xlane.xlu0 %3657 }
 0xff4   :  { %v3666_v26 = vmul.f32 0.03125, %v3658_v61  ;;  %v3655_v27 = vpop.xlane.xlu1 %3654 }
 0xff5   :  { %v3665_v28 = vmul.f32 0.03125, %v3655_v27 }
 0xff6   :  { %v3670_v29 = vsub.f32 %v3648_v10, %v3666_v26 }
 0xff7   :  { %v3669_v30 = vsub.f32 %v3647_v16, %v3665_v28 }
 0xff8   :  { %v3674_v31 = vmul.f32 %v3670_v29, %v3670_v29 }
 0xff9   :  { %v3673_v32 = vmul.f32 %v3669_v30, %v3669_v30 }
 0xffa   :  { %v3680_v33 = vsel %vm88_vm0, %v3674_v31, 0.0 }
 0xffb   :  { %3681 = vadd.xlane.f32.xlu0 %v3680_v33  ;;  %v3677_v63 = vsel %vm88_vm0, %v3673_v32, 0.0 }
 0xffc   :  { %3678 = vadd.xlane.f32.xlu1 %v3677_v63 }
 0xffe   :  { %v3664_v5 = vpop.xlane.xlu0 %3663 }
 0xfff   :  { %v3668_v35 = vmul.f32 0.03125, %v3664_v5  ;;  %v3661_v37 = vpop.xlane.xlu1 %3660 }
0x1000   :  { %v3667_v38 = vmul.f32 0.03125, %v3661_v37 }
0x1001   :  { %v3672_v15 = vsub.f32 %v3650_v23, %v3668_v35 }
0x1002   :  { %v3671_v20 = vsub.f32 %v3649_v24, %v3667_v38  ;;  %v7493_v24 = vld [vmem:[%s9749_s3 + $0x1] ss:$0 sm:$0xff] }
0x1003   :  { %v3676_v39 = vmul.f32 %v3672_v15, %v3672_v15 }
0x1004   :  { %v3675_v42 = vmul.f32 %v3671_v20, %v3671_v20 }
0x1005   :  { %v3686_v43 = vsel %vm88_vm0, %v3676_v39, 0.0 }
0x1006   :  { %3687 = vadd.xlane.f32.xlu0 %v3686_v43  ;;  %v3683_v44 = vsel %vm88_vm0, %v3675_v42, 0.0 }
0x1007   :  { %3684 = vadd.xlane.f32.xlu1 %v3683_v44 }
0x1088   :  { %v3682_v53 = vpop.xlane.xlu0 %3681 }
0x1089   :  { %v3690_v54 = vmul.f32 0.03125, %v3682_v53  ;;  %v3679_v55 = vpop.xlane.xlu1 %3678 }
0x108a   :  { %v3689_v56 = vmul.f32 0.03125, %v3679_v55 }
0x108b   :  { %v3694_v57 = vadd.f32 1e-06, %v3690_v54 }
0x108c   :  { %v3693_v58 = vadd.f32 1e-06, %v3689_v56 }
0x108d   :  { %8500 = vrsqrt.f32 %v3694_v57 }
0x108e   :  { %8502 = vrsqrt.f32 %v3693_v58 }
0x1093   :  { %v3688_v59 = vpop.xlane.xlu0 %3687 }
0x1094   :  { %v3692_v60 = vmul.f32 0.03125, %v3688_v59  ;;  %v3685_v0 = vpop.xlane.xlu1 %3684 }
0x1095   :  { %v3691_v1 = vmul.f32 0.03125, %v3685_v0 }
0x1096   :  { %v3696_v3 = vadd.f32 1e-06, %v3692_v60 }
0x1097   :  { %v8501_v4 = vpop.eup %8500  ;;  %v3695_v6 = vadd.f32 1e-06, %v3691_v1 }
0x1098   :  { %v8503_v2 = vpop.eup %8502  ;;  %v3702_v13 = vmul.f32 %v8501_v4, %v3670_v29  ;;  %8504 = vrsqrt.f32 %v3696_v3 }
0x1099   :  { %8506 = vrsqrt.f32 %v3695_v6  ;;  %v3701_v8 = vmul.f32 %v8503_v2, %v3669_v30 }
0x109a   :  { %v3712_v41 = vmul.f32 %v7486_v7, %v3702_v13 }
0x109b   :  { %v3711_v19 = vmul.f32 %v7486_v7, %v3701_v8 }
0x109c   :  { %v9266_v10 = vadd.f32 %v7487_v18, %v3712_v41 }
0x109d   :  { %v9264_v9 = vadd.f32 %v7487_v18, %v3711_v19 }
0x109f   :  { %8076 = vmatprep.mubr.msk.f32.mxu0 %vm88_vm0, %v9264_v9 }
0x10a0   :  { %8077 = vmatmul.mubr.msk.f32.vlgmr.msra.gmra.mrb[42].mxu0 %vm88_vm0, %v9266_v10 }
0x10a2   :  { %v8505_v16 = vpop.eup %8504 }
0x10a3   :  { %v8507_v46 = vpop.eup %8506  ;;  %v3704_v12 = vmul.f32 %v8505_v16, %v3672_v15 }
0x10a4   :  { %v3703_v14 = vmul.f32 %v8507_v46, %v3671_v20 }
0x10a5   :  { %v3714_v17 = vmul.f32 %v7486_v7, %v3704_v12 }
0x10a6   :  { %v3713_v21 = vmul.f32 %v7486_v7, %v3703_v14 }
0x10a7   :  { %v9274_v23 = vadd.f32 %v7487_v18, %v3714_v17 }
0x10a8   :  { %v9272_v22 = vadd.f32 %v7487_v18, %v3713_v21 }
0x10aa   :  { %8079 = vmatprep.mubr.msk.f32.mxu0 %vm88_vm0, %v9272_v22 }
0x10ab   :  { %8080 = vmatmul.mubr.msk.f32.gmra.mrb[44].mxu0 %vm88_vm0, %v9274_v23 }
0x10ac   :  { %8084 = vmatprep.mubr.msk.f32.mxu0 %vm8652_vm1, %v8651_v11 }
0x1173   :  { %v8078_v25 = vpop.f32.mrb[42].mxu0 }
0x1174   :  { %v9285_v62 = vadd.f32 %v8078_v25, %v7493_v24  ;;  %v3816_v61 = vpop.f32.mrb[43].mxu0 }
0x1175   :  { %v9289_v26 = vadd.f32 %v7493_v24, %v3816_v61 }
0x1176   :  { %3918 = vrot.lane.b32.xlu1 %v9285_v62, %s8653_s20 }
0x117a   :  { %3841 = vrot.lane.b32.xlu1 %v9289_v26, %s8653_s20 }
0x117e   :  { %v8081_v27 = vpop.f32.mrb[44].mxu0 }
0x117f   :  { %v9293_v28 = vadd.f32 %v8081_v27, %v7493_v24  ;;  %v3826_v29 = vpop.f32.mrb[45].mxu0 }
0x1180   :  { %v9295_v30 = vadd.f32 %v7493_v24, %v3826_v29 }
0x1181   :  { %4072 = vrot.lane.b32.xlu0 %v9293_v28, %s8653_s20 }
0x1182   :  { %3995 = vrot.lane.b32.xlu1 %v9295_v30, %s8653_s20 }
0x11e8   :  { %v3919_v31 = vpop.permute.xlu1 %3918 }
0x11e9   :  { %8088 = vmatpush3.xpose.msk.msra.mxu1 %vm193_vm2, %v3919_v31 }
0x11ea   :  { %8097 = vmatprep.subr.mxu1 %v8651_v11 }
0x11ec   :  { %8090 = vmatmul.mubr.msk.f32.vlgmr.msra.gmra.mrb[38].mxu1 %vm193_vm2, %v9285_v62  ;;  %v3842_v32 = vpop.permute.xlu1 %3841 }
0x11ed   :  { %8083 = vmatpush3.xpose.msk.msra.mxu0 %vm193_vm2, %v3842_v32  ;;  %8099 = vmatprep.mubr.msk.f32.mxu1 %vm8652_vm1, %v8651_v11 }
0x11ee   :  { %8092 = vmatprep.subr.mxu0 %v8651_v11 }
0x11f0   :  { %8085 = vmatmul.mubr.msk.f32.vlgmr.msra.gmra.mrb[46].mxu0 %vm193_vm2, %v9289_v26 }
0x11f1   :  { %8094 = vmatprep.mubr.msk.f32.mxu0 %vm8652_vm1, %v8651_v11 }
0x11f3   :  { %v4073_v33 = vpop.permute.xlu0 %4072 }
0x11f4   :  { %8098 = vmatpush3.xpose.msk.msra.mxu1 %vm193_vm2, %v4073_v33  ;;  %v3996_v63 = vpop.permute.xlu1 %3995 }
0x11f5   :  { %8093 = vmatpush3.xpose.msk.msra.mxu0 %vm193_vm2, %v3996_v63  ;;  %8107 = vmatprep.subr.mxu1 %v8651_v11 }
0x11f6   :  { %8102 = vmatprep.subr.mxu0 %v8651_v11 }
0x11f7   :  { %8100 = vmatmul.mubr.msk.f32.vlgmr.msra.gmra.mrb[40].mxu1 %vm193_vm2, %v9293_v28 }
0x11f8   :  { %8095 = vmatmul.mubr.msk.f32.vlgmr.msra.gmra.mrb[48].mxu0 %vm193_vm2, %v9295_v30  ;;  %8109 = vmatprep.mubr.msk.f32.mxu1 %vm8652_vm1, %v8651_v11 }
0x11f9   :  { %8104 = vmatprep.mubr.msk.f32.mxu0 %vm8652_vm1, %v8651_v11 }
0x12bf   :  { %v3990_v5 = vpop.f32.mrb[38].mxu1 }
0x12c0   :  { %v4149_v35 = vmul.f32 0.35355338, %v3990_v5  ;;  %v8091_v37 = vpop.f32.mrb[39].mxu1 }
0x12c2   :  { %v4153_v38 = vadd.f32 %v4149_v35, %v8846_v47 }
0x12c3   :  { %v3913_v15 = vpop.f32.mrb[46].mxu0 }
0x12c4   :  { %v8086_v20 = vpop.f32.mrb[47].mxu0  ;;  %v4159_v39 = vsel %vm193_vm2, %v4153_v38, -inf  ;;  %v4148_v13 = vmul.f32 0.35355338, %v3913_v15 }
0x12c5   :  { %4160 = vmax.xlane.f32.xlu0 %v4159_v39 }
0x12c6   :  { %v4152_v18 = vadd.f32 %v4148_v13, %v8839_v34 }
0x12c8   :  { %v4156_v19 = vsel %vm193_vm2, %v4152_v18, -inf }
0x12ca   :  { %v4144_v42 = vpop.f32.mrb[40].mxu1 }
0x12cb   :  { %v4151_v43 = vmul.f32 0.35355338, %v4144_v42  ;;  %v4067_v44 = vpop.f32.mrb[48].mxu0  ;;  %v8101_v45 = vpop.f32.mrb[41].mxu1 }
0x12cc   :  { %v8096_v48 = vpop.f32.mrb[49].mxu0  ;;  %v4150_v51 = vmul.f32 0.35355338, %v4067_v44 }
0x12cd   :  { %v4155_v49 = vadd.f32 %v4151_v43, %v8843_v40 }
0x12ce   :  { %v9338_v52 = vadd.f32 %v4150_v51, %v8841_v36 }
0x12cf   :  { %v4165_v50 = vsel %vm193_vm2, %v4155_v49, -inf }
0x12d0   :  { %4166 = vmax.xlane.f32.xlu1 %v4165_v50  ;;  %v4162_v53 = vsel %vm193_vm2, %v9338_v52, -inf }
0x12e1   :  { %4276 = vrot.lane.b32.xlu1 %v9285_v62, %s8655_s23 }
0x12e5   :  { %4584 = vrot.lane.b32.xlu1 %v9285_v62, %s8656_s24 }
0x12e9   :  { %4582 = vrot.lane.b32.xlu1 %v9285_v62, %s8657_s25 }
0x12ed   :  { %4738 = vrot.lane.b32.xlu1 %v9293_v28, %s8657_s25 }
0x1311   :  { %4163 = vmax.xlane.f32.xlu1 %v4162_v53 }
0x1322   :  { %4200 = vrot.lane.b32.xlu1 %v9289_v26, %s8655_s23 }
0x1326   :  { %4506 = vrot.lane.b32.xlu1 %v9289_v26, %s8656_s24 }
0x132a   :  { %4504 = vrot.lane.b32.xlu1 %v9289_v26, %s8657_s25 }
0x132e   :  { %4660 = vrot.lane.b32.xlu1 %v9295_v30, %s8657_s25  ;;  %s9775_s25 = smov 104  }
0x1352   :  { %v4161_v54 = vpop.xlane.xlu0 %4160 }
0x1353   :  { %v4169_v55 = vsub.f32 %v4153_v38, %v4161_v54 }
0x1355   :  { %v4174_v56 = vmul.f32 1.442695, %v4169_v55 }
0x1357   :  { %8508 = vpow2.f32 %v4174_v56 }
0x135d   :  { %v4167_v57 = vpop.xlane.xlu1 %4166 }
0x135e   :  { %v4171_v58 = vsub.f32 %v4155_v49, %v4167_v57 }
0x1360   :  { %v4178_v59 = vmul.f32 1.442695, %v4171_v58 }
0x1361   :  { %v8509_v60 = vpop.eup %8508  ;;  %v4277_v0 = vpop.permute.xlu1 %4276 }
0x1362   :  { %8510 = vpow2.f32 %v4178_v59  ;;  %8108 = vmatpush3.msra.mxu1 %v4277_v0  ;;  %v4183_v1 = vsel %vm193_vm2, %v8509_v60, 0.0 }
0x1363   :  { %4184 = vadd.xlane.f32.xlu0 %v4183_v1  ;;  %8117 = vmatprep.subr.mxu1 %v8651_v11 }
0x1365   :  { %v4585_v6 = vpop.permute.xlu1 %4584 }
0x1369   :  { %v4583_v7 = vpop.permute.xlu1 %4582 }
0x136c   :  { %v8511_v3 = vpop.eup %8510 }
0x136d   :  { %v4189_v4 = vsel %vm193_vm2, %v8511_v3, 0.0  ;;  %v4739_v2 = vpop.permute.xlu1 %4738 }
0x136e   :  { %4190 = vadd.xlane.f32.xlu0 %v4189_v4 }
0x1384   :  { %4428 = vrot.lane.b32.xlu0 %v9293_v28, %s8655_s23 }
0x1388   :  { %4740 = vrot.lane.b32.xlu0 %v9293_v28, %s8656_s24 }
0x139e   :  { %v4164_v8 = vpop.xlane.xlu1 %4163 }
0x139f   :  { %v4170_v61 = vsub.f32 %v9338_v52, %v4164_v8 }
0x13a1   :  { %v4176_v31 = vmul.f32 1.442695, %v4170_v61 }
0x13a2   :  { %v4201_v41 = vpop.permute.xlu1 %4200 }
0x13a3   :  { %8103 = vmatpush3.msra.mxu0 %v4201_v41 }
0x13a4   :  { %8112 = vmatprep.subr.mxu0 %v8651_v11 }
0x13a6   :  { %v4507_v52 = vpop.permute.xlu1 %4506 }
0x13a7   :  { %4157 = vmax.xlane.f32.xlu0 %v4156_v19 }
0x13f0   :  { %v4185_v16 = vpop.xlane.xlu0 %4184 }
0x13f1   :  { %8512 = vrcp.f32 %v4185_v16 }
0x13fb   :  { %v8513_v46 = vpop.eup %8512  ;;  %v4191_v12 = vpop.xlane.xlu0 %4190 }
0x13fc   :  { %v4197_v14 = vmul.f32 %v8513_v46, %v8509_v60  ;;  %8514 = vrcp.f32 %v4191_v12  ;;  %v4505_v60 = vpop.permute.xlu1 %4504 }
0x13fe   :  { %8110 = vmatmul.mubr.msk.f32.vlgmr.msra.gmra.mrb[42].mxu1 %vm193_vm2, %v4197_v14 }
0x13ff   :  { %v4429_v17 = vpop.permute.xlu0 %4428  ;;  %8119 = vmatprep.mubr.msk.f32.mxu1 %vm8652_vm1, %v8651_v11 }
0x1400   :  { %8118 = vmatpush3.msra.mxu1 %v4429_v17 }
0x1401   :  { %8127 = vmatprep.subr.mxu1 %v8651_v11 }
0x1403   :  { %v4741_v25 = vpop.permute.xlu0 %4740 }
0x1406   :  { %v8515_v21 = vpop.eup %8514 }
0x1407   :  { %v4199_v24 = vmul.f32 %v8515_v21, %v8511_v3  ;;  %v4661_v3 = vpop.permute.xlu1 %4660 }
0x1409   :  { %8120 = vmatmul.mubr.msk.f32.vlgmr.msra.gmra.mrb[44].mxu1 %vm193_vm2, %v4199_v24 }
0x140a   :  { %8128 = vmatpush3.xpose.msk.msra.mxu1 %vm193_vm2, %v4585_v6  ;;  %8129 = vmatprep.mubr.msk.f32.mxu1 %vm8652_vm1, %v8651_v11 }
0x140b   :  { %8137 = vmatprep.subr.mxu1 %v8651_v11 }
0x140d   :  { %8130 = vmatmul.mubr.msk.f32.vlgmr.msra.gmra.mrb[46].mxu1 %vm193_vm2, %v4583_v7 }
0x140e   :  { %8138 = vmatpush3.xpose.msk.msra.mxu1 %vm193_vm2, %v4741_v25  ;;  %8139 = vmatprep.mubr.msk.f32.mxu1 %vm8652_vm1, %v8651_v11 }
0x140f   :  { %8147 = vmatprep.subr.mxu1 %v8651_v11 }
0x1411   :  { %8140 = vmatmul.mubr.msk.f32.vlgmr.msra.gmra.mrb[48].mxu1 %vm193_vm2, %v4739_v2 }
0x1412   :  { %8149 = vmatprep.mubr.msk.f32.mxu1 %vm8652_vm1, %v8651_v11 }
0x1434   :  { %v4158_v27 = vpop.xlane.xlu0 %4157 }
0x1435   :  { %v4168_v29 = vsub.f32 %v4152_v18, %v4158_v27 }
0x1437   :  { %v4172_v32 = vmul.f32 1.442695, %v4168_v29 }
0x1439   :  { %8516 = vpow2.f32 %v4172_v32 }
0x143a   :  { %8518 = vpow2.f32 %v4176_v31 }
0x1443   :  { %v8517_v33 = vpop.eup %8516 }
0x1444   :  { %v4180_v63 = vsel %vm193_vm2, %v8517_v33, 0.0  ;;  %v8519_v5 = vpop.eup %8518 }
0x1445   :  { %4181 = vadd.xlane.f32.xlu0 %v4180_v63  ;;  %v4186_v35 = vsel %vm193_vm2, %v8519_v5, 0.0 }
0x1449   :  { %4187 = vadd.xlane.f32.xlu0 %v4186_v35 }
0x145f   :  { %4352 = vrot.lane.b32.xlu0 %v9295_v30, %s8655_s23 }
0x1463   :  { %4662 = vrot.lane.b32.xlu0 %v9295_v30, %s8656_s24 }
0x14d1   :  { %v9384_v37 = vpop.f32.mrb[42].mxu1 }
0x14d2   :  { %v4182_v38 = vpop.xlane.xlu0 %4181  ;;  %v8111_v15 = vpop.f32.mrb[43].mxu1 }
0x14d3   :  { %8520 = vrcp.f32 %v4182_v38 }
0x14d6   :  { %v4188_v20 = vpop.xlane.xlu0 %4187 }
0x14d7   :  { %8522 = vrcp.f32 %v4188_v20 }
0x14da   :  { %v4353_v45 = vpop.permute.xlu0 %4352 }
0x14dc   :  { %v9386_v39 = vpop.f32.mrb[44].mxu1 }
0x14dd   :  { %v8521_v42 = vpop.eup %8520  ;;  %v8121_v43 = vpop.f32.mrb[45].mxu1 }
0x14de   :  { %v4196_v44 = vmul.f32 %v8521_v42, %v8517_v33  ;;  %v4663_v1 = vpop.permute.xlu0 %4662 }
0x14e0   :  { %8105 = vmatmul.mubr.msk.f32.vlgmr.msra.gmra.mrb[50].mxu0 %vm193_vm2, %v4196_v44  ;;  %v4656_v48 = vpop.f32.mrb[46].mxu1 }
0x14e1   :  { %v8523_v49 = vpop.eup %8522  ;;  %8113 = vmatpush3.msra.mxu0 %v4353_v45  ;;  %v4817_v50 = vmul.f32 0.35355338, %v4656_v48  ;;  %v8131_v51 = vpop.f32.mrb[47].mxu1  ;;  %8114 = vmatprep.mubr.msk.f32.mxu0 %vm8652_vm1, %v8651_v11 }
0x14e2   :  { %v4198_v53 = vmul.f32 %v8523_v49, %v8519_v5  ;;  %8122 = vmatprep.subr.mxu0 %v8651_v11 }
0x14e3   :  { %v4821_v54 = vadd.f32 %v4817_v50, %v8846_v47 }
0x14e4   :  { %8115 = vmatmul.mubr.msk.f32.vlgmr.msra.gmra.mrb[52].mxu0 %vm193_vm2, %v4198_v53  ;;  %v4812_v55 = vpop.f32.mrb[48].mxu1 }
0x14e5   :  { %v4819_v56 = vmul.f32 0.35355338, %v4812_v55  ;;  %v8141_v57 = vpop.f32.mrb[49].mxu1  ;;  %v4827_v58 = vsel %vm193_vm2, %v4821_v54, -inf  ;;  %8124 = vmatprep.mubr.msk.f32.mxu0 %vm8652_vm1, %v8651_v11 }
0x14e6   :  { %4828 = vmax.xlane.f32.xlu0 %v4827_v58 }
0x14e7   :  { %v4823_v59 = vadd.f32 %v4819_v56, %v8843_v40 }
0x14e8   :  { %8123 = vmatpush3.xpose.msk.msra.mxu0 %vm193_vm2, %v4507_v52 }
0x14e9   :  { %v4833_v0 = vsel %vm193_vm2, %v4823_v59, -inf  ;;  %8132 = vmatprep.subr.mxu0 %v8651_v11 }
0x14ea   :  { %4834 = vmax.xlane.f32.xlu1 %v4833_v0 }
0x14eb   :  { %8125 = vmatmul.mubr.msk.f32.vlgmr.msra.gmra.mrb[54].mxu0 %vm193_vm2, %v4505_v60 }
0x14ec   :  { %8133 = vmatpush3.xpose.msk.msra.mxu0 %vm193_vm2, %v4663_v1  ;;  %8134 = vmatprep.mubr.msk.f32.mxu0 %vm8652_vm1, %v8651_v11 }
0x14ed   :  { %8142 = vmatprep.subr.mxu0 %v8651_v11 }
0x14ef   :  { %8135 = vmatmul.mubr.msk.f32.vlgmr.msra.gmra.mrb[56].mxu0 %vm193_vm2, %v4661_v3 }
0x14f0   :  { %8144 = vmatprep.mubr.msk.f32.mxu0 %vm8652_vm1, %v8651_v11 }
0x14fb   :  { %4944 = vrot.lane.b32.xlu1 %v9285_v62, %s8658_s26 }
0x14ff   :  { %5368 = vrot.lane.b32.xlu1 %v9289_v26, %s8659_s28 }
0x1503   :  { %5366 = vrot.lane.b32.xlu1 %v9289_v26, %s8660_s29 }
0x1507   :  { %5444 = vrot.lane.b32.xlu1 %v9285_v62, %s8660_s29 }
0x150b   :  { %5522 = vrot.lane.b32.xlu1 %v9295_v30, %s8660_s29 }
0x150f   :  { %5600 = vrot.lane.b32.xlu1 %v9293_v28, %s8660_s29 }
0x1573   :  { %v4829_v4 = vpop.xlane.xlu0 %4828 }
0x1574   :  { %v4837_v6 = vsub.f32 %v4821_v54, %v4829_v4 }
0x1576   :  { %v4842_v7 = vmul.f32 1.442695, %v4837_v6 }
0x1577   :  { %v4835_v2 = vpop.xlane.xlu1 %4834 }
0x1578   :  { %8524 = vpow2.f32 %v4842_v7  ;;  %v4839_v13 = vsub.f32 %v4823_v59, %v4835_v2 }
0x157a   :  { %v4846_v8 = vmul.f32 1.442695, %v4839_v13 }
0x157b   :  { %v4945_v18 = vpop.permute.xlu1 %4944 }
0x157c   :  { %8526 = vpow2.f32 %v4846_v8  ;;  %8148 = vmatpush3.msra.mxu1 %v4945_v18 }
0x157d   :  { %8157 = vmatprep.subr.mxu1 %v8651_v11 }
0x157f   :  { %v5369_v20 = vpop.permute.xlu1 %5368 }
0x1582   :  { %v8525_v41 = vpop.eup %8524 }
0x1583   :  { %v4851_v19 = vsel %vm193_vm2, %v8525_v41, 0.0  ;;  %v5367_v48 = vpop.permute.xlu1 %5366 }
0x1584   :  { %4852 = vadd.xlane.f32.xlu0 %v4851_v19 }
0x1586   :  { %v8527_v16 = vpop.eup %8526 }
0x1587   :  { %v4857_v46 = vsel %vm193_vm2, %v8527_v16, 0.0  ;;  %v5445_v50 = vpop.permute.xlu1 %5444 }
0x1588   :  { %4858 = vadd.xlane.f32.xlu0 %v4857_v46 }
0x158b   :  { %v5523_v52 = vpop.permute.xlu1 %5522 }
0x158f   :  { %v5601_v54 = vpop.permute.xlu1 %5600 }
0x159e   :  { %5096 = vrot.lane.b32.xlu0 %v9293_v28, %s8658_s26 }
0x15a2   :  { %5446 = vrot.lane.b32.xlu0 %v9285_v62, %s8659_s28 }
0x15a6   :  { %5524 = vrot.lane.b32.xlu0 %v9295_v30, %s8659_s28 }
0x15aa   :  { %5602 = vrot.lane.b32.xlu0 %v9293_v28, %s8659_s28 }
0x15b3   :  { %v9432_v12 = vpop.f32.mrb[50].mxu0 }
0x15b4   :  { %v8106_v14 = vpop.f32.mrb[51].mxu0 }
0x15b7   :  { %v9434_v17 = vpop.f32.mrb[52].mxu0 }
0x15b8   :  { %v8116_v21 = vpop.f32.mrb[53].mxu0 }
0x15be   :  { %v4578_v24 = vpop.f32.mrb[54].mxu0 }
0x15bf   :  { %v8126_v25 = vpop.f32.mrb[55].mxu0  ;;  %v4816_v61 = vmul.f32 0.35355338, %v4578_v24 }
0x15c1   :  { %v4820_v32 = vadd.f32 %v4816_v61, %v8839_v34 }
0x15c2   :  { %v4734_v27 = vpop.f32.mrb[56].mxu0 }
0x15c3   :  { %v4818_v29 = vmul.f32 0.35355338, %v4734_v27  ;;  %v8136_v31 = vpop.f32.mrb[57].mxu0  ;;  %v4824_v5 = vsel %vm193_vm2, %v4820_v32, -inf }
0x15c5   :  { %v4822_v33 = vadd.f32 %v4818_v29, %v8841_v36 }
0x15c7   :  { %v4830_v63 = vsel %vm193_vm2, %v4822_v33, -inf }
0x15c8   :  { %4831 = vmax.xlane.f32.xlu1 %v4830_v63 }
0x15c9   :  { %4825 = vmax.xlane.f32.xlu0 %v4824_v5 }
0x15d9   :  { %4868 = vrot.lane.b32.xlu1 %v9289_v26, %s8658_s26 }
0x1611   :  { %v4853_v35 = vpop.xlane.xlu0 %4852 }
0x1612   :  { %8528 = vrcp.f32 %v4853_v35 }
0x1615   :  { %v4859_v38 = vpop.xlane.xlu0 %4858 }
0x1616   :  { %8530 = vrcp.f32 %v4859_v38 }
0x1619   :  { %v5097_v43 = vpop.permute.xlu0 %5096 }
0x161c   :  { %v8529_v15 = vpop.eup %8528 }
0x161d   :  { %v4865_v42 = vmul.f32 %v8529_v15, %v8525_v41  ;;  %v5447_v49 = vpop.permute.xlu0 %5446 }
0x161f   :  { %8150 = vmatmul.mubr.msk.f32.vlgmr.msra.gmra.mrb[50].mxu1 %vm193_vm2, %v4865_v42 }
0x1620   :  { %v8531_v44 = vpop.eup %8530  ;;  %8158 = vmatpush3.msra.mxu1 %v5097_v43  ;;  %8159 = vmatprep.mubr.msk.f32.mxu1 %vm8652_vm1, %v8651_v11 }
0x1621   :  { %v4867_v45 = vmul.f32 %v8531_v44, %v8527_v16  ;;  %8178 = vmatprep.subr.mxu1 %v8651_v11  ;;  %v5525_v51 = vpop.permute.xlu0 %5524 }
0x1623   :  { %8160 = vmatmul.mubr.msk.f32.vlgmr.msra.gmra.mrb[52].mxu1 %vm193_vm2, %v4867_v45 }
0x1624   :  { %8180 = vmatprep.mubr.msk.f32.mxu1 %vm8652_vm1, %v8651_v11 }
0x1625   :  { %v5603_v53 = vpop.permute.xlu0 %5602 }
0x1627   :  { %8179 = vmatpush3.xpose.msk.msra.mxu1 %vm193_vm2, %v5369_v20 }
0x1628   :  { %8183 = vmatprep.subr.mxu1 %v8651_v11 }
0x162a   :  { %8181 = vmatmul.mubr.msk.f32.vlgmr.msra.gmra.mrb[54].mxu1 %vm193_vm2, %v5367_v48 }
0x162b   :  { %8184 = vmatpush3.xpose.msk.msra.mxu1 %vm193_vm2, %v5447_v49  ;;  %8185 = vmatprep.mubr.msk.f32.mxu1 %vm8652_vm1, %v8651_v11 }
0x162c   :  { %8188 = vmatprep.subr.mxu1 %v8651_v11 }
0x162e   :  { %8186 = vmatmul.mubr.msk.f32.vlgmr.msra.gmra.mrb[56].mxu1 %vm193_vm2, %v5445_v50  ;;  %v7499_v50 = vld [vmem:[%s9750_s4 + $0x28] sm:$0xff] }
0x162f   :  { %8189 = vmatpush3.xpose.msk.msra.mxu1 %vm193_vm2, %v5525_v51  ;;  %8190 = vmatprep.mubr.msk.f32.mxu1 %vm8652_vm1, %v8651_v11  ;;  %v7498_v51 = vld [vmem:[%s9750_s4 + $0x20] sm:$0xff] }
0x1630   :  { %8193 = vmatprep.subr.mxu1 %v8651_v11 }
0x1632   :  { %8191 = vmatmul.mubr.msk.f32.vlgmr.msra.gmra.mrb[58].mxu1 %vm193_vm2, %v5523_v52 }
0x1633   :  { %8194 = vmatpush3.xpose.msk.msra.mxu1 %vm193_vm2, %v5603_v53  ;;  %8195 = vmatprep.mubr.msk.f32.mxu1 %vm8652_vm1, %v8651_v11 }
0x1634   :  { %8203 = vmatprep.subr.mxu1 %v8651_v11 }
0x1636   :  { %8196 = vmatmul.mubr.msk.f32.vlgmr.msra.gmra.mrb[60].mxu1 %vm193_vm2, %v5601_v54 }
0x1637   :  { %8205 = vmatprep.mubr.msk.f32.mxu1 %vm8652_vm1, %v8651_v11 }
0x1655   :  { %v4832_v55 = vpop.xlane.xlu1 %4831 }
0x1656   :  { %v4838_v56 = vsub.f32 %v4822_v33, %v4832_v55  ;;  %v4826_v57 = vpop.xlane.xlu0 %4825 }
0x1657   :  { %v4836_v58 = vsub.f32 %v4820_v32, %v4826_v57 }
0x1658   :  { %v4844_v59 = vmul.f32 1.442695, %v4838_v56 }
0x1659   :  { %v4840_v60 = vmul.f32 1.442695, %v4836_v58  ;;  %v4869_v0 = vpop.permute.xlu1 %4868 }
0x165a   :  { %8143 = vmatpush3.msra.mxu0 %v4869_v0 }
0x165b   :  { %8532 = vpow2.f32 %v4840_v60  ;;  %8152 = vmatprep.subr.mxu0 %v8651_v11 }
0x165c   :  { %8534 = vpow2.f32 %v4844_v59 }
0x1665   :  { %v8533_v1 = vpop.eup %8532 }
0x1666   :  { %v4848_v3 = vsel %vm193_vm2, %v8533_v1, 0.0  ;;  %v8535_v4 = vpop.eup %8534 }
0x1667   :  { %4849 = vadd.xlane.f32.xlu0 %v4848_v3  ;;  %v4854_v6 = vsel %vm193_vm2, %v8535_v4, 0.0 }
0x166b   :  { %4855 = vadd.xlane.f32.xlu0 %v4854_v6 }
0x1681   :  { %5020 = vrot.lane.b32.xlu0 %v9295_v30, %s8658_s26  ;;  %s9776_s26 = smov 72  }
0x16f2   :  { %v9474_v7 = vpop.f32.mrb[50].mxu1 }
0x16f3   :  { %v8151_v2 = vpop.f32.mrb[51].mxu1 }
0x16f4   :  { %v4850_v13 = vpop.xlane.xlu0 %4849 }
0x16f5   :  { %8536 = vrcp.f32 %v4850_v13 }
0x16f6   :  { %v9476_v8 = vpop.f32.mrb[52].mxu1 }
0x16f7   :  { %v8161_v18 = vpop.f32.mrb[53].mxu1 }
0x16f8   :  { %v4856_v41 = vpop.xlane.xlu0 %4855 }
0x16f9   :  { %8538 = vrcp.f32 %v4856_v41 }
0x16fc   :  { %v5021_v61 = vpop.permute.xlu0 %5020 }
0x16fd   :  { %v5440_v19 = vpop.f32.mrb[54].mxu1 }
0x16fe   :  { %v5678_v16 = vmul.f32 0.35355338, %v5440_v19  ;;  %v8182_v46 = vpop.f32.mrb[55].mxu1 }
0x16ff   :  { %v8537_v14 = vpop.eup %8536 }
0x1700   :  { %v4864_v21 = vmul.f32 %v8537_v14, %v8533_v1  ;;  %v5682_v24 = vadd.f32 %v5678_v16, %v8839_v34 }
0x1701   :  { %v5518_v25 = vpop.f32.mrb[56].mxu1 }
0x1702   :  { %v5679_v27 = vmul.f32 0.35355338, %v5518_v25  ;;  %v8187_v29 = vpop.f32.mrb[57].mxu1  ;;  %v5686_v31 = vsel %vm193_vm2, %v5682_v24, -inf  ;;  %8145 = vmatmul.mubr.msk.f32.vlgmr.msra.gmra.mrb[58].mxu0 %vm193_vm2, %v4864_v21 }
0x1703   :  { %v8539_v32 = vpop.eup %8538  ;;  %5687 = vmax.xlane.f32.xlu1 %v5686_v31  ;;  %8153 = vmatpush3.msra.mxu0 %v5021_v61 }
0x1704   :  { %v4866_v33 = vmul.f32 %v8539_v32, %v8535_v4  ;;  %v5683_v63 = vadd.f32 %v5679_v27, %v8846_v47  ;;  %8154 = vmatprep.mubr.msk.f32.mxu0 %vm8652_vm1, %v8651_v11  ;;  %8162 = vmatprep.subr.mxu0 %v7499_v50 }
0x1705   :  { %v5596_v5 = vpop.f32.mrb[58].mxu1 }
0x1706   :  { %v5680_v35 = vmul.f32 0.35355338, %v5596_v5  ;;  %v8192_v38 = vpop.f32.mrb[59].mxu1  ;;  %v5689_v15 = vsel %vm193_vm2, %v5683_v63, -inf  ;;  %8155 = vmatmul.mubr.msk.f32.vlgmr.msra.gmra.mrb[60].mxu0 %vm193_vm2, %v4866_v33 }
0x1707   :  { %5690 = vmax.xlane.f32.xlu0 %v5689_v15  ;;  %8163 = vmatpush3.msra.mxu0 %v7499_v50 }
0x1708   :  { %v5684_v20 = vadd.f32 %v5680_v35, %v8841_v36  ;;  %8170 = vmatprep.subr.mxu0 %v7498_v51 }
0x1709   :  { %v5674_v42 = vpop.f32.mrb[60].mxu1 }
0x170a   :  { %v5681_v43 = vmul.f32 0.35355338, %v5674_v42  ;;  %v8197_v44 = vpop.f32.mrb[61].mxu1  ;;  %v5692_v45 = vsel %vm193_vm2, %v5684_v20, -inf }
0x170b   :  { %5693 = vmax.xlane.f32.xlu1 %v5692_v45 }
0x170c   :  { %v5685_v48 = vadd.f32 %v5681_v43, %v8843_v40 }
0x170e   :  { %v5695_v49 = vsel %vm193_vm2, %v5685_v48, -inf }
0x170f   :  { %5696 = vmax.xlane.f32.xlu0 %v5695_v49 }
0x171c   :  { %5730 = vrot.lane.b32.xlu1 %v9289_v26, %s8661_s30 }
0x1790   :  { %v5688_v52 = vpop.xlane.xlu1 %5687 }
0x1791   :  { %v5698_v53 = vsub.f32 %v5682_v24, %v5688_v52 }
0x1793   :  { %v5702_v54 = vmul.f32 1.442695, %v5698_v53 }
0x1794   :  { %v5691_v55 = vpop.xlane.xlu0 %5690 }
0x1795   :  { %8540 = vpow2.f32 %v5702_v54  ;;  %v5699_v56 = vsub.f32 %v5683_v63, %v5691_v55 }
0x1797   :  { %v5704_v57 = vmul.f32 1.442695, %v5699_v56 }
0x1798   :  { %v5694_v58 = vpop.xlane.xlu1 %5693 }
0x1799   :  { %8542 = vpow2.f32 %v5704_v57  ;;  %v5700_v59 = vsub.f32 %v5684_v20, %v5694_v58 }
0x179b   :  { %v5706_v60 = vmul.f32 1.442695, %v5700_v59 }
0x179c   :  { %v5697_v0 = vpop.xlane.xlu0 %5696  ;;  %v5731_v25 = vpop.permute.xlu1 %5730 }
0x179d   :  { %8544 = vpow2.f32 %v5706_v60  ;;  %v5701_v1 = vsub.f32 %v5685_v48, %v5697_v0 }
0x179f   :  { %v8541_v3 = vpop.eup %8540  ;;  %v5708_v4 = vmul.f32 1.442695, %v5701_v1 }
0x17a0   :  { %v5710_v6 = vsel %vm193_vm2, %v8541_v3, 0.0 }
0x17a1   :  { %8546 = vpow2.f32 %v5708_v4  ;;  %5711 = vadd.xlane.f32.xlu1 %v5710_v6 }
0x17a3   :  { %v8543_v2 = vpop.eup %8542 }
0x17a4   :  { %v5713_v13 = vsel %vm193_vm2, %v8543_v2, 0.0 }
0x17a5   :  { %5714 = vadd.xlane.f32.xlu0 %v5713_v13 }
0x17a7   :  { %v8545_v18 = vpop.eup %8544 }
0x17a8   :  { %v5716_v41 = vsel %vm193_vm2, %v8545_v18, 0.0 }
0x17a9   :  { %5717 = vadd.xlane.f32.xlu1 %v5716_v41 }
0x17ab   :  { %v9501_v19 = vpop.eup %8546 }
0x17ac   :  { %v5719_v16 = vsel %vm193_vm2, %v9501_v19, 0.0 }
0x17ad   :  { %5720 = vadd.xlane.f32.xlu0 %v5719_v16 }
0x17ba   :  { %5882 = vrot.lane.b32.xlu1 %v9295_v30, %s8661_s30 }
0x17be   :  { %5958 = vrot.lane.b32.xlu1 %v9293_v28, %s8661_s30 }
0x17c2   :  { %6135 = vrot.lane.b32.xlu1 %v9289_v26, %s9775_s25 }
0x17c3   :  { %5806 = vrot.lane.b32.xlu0 %v9285_v62, %s8661_s30  ;;  %s9777_s30 = smov 40  }
0x17c6   :  { %6213 = vrot.lane.b32.xlu1 %v9285_v62, %s9775_s25 }
0x17c7   :  { %6137 = vrot.lane.b32.xlu0 %v9289_v26, %s9776_s26 }
0x17ca   :  { %6371 = vrot.lane.b32.xlu1 %v9293_v28, %s9776_s26 }
0x17cb   :  { %6215 = vrot.lane.b32.xlu0 %v9285_v62, %s9776_s26 }
0x17ce   :  { %6369 = vrot.lane.b32.xlu1 %v9293_v28, %s9775_s25 }
0x17cf   :  { %6293 = vrot.lane.b32.xlu0 %v9295_v30, %s9776_s26 }
0x17d3   :  { %6291 = vrot.lane.b32.xlu0 %v9295_v30, %s9775_s25 }
0x17d5   :  { %v4940_v46 = vpop.f32.mrb[58].mxu0 }
0x17d6   :  { %v8146_v14 = vpop.f32.mrb[59].mxu0  ;;  %8164 = vmatprep.mubr.msk.f32.mxu0 %vm193_vm2, %v4940_v46 }
0x17d7   :  { %8165 = vmatmul.mubr.msk.f32.vlgmr.msra.gmra.mrb[62].mxu0 %vm193_vm2, %v9474_v7 }
0x17d8   :  { %8171 = vmatpush3.msra.mxu0 %v7498_v51 }
0x17d9   :  { %v5092_v21 = vpop.f32.mrb[60].mxu0  ;;  %8198 = vmatprep.subr.mxu0 %v8651_v11 }
0x17da   :  { %v8156_v24 = vpop.f32.mrb[61].mxu0  ;;  %8167 = vmatprep.mubr.msk.f32.mxu0 %vm193_vm2, %v5092_v21 }
0x17db   :  { %8168 = vmatmul.mubr.msk.f32.gmra.mrb[64].mxu0 %vm193_vm2, %v9476_v8 }
0x17dc   :  { %8172 = vmatprep.mubr.msk.f32.mxu0 %vm193_vm2, %v9432_v12 }
0x17df   :  { %8173 = vmatmul.mubr.msk.f32.vlgmr.msra.gmra.mrb[62].mxu0 %vm193_vm2, %v9384_v37 }
0x17e0   :  { %8199 = vmatpush3.msra.mxu0 %v5731_v25  ;;  %8175 = vmatprep.mubr.msk.f32.mxu0 %vm193_vm2, %v9434_v17  ;;  %v7500_v17 = vld [vmem:[%s9750_s4 + $0x30] sm:$0xff] }
0x17e1   :  { %8208 = vmatprep.subr.mxu0 %v8651_v11 }
0x17e3   :  { %8176 = vmatmul.mubr.msk.f32.gmra.mrb[64].mxu0 %vm193_vm2, %v9386_v39 }
0x17e4   :  { %8200 = vmatprep.mubr.msk.f32.mxu0 %vm8652_vm1, %v8651_v11 }
0x182e   :  { %v5712_v7 = vpop.xlane.xlu1 %5711 }
0x182f   :  { %8548 = vrcp.f32 %v5712_v7 }
0x1832   :  { %v5715_v8 = vpop.xlane.xlu0 %5714 }
0x1833   :  { %8550 = vrcp.f32 %v5715_v8 }
0x1836   :  { %v5718_v12 = vpop.xlane.xlu1 %5717 }
0x1837   :  { %8552 = vrcp.f32 %v5718_v12 }
0x1839   :  { %v8549_v61 = vpop.eup %8548 }
0x183a   :  { %v5726_v37 = vmul.f32 %v8549_v61, %v8541_v3  ;;  %v5721_v27 = vpop.xlane.xlu0 %5720  ;;  %v5883_v29 = vpop.permute.xlu1 %5882 }
0x183b   :  { %8554 = vrcp.f32 %v5721_v27 }
0x183c   :  { %8201 = vmatmul.mubr.msk.f32.vlgmr.msra.gmra.mrb[66].mxu0 %vm193_vm2, %v5726_v37 }
0x183d   :  { %v8551_v39 = vpop.eup %8550  ;;  %8209 = vmatpush3.msra.mxu0 %v5883_v29  ;;  %8210 = vmatprep.mubr.msk.f32.mxu0 %vm8652_vm1, %v8651_v11 }
0x183e   :  { %v5727_v31 = vmul.f32 %v8551_v39, %v8543_v2  ;;  %v5807_v32 = vpop.permute.xlu0 %5806  ;;  %v5959_v33 = vpop.permute.xlu1 %5958  ;;  %8218 = vmatprep.subr.mxu0 %v7500_v17 }
0x183f   :  { %8204 = vmatpush3.msra.mxu1 %v5807_v32 }
0x1840   :  { %8206 = vmatmul.mubr.msk.f32.vlgmr.msra.gmra.mrb[62].mxu1 %vm193_vm2, %v5727_v31  ;;  %8213 = vmatprep.subr.mxu1 %v8651_v11 }
0x1841   :  { %v8553_v63 = vpop.eup %8552  ;;  %8214 = vmatpush3.msra.mxu1 %v5959_v33  ;;  %8215 = vmatprep.mubr.msk.f32.mxu1 %vm8652_vm1, %v8651_v11 }
0x1842   :  { %v5728_v5 = vmul.f32 %v8553_v63, %v8545_v18  ;;  %v6136_v35 = vpop.permute.xlu1 %6135  ;;  %8226 = vmatprep.subr.mxu1 %v8651_v11  ;;  %v6138_v20 = vpop.permute.xlu0 %6137 }
0x1844   :  { %8211 = vmatmul.mubr.msk.f32.vlgmr.msra.gmra.mrb[68].mxu0 %vm193_vm2, %v5728_v5 }
0x1845   :  { %v8555_v38 = vpop.eup %8554  ;;  %8219 = vmatpush3.msra.mxu0 %v7500_v17 }
0x1846   :  { %v5729_v15 = vmul.f32 %v8555_v38, %v9501_v19  ;;  %8236 = vmatprep.subr.mxu0 %v8651_v11  ;;  %v6214_v42 = vpop.permute.xlu1 %6213  ;;  %v6216_v43 = vpop.permute.xlu0 %6215 }
0x1848   :  { %8216 = vmatmul.mubr.msk.f32.vlgmr.msra.gmra.mrb[64].mxu1 %vm193_vm2, %v5729_v15 }
0x1849   :  { %8227 = vmatpush3.xpose.msk.msra.mxu1 %vm193_vm2, %v6138_v20  ;;  %8228 = vmatprep.mubr.msk.f32.mxu1 %vm8652_vm1, %v8651_v11 }
0x184a   :  { %8231 = vmatprep.subr.mxu1 %v8651_v11  ;;  %v6372_v44 = vpop.permute.xlu1 %6371  ;;  %v6294_v51 = vpop.permute.xlu0 %6293 }
0x184c   :  { %8229 = vmatmul.mubr.msk.f32.vlgmr.msra.gmra.mrb[66].mxu1 %vm193_vm2, %v6136_v35 }
0x184d   :  { %8232 = vmatpush3.xpose.msk.msra.mxu1 %vm193_vm2, %v6216_v43  ;;  %8233 = vmatprep.mubr.msk.f32.mxu1 %vm8652_vm1, %v8651_v11 }
0x184e   :  { %8241 = vmatprep.subr.mxu1 %v8651_v11  ;;  %v6370_v45 = vpop.permute.xlu1 %6369  ;;  %v6292_v57 = vpop.permute.xlu0 %6291 }
0x1850   :  { %8234 = vmatmul.mubr.msk.f32.vlgmr.msra.gmra.mrb[68].mxu1 %vm193_vm2, %v6214_v42 }
0x1851   :  { %8242 = vmatpush3.xpose.msk.msra.mxu1 %vm193_vm2, %v6372_v44  ;;  %8243 = vmatprep.mubr.msk.f32.mxu1 %vm8652_vm1, %v8651_v11  ;;  %v7501_v44 = vld [vmem:[%s9750_s4 + $0x38] sm:$0xff] }
0x1852   :  { %8251 = vmatprep.subr.mxu1 %v8651_v11 }
0x1854   :  { %8244 = vmatmul.mubr.msk.f32.vlgmr.msra.gmra.mrb[70].mxu1 %vm193_vm2, %v6370_v45 }
0x1855   :  { %8253 = vmatprep.mubr.msk.f32.mxu1 %vm8652_vm1, %v8651_v11 }
0x190f   :  { %v5802_v48 = vpop.f32.mrb[66].mxu0 }
0x1910   :  { %v8202_v49 = vpop.f32.mrb[67].mxu0  ;;  %8220 = vmatprep.mubr.msk.f32.mxu0 %vm193_vm2, %v5802_v48 }
0x1913   :  { %v5878_v50 = vpop.f32.mrb[62].mxu1 }
0x1914   :  { %v8207_v52 = vpop.f32.mrb[63].mxu1  ;;  %8221 = vmatmul.mubr.msk.f32.vlgmr.msra.gmra.mrb[62].mxu0 %vm193_vm2, %v5878_v50 }
0x1915   :  { %8237 = vmatpush3.xpose.msk.msra.mxu0 %vm193_vm2, %v6294_v51 }
0x1916   :  { %8246 = vmatprep.subr.mxu0 %v8651_v11 }
0x1917   :  { %v5954_v53 = vpop.f32.mrb[68].mxu0 }
0x1918   :  { %v8212_v54 = vpop.f32.mrb[69].mxu0  ;;  %8223 = vmatprep.mubr.msk.f32.mxu0 %vm193_vm2, %v5954_v53 }
0x191b   :  { %v6030_v55 = vpop.f32.mrb[64].mxu1 }
0x191c   :  { %v8217_v56 = vpop.f32.mrb[65].mxu1  ;;  %8224 = vmatmul.mubr.msk.f32.gmra.mrb[64].mxu0 %vm193_vm2, %v6030_v55 }
0x191d   :  { %8238 = vmatprep.mubr.msk.f32.mxu0 %vm8652_vm1, %v8651_v11 }
0x191f   :  { %v6209_v58 = vpop.f32.mrb[66].mxu1 }
0x1920   :  { %v6447_v59 = vmul.f32 0.35355338, %v6209_v58  ;;  %v8230_v60 = vpop.f32.mrb[67].mxu1  ;;  %8239 = vmatmul.mubr.msk.f32.vlgmr.msra.gmra.mrb[70].mxu0 %vm193_vm2, %v6292_v57 }
0x1921   :  { %8248 = vmatprep.mubr.msk.f32.mxu0 %vm8652_vm1, %v8651_v11 }
0x1922   :  { %v6451_v0 = vadd.f32 %v6447_v59, %v8839_v34 }
0x1923   :  { %v6287_v1 = vpop.f32.mrb[68].mxu1 }
0x1924   :  { %v6448_v3 = vmul.f32 0.35355338, %v6287_v1  ;;  %v8235_v4 = vpop.f32.mrb[69].mxu1  ;;  %v6455_v6 = vsel %vm193_vm2, %v6451_v0, -inf }
0x1925   :  { %6456 = vmax.xlane.f32.xlu0 %v6455_v6 }
0x1926   :  { %v6452_v2 = vadd.f32 %v6448_v3, %v8846_v47  ;;  %v7567_v3 = vld [vmem:[%s9751_s5 + $0x1] ss:$0 sm:$0xff] }
0x1927   :  { %v6443_v13 = vpop.f32.mrb[70].mxu1 }
0x1928   :  { %v8245_v18 = vpop.f32.mrb[71].mxu1  ;;  %v6458_v41 = vsel %vm193_vm2, %v6452_v2, -inf  ;;  %v6450_v7 = vmul.f32 0.35355338, %v6443_v13 }
0x1929   :  { %6459 = vmax.xlane.f32.xlu1 %v6458_v41 }
0x192a   :  { %v6454_v37 = vadd.f32 %v6450_v7, %v8843_v40 }
0x19b2   :  { %v6457_v19 = vpop.xlane.xlu0 %6456 }
0x19b3   :  { %v6467_v16 = vsub.f32 %v6451_v0, %v6457_v19 }
0x19b5   :  { %v6471_v46 = vmul.f32 1.442695, %v6467_v16 }
0x19b6   :  { %v6460_v47 = vpop.xlane.xlu1 %6459 }
0x19b7   :  { %8556 = vpow2.f32 %v6471_v46  ;;  %v6468_v21 = vsub.f32 %v6452_v2, %v6460_v47 }
0x19b9   :  { %v6473_v24 = vmul.f32 1.442695, %v6468_v21 }
0x19bb   :  { %8558 = vpow2.f32 %v6473_v24 }
0x19c1   :  { %v8557_v14 = vpop.eup %8556 }
0x19c2   :  { %v6479_v34 = vsel %vm193_vm2, %v8557_v14, 0.0 }
0x19c3   :  { %6480 = vadd.xlane.f32.xlu1 %v6479_v34 }
0x19c5   :  { %v8559_v29 = vpop.eup %8558 }
0x19d4   :  { %6499 = vrot.lane.b32.xlu1 %v9289_v26, %s9777_s30  ;;  %v6464_v26 = vsel %vm193_vm2, %v6454_v37, -inf }
0x19d8   :  { %6651 = vrot.lane.b32.xlu1 %v9295_v30, %s9777_s30  ;;  %v6482_v30 = vsel %vm193_vm2, %v8559_v29, 0.0 }
0x19f3   :  { %v6365_v25 = vpop.f32.mrb[70].mxu0 }
0x19f4   :  { %v6449_v8 = vmul.f32 0.35355338, %v6365_v25  ;;  %v8240_v12 = vpop.f32.mrb[71].mxu0 }
0x19f6   :  { %v6453_v61 = vadd.f32 %v6449_v8, %v8841_v36 }
0x19f8   :  { %v6461_v27 = vsel %vm193_vm2, %v6453_v61, -inf }
0x19f9   :  { %6462 = vmax.xlane.f32.xlu0 %v6461_v27 }
0x19fd   :  { %6465 = vmax.xlane.f32.xlu0 %v6464_v26 }
0x1a01   :  { %6483 = vadd.xlane.f32.xlu0 %v6482_v30 }
0x1a50   :  { %v6481_v17 = vpop.xlane.xlu1 %6480 }
0x1a51   :  { %8560 = vrcp.f32 %v6481_v17 }
0x1a54   :  { %v6500_v39 = vpop.permute.xlu1 %6499 }
0x1a55   :  { %8247 = vmatpush3.msra.mxu0 %v6500_v39 }
0x1a56   :  { %8256 = vmatprep.subr.mxu0 %v8651_v11 }
0x1a58   :  { %v6652_v32 = vpop.permute.xlu1 %6651 }
0x1a5b   :  { %v8561_v31 = vpop.eup %8560 }
0x1a5c   :  { %v6495_v36 = vmul.f32 %v8561_v31, %v8557_v14 }
0x1a5e   :  { %8249 = vmatmul.mubr.msk.f32.vlgmr.msra.gmra.mrb[72].mxu0 %vm193_vm2, %v6495_v36 }
0x1a5f   :  { %8257 = vmatpush3.msra.mxu0 %v6652_v32  ;;  %8258 = vmatprep.mubr.msk.f32.mxu0 %vm8652_vm1, %v8651_v11 }
0x1a60   :  { %8266 = vmatprep.subr.mxu0 %v7501_v44 }
0x1a86   :  { %v6463_v40 = vpop.xlane.xlu0 %6462 }
0x1a87   :  { %v6469_v33 = vsub.f32 %v6453_v61, %v6463_v40 }
0x1a89   :  { %v6475_v63 = vmul.f32 1.442695, %v6469_v33 }
0x1a8a   :  { %v6466_v5 = vpop.xlane.xlu0 %6465 }
0x1a8b   :  { %8562 = vpow2.f32 %v6475_v63  ;;  %v6470_v35 = vsub.f32 %v6454_v37, %v6466_v5  ;;  %v7572_v5 = vld [vmem:[%s9754_s8 + $0x20] sm:$0xff] }
0x1a8d   :  { %v6477_v38 = vmul.f32 1.442695, %v6470_v35  ;;  %v7573_v35 = vld [vmem:[%s9754_s8 + $0x28] sm:$0xff] }
0x1a8e   :  { %v6484_v45 = vpop.xlane.xlu0 %6483 }
0x1a8f   :  { %8564 = vpow2.f32 %v6477_v38  ;;  %v8350_v38 = vpack.c.bf16 %v7573_v35, %v7572_v5 }
0x1a90   :  { %8566 = vrcp.f32 %v6484_v45 }
0x1a95   :  { %v8563_v15 = vpop.eup %8562 }
0x1a96   :  { %v6485_v20 = vsel %vm193_vm2, %v8563_v15, 0.0 }
0x1a97   :  { %6486 = vadd.xlane.f32.xlu1 %v6485_v20  ;;  %v7575_v20 = vld [vmem:[%s9754_s8 + $0x38] sm:$0xff] }
0x1a99   :  { %v8565_v42 = vpop.eup %8564 }
0x1a9a   :  { %v6488_v43 = vsel %vm193_vm2, %v8565_v42, 0.0  ;;  %v8567_v50 = vpop.eup %8566 }
0x1a9b   :  { %6489 = vadd.xlane.f32.xlu0 %v6488_v43  ;;  %v6496_v51 = vmul.f32 %v8567_v50, %v8559_v29 }
0x1aa8   :  { %6727 = vrot.lane.b32.xlu1 %v9293_v28, %s9777_s30 }
0x1ab1   :  { %6575 = vrot.lane.b32.xlu0 %v9285_v62, %s9777_s30 }
0x1b24   :  { %v6487_v48 = vpop.xlane.xlu1 %6486 }
0x1b25   :  { %8568 = vrcp.f32 %v6487_v48 }
0x1b28   :  { %v6490_v49 = vpop.xlane.xlu0 %6489  ;;  %v6728_v53 = vpop.permute.xlu1 %6727 }
0x1b29   :  { %8570 = vrcp.f32 %v6490_v49 }
0x1b2c   :  { %v6576_v52 = vpop.permute.xlu0 %6575 }
0x1b2d   :  { %8252 = vmatpush3.msra.mxu1 %v6576_v52 }
0x1b2e   :  { %8254 = vmatmul.mubr.msk.f32.vlgmr.msra.gmra.mrb[72].mxu1 %vm193_vm2, %v6496_v51  ;;  %8261 = vmatprep.subr.mxu1 %v8651_v11 }
0x1b2f   :  { %v8569_v62 = vpop.eup %8568  ;;  %8262 = vmatpush3.msra.mxu1 %v6728_v53  ;;  %8263 = vmatprep.mubr.msk.f32.mxu1 %vm8652_vm1, %v8651_v11 }
0x1b30   :  { %v6497_v28 = vmul.f32 %v8569_v62, %v8563_v15  ;;  %8351 = vmatprep.subr.bf16.mxu1 %v8350_v38  ;;  %v7574_v15 = vld [vmem:[%s9754_s8 + $0x30] sm:$0xff] }
0x1b31   :  { %v6571_v54 = vpop.f32.mrb[72].mxu0 }
0x1b32   :  { %v8250_v55 = vpop.f32.mrb[73].mxu0  ;;  %8259 = vmatmul.mubr.msk.f32.vlgmr.msra.gmra.mrb[74].mxu0 %vm193_vm2, %v6497_v28 }
0x1b33   :  { %v8571_v56 = vpop.eup %8570  ;;  %8268 = vmatprep.mubr.msk.f32.mxu0 %vm193_vm2, %v6571_v54  ;;  %8267 = vmatpush3.msra.mxu0 %v7501_v44  ;;  %v7570_v55 = vld [vmem:[%s9752_s6 + $0x1] ss:$0 sm:$0xff] }
0x1b34   :  { %v6498_v57 = vmul.f32 %v8571_v56, %v8565_v42  ;;  %v8354_v42 = vpack.c.bf16 %v7575_v20, %v7574_v15 }
0x1b36   :  { %8264 = vmatmul.mubr.msk.f32.vlgmr.msra.gmra.mrb[74].mxu1 %vm193_vm2, %v6498_v57 }
0x1b37   :  { %8353 = vmatpush3.bf16.msra.mxu1 %v8350_v38 }
0x1b38   :  { %8355 = vmatprep.subr.bf16.mxu1 %v8354_v42 }
0x1b3b   :  { %8357 = vmatpush3.bf16.msra.mxu1 %v8354_v42 }
0x1c01   :  { %v6647_v58 = vpop.f32.mrb[72].mxu1 }
0x1c02   :  { %v8255_v59 = vpop.f32.mrb[73].mxu1  ;;  %8269 = vmatmul.mubr.msk.f32.vlgmr.msra.gmra.mrb[62].mxu0 %vm193_vm2, %v6647_v58 }
0x1c05   :  { %v6723_v60 = vpop.f32.mrb[74].mxu0 }
0x1c06   :  { %v8260_v0 = vpop.f32.mrb[75].mxu0  ;;  %8271 = vmatprep.mubr.msk.f32.mxu0 %vm193_vm2, %v6723_v60  ;;  %v7571_v60 = vld [vmem:[%s9753_s7 + $0x1] ss:$0 sm:$0xff] }
0x1c09   :  { %v6799_v11 = vpop.f32.mrb[74].mxu1 }
0x1c0a   :  { %v8265_v1 = vpop.f32.mrb[75].mxu1  ;;  %8272 = vmatmul.mubr.msk.f32.gmra.mrb[64].mxu0 %vm193_vm2, %v6799_v11 }
0x1cd5   :  { %v8270_v4 = vpop.f32.mrb[62].mxu0 }
0x1cd6   :  { %v6913_v6 = vadd.f32 %v8270_v4, %v7567_v3  ;;  %v6881_v2 = vpop.f32.mrb[63].mxu0 }
0x1cd7   :  { %v6912_v13 = vadd.f32 %v7567_v3, %v6881_v2 }
0x1cd8   :  { %v6917_v18 = vadd.f32 %v6913_v6, %v9266_v10 }
0x1cd9   :  { %v6916_v41 = vadd.f32 %v6912_v13, %v9264_v9 }
0x1cda   :  { %v6927_v19 = vsel %vm88_vm0, %v6917_v18, 0.0 }
0x1cdb   :  { %6928 = vadd.xlane.f32.xlu1 %v6927_v19  ;;  %v6924_v16 = vsel %vm88_vm0, %v6916_v41, 0.0 }
0x1cdc   :  { %6925 = vadd.xlane.f32.xlu0 %v6924_v16 }
0x1cdd   :  { %v8273_v46 = vpop.f32.mrb[64].mxu0 }
0x1cde   :  { %v6891_v14 = vpop.f32.mrb[65].mxu0  ;;  %v6915_v34 = vadd.f32 %v8273_v46, %v7567_v3  ;;  %v7582_v46 = vld [vmem:[%s9756_s10 + $0x40] sm:$0xff] }
0x1cdf   :  { %v6914_v47 = vadd.f32 %v7567_v3, %v6891_v14  ;;  %v7583_v14 = vld [vmem:[%s9756_s10 + $0x48] sm:$0xff] }
0x1ce0   :  { %v6919_v24 = vadd.f32 %v6915_v34, %v9274_v23  ;;  %v8358_v34 = vpack.c.bf16 %v7583_v14, %v7582_v46 }
0x1ce1   :  { %v6918_v21 = vadd.f32 %v6914_v47, %v9272_v22  ;;  %v7584_v47 = vld [vmem:[%s9756_s10 + $0x50] sm:$0xff] }
0x1ce2   :  { %v6933_v10 = vsel %vm88_vm0, %v6919_v24, 0.0  ;;  %8359 = vmatprep.subr.bf16.mxu0 %v8358_v34 }
0x1ce3   :  { %v6930_v25 = vsel %vm88_vm0, %v6918_v21, 0.0  ;;  %8361 = vmatpush3.bf16.msra.mxu0 %v8358_v34 }
0x1ce4   :  { %6931 = vadd.xlane.f32.xlu0 %v6930_v25  ;;  %v7586_v25 = vld [vmem:[%s9756_s10 + $0x60] sm:$0xff] }
0x1ce8   :  { %6934 = vadd.xlane.f32.xlu0 %v6933_v10  ;;  %v7587_v10 = vld [vmem:[%s9756_s10 + $0x68] sm:$0xff] }
0x1d68   :  { %v6929_v9 = vpop.xlane.xlu1 %6928 }
0x1d69   :  { %v6937_v7 = vmul.f32 0.03125, %v6929_v9  ;;  %v6926_v8 = vpop.xlane.xlu0 %6925  ;;  %v8366_v9 = vpack.c.bf16 %v7587_v10, %v7586_v25 }
0x1d6a   :  { %v6936_v12 = vmul.f32 0.03125, %v6926_v8  ;;  %v7589_v8 = vld [vmem:[%s9756_s10 + $0x78] sm:$0xff] }
0x1d6b   :  { %v6941_v61 = vsub.f32 %v6917_v18, %v6937_v7  ;;  %v7588_v7 = vld [vmem:[%s9756_s10 + $0x70] sm:$0xff] }
0x1d6c   :  { %v6940_v37 = vsub.f32 %v6916_v41, %v6936_v12  ;;  %v8370_v12 = vpack.c.bf16 %v7589_v8, %v7588_v7 }
0x1d6d   :  { %v6945_v27 = vmul.f32 %v6941_v61, %v6941_v61 }
0x1d6e   :  { %v6944_v26 = vmul.f32 %v6940_v37, %v6940_v37 }
0x1d6f   :  { %v6951_v29 = vsel %vm88_vm0, %v6945_v27, 0.0 }
0x1d70   :  { %6952 = vadd.xlane.f32.xlu0 %v6951_v29  ;;  %v6948_v22 = vsel %vm88_vm0, %v6944_v26, 0.0 }
0x1d71   :  { %6949 = vadd.xlane.f32.xlu1 %v6948_v22  ;;  %v6932_v23 = vpop.xlane.xlu0 %6931 }
0x1d72   :  { %v6938_v30 = vmul.f32 0.03125, %v6932_v23 }
0x1d74   :  { %v6942_v17 = vsub.f32 %v6918_v21, %v6938_v30  ;;  %v7585_v21 = vld [vmem:[%s9756_s10 + $0x58] sm:$0xff] }
0x1d75   :  { %v6935_v39 = vpop.xlane.xlu0 %6934 }
0x1d76   :  { %v6939_v31 = vmul.f32 0.03125, %v6935_v39  ;;  %v6946_v36 = vmul.f32 %v6942_v17, %v6942_v17 }
0x1d78   :  { %v6943_v32 = vsub.f32 %v6919_v24, %v6939_v31  ;;  %v6954_v40 = vsel %vm88_vm0, %v6946_v36, 0.0  ;;  %v8362_v24 = vpack.c.bf16 %v7585_v21, %v7584_v47 }
0x1d79   :  { %6955 = vadd.xlane.f32.xlu1 %v6954_v40 }
0x1d7a   :  { %v6947_v33 = vmul.f32 %v6943_v32, %v6943_v32  ;;  %8363 = vmatprep.subr.bf16.mxu0 %v8362_v24 }
0x1d7b   :  { %8365 = vmatpush3.bf16.msra.mxu0 %v8362_v24 }
0x1d7c   :  { %v6957_v63 = vsel %vm88_vm0, %v6947_v33, 0.0  ;;  %8367 = vmatprep.subr.bf16.mxu0 %v8366_v9 }
0x1d7d   :  { %6958 = vadd.xlane.f32.xlu0 %v6957_v63 }
0x1d7f   :  { %8369 = vmatpush3.bf16.msra.mxu0 %v8366_v9 }
0x1d80   :  { %8371 = vmatprep.subr.bf16.mxu0 %v8370_v12 }
0x1d83   :  { %8373 = vmatpush3.bf16.msra.mxu0 %v8370_v12 }
0x1dfd   :  { %v6953_v43 = vpop.xlane.xlu0 %6952 }
0x1dfe   :  { %v6961_v44 = vmul.f32 0.03125, %v6953_v43  ;;  %v6950_v45 = vpop.xlane.xlu1 %6949 }
0x1dff   :  { %v6960_v48 = vmul.f32 0.03125, %v6950_v45 }
0x1e00   :  { %v6965_v49 = vadd.f32 1e-06, %v6961_v44 }
0x1e01   :  { %v6964_v50 = vadd.f32 1e-06, %v6960_v48 }
0x1e02   :  { %8572 = vrsqrt.f32 %v6965_v49 }
0x1e03   :  { %8574 = vrsqrt.f32 %v6964_v50 }
0x1e06   :  { %v6956_v51 = vpop.xlane.xlu1 %6955 }
0x1e07   :  { %v6962_v52 = vmul.f32 0.03125, %v6956_v51 }
0x1e09   :  { %v6966_v53 = vadd.f32 1e-06, %v6962_v52 }
0x1e0a   :  { %v6959_v62 = vpop.xlane.xlu0 %6958 }
0x1e0b   :  { %8576 = vrsqrt.f32 %v6966_v53  ;;  %v6963_v28 = vmul.f32 0.03125, %v6959_v62 }
0x1e0c   :  { %v8573_v54 = vpop.eup %8572 }
0x1e0d   :  { %v8575_v56 = vpop.eup %8574  ;;  %v6973_v57 = vmul.f32 %v8573_v54, %v6941_v61  ;;  %v6967_v58 = vadd.f32 1e-06, %v6963_v28  ;;  %v7577_v61 = vld [vmem:[%s9755_s9 + $0x1] ss:$0 sm:$0xff] }
0x1e0e   :  { %v6972_v59 = vmul.f32 %v8575_v56, %v6940_v37 }
0x1e0f   :  { %8578 = vrsqrt.f32 %v6967_v58  ;;  %v6983_v0 = vmul.f32 %v7570_v55, %v6973_v57 }
0x1e10   :  { %v6982_v11 = vmul.f32 %v7570_v55, %v6972_v59 }
0x1e11   :  { %v9660_v3 = vadd.f32 %v7571_v60, %v6983_v0 }
0x1e12   :  { %v9658_v1 = vadd.f32 %v7571_v60, %v6982_v11 }
0x1e14   :  { %8282 = vmatprep.mubr.msk.f32.mxu1 %vm88_vm0, %v9658_v1 }
0x1e15   :  { %v8577_v4 = vpop.eup %8576  ;;  %8283 = vmatmul.mubr.msk.f32.vlgmr.msra.gmra.mrb[76].mxu1 %vm88_vm0, %v9660_v3 }
0x1e16   :  { %v6974_v6 = vmul.f32 %v8577_v4, %v6942_v17 }
0x1e18   :  { %v6984_v2 = vmul.f32 %v7570_v55, %v6974_v6 }
0x1e19   :  { %v8579_v13 = vpop.eup %8578 }
0x1e1a   :  { %v9666_v18 = vadd.f32 %v7571_v60, %v6984_v2  ;;  %v6975_v41 = vmul.f32 %v8579_v13, %v6943_v32  ;;  %v7591_v13 = vld [vmem:[%s9757_s11 + $0x1] ss:$0 sm:$0xff] }
0x1e1c   :  { %8285 = vmatprep.mubr.msk.f32.mxu1 %vm88_vm0, %v9666_v18  ;;  %v6985_v19 = vmul.f32 %v7570_v55, %v6975_v41 }
0x1e1e   :  { %v9670_v16 = vadd.f32 %v7571_v60, %v6985_v19 }
0x1e20   :  { %8286 = vmatmul.mubr.msk.f32.gmra.mrb[78].mxu1 %vm88_vm0, %v9670_v16 }
0x1ee8   :  { %v8284_v37 = vpop.f32.mrb[76].mxu1 }
0x1ee9   :  { %v7093_v27 = vadd.f32 %v8284_v37, %v7577_v61  ;;  %v7087_v26 = vpop.f32.mrb[77].mxu1 }
0x1eea   :  { %v7088_v29 = vadd.f32 %v7577_v61, %v7087_v26 }
0x1eeb   :  { %v7111_v22 = vmul.f32 0.044715, %v7093_v27  ;;  %v7107_v55 = vmul.f32 0.5, %v7093_v27 }
0x1eec   :  { %v7110_v23 = vmul.f32 0.044715, %v7088_v29  ;;  %v7106_v28 = vmul.f32 0.5, %v7088_v29 }
0x1eed   :  { %v7115_v30 = vmul.f32 %v7111_v22, %v7093_v27 }
0x1eee   :  { %v7114_v17 = vmul.f32 %v7110_v23, %v7088_v29 }
0x1eef   :  { %v7119_v39 = vmul.f32 %v7115_v30, %v7093_v27 }
0x1ef0   :  { %v7118_v31 = vmul.f32 %v7114_v17, %v7088_v29 }
0x1ef1   :  { %v7123_v36 = vadd.f32 %v7119_v39, %v7093_v27 }
0x1ef2   :  { %v7122_v32 = vadd.f32 %v7118_v31, %v7088_v29 }
0x1ef3   :  { %v7127_v40 = vmul.f32 0.7978846, %v7123_v36  ;;  %v8287_v33 = vpop.f32.mrb[78].mxu1 }
0x1ef4   :  { %v7103_v63 = vadd.f32 %v8287_v33, %v7577_v61  ;;  %v7097_v5 = vpop.f32.mrb[79].mxu1  ;;  %v7126_v35 = vmul.f32 0.7978846, %v7122_v32 }
0x1ef5   :  { %8580 = vtanh.f32 %v7127_v40  ;;  %v7098_v38 = vadd.f32 %v7577_v61, %v7097_v5 }
0x1ef6   :  { %v7113_v15 = vmul.f32 0.044715, %v7103_v63  ;;  %8582 = vtanh.f32 %v7126_v35  ;;  %v7109_v4 = vmul.f32 0.5, %v7103_v63 }
0x1ef7   :  { %v7112_v20 = vmul.f32 0.044715, %v7098_v38  ;;  %v7108_v0 = vmul.f32 0.5, %v7098_v38 }
0x1ef8   :  { %v7117_v42 = vmul.f32 %v7113_v15, %v7103_v63 }
0x1ef9   :  { %v7116_v43 = vmul.f32 %v7112_v20, %v7098_v38 }
0x1efa   :  { %v7121_v44 = vmul.f32 %v7117_v42, %v7103_v63 }
0x1efb   :  { %v7120_v45 = vmul.f32 %v7116_v43, %v7098_v38 }
0x1efc   :  { %v7125_v48 = vadd.f32 %v7121_v44, %v7103_v63 }
0x1efd   :  { %v7124_v49 = vadd.f32 %v7120_v45, %v7098_v38 }
0x1efe   :  { %v7129_v50 = vmul.f32 0.7978846, %v7125_v48 }
0x1eff   :  { %v8581_v51 = vpop.eup %8580  ;;  %v7128_v52 = vmul.f32 0.7978846, %v7124_v49 }
0x1f00   :  { %v8583_v53 = vpop.eup %8582  ;;  %v7135_v62 = vadd.f32 1.0, %v8581_v51  ;;  %8584 = vtanh.f32 %v7129_v50 }
0x1f01   :  { %v7134_v54 = vadd.f32 1.0, %v8583_v53  ;;  %8586 = vtanh.f32 %v7128_v52 }
0x1f02   :  { %v7139_v57 = vmul.f32 %v7135_v62, %v7107_v55 }
0x1f03   :  { %v7138_v56 = vmul.f32 %v7134_v54, %v7106_v28  ;;  %v7598_v54 = vld [vmem:[%s9758_s12 + $0x1] ss:$0 sm:$0xff]  ;;  %s8665_s12 = smov [#allocation6]  }
0x1f05   :  { %8304 = vmatprep.mubr.msk.f32.mxu0 %vm3549_vm3, %v7138_v56 }
0x1f06   :  { %8305 = vmatmul.mubr.msk.f32.vlgmr.msra.gmra.mrb[76].mxu0 %vm3549_vm3, %v7139_v57 }
0x1f0a   :  { %v8585_v58 = vpop.eup %8584 }
0x1f0b   :  { %v8587_v59 = vpop.eup %8586  ;;  %v7137_v60 = vadd.f32 1.0, %v8585_v58 }
0x1f0c   :  { %v7136_v11 = vadd.f32 1.0, %v8587_v59  ;;  %v7599_v59 = vld [vmem:[%s9759_s13 + $0x1] ss:$0 sm:$0xff]  ;;  %s7392_s13 = sshll.u32 %s8665_s12, 4  ;;  %s7393_s13 = int_to_ptr.vmem [resolvable:$true] %s7392_s13 }
0x1f0d   :  { %v7141_v2 = vmul.f32 %v7137_v60, %v7109_v4  ;;  %p8627_p9 = scmp.lt.s32.totalorder %s7393_s13, %s7393_s13 }
0x1f0e   :  { %v7140_v6 = vmul.f32 %v7136_v11, %v7108_v0 }
0x1f10   :  { %8307 = vmatprep.mubr.msk.f32.mxu0 %vm3549_vm3, %v7140_v6 }
0x1f11   :  { %8308 = vmatmul.mubr.msk.f32.gmra.mrb[78].mxu0 %vm3549_vm3, %v7141_v2 }
0x1fd9   :  { %v8306_v41 = vpop.f32.mrb[76].mxu0 }
0x1fda   :  { %v7243_v19 = vadd.f32 %v8306_v41, %v7591_v13  ;;  %v7237_v46 = vpop.f32.mrb[77].mxu0 }
0x1fdb   :  { %v7238_v14 = vadd.f32 %v7591_v13, %v7237_v46  ;;  %v7600_v46 = vld [vmem:[%s9760_s14] ss:$0 sm:$0xff]  ;;  %s8622_s14 = scalar_lea.vmem %s7393_s13, 64 }
0x1fdc   :  { %v7257_v34 = vadd.f32 %v7243_v19, %v9660_v3  ;;  %p8623_p8 = scmp.ne.s32.totalorder %s7393_s13, %s8622_s14  ;;  %p8628_p10 = scmp.lt.s32.totalorder %s8622_s14, %s8622_s14 }
0x1fdd   :  { %v7256_v47 = vadd.f32 %v7238_v14, %v9658_v1 }
0x1fde   :  { %v7267_v21 = vsel %vm88_vm0, %v7257_v34, 0.0  ;;  %p8629_p11 = por %p8628_p10, %p8627_p9 }
0x1fdf   :  { %7268 = vadd.xlane.f32.xlu1 %v7267_v21  ;;  %v7264_v24 = vsel %vm88_vm0, %v7256_v47, 0.0 }
0x1fe0   :  { %p8630_p12 = pnand %p8629_p11, %p8623_p8 }
0x1fe3   :  { %7265 = vadd.xlane.f32.xlu1 %v7264_v24 }
0x1fe4   :  { %v8309_v25 = vpop.f32.mrb[78].mxu0 }
0x1fe5   :  { %v7253_v10 = vadd.f32 %v8309_v25, %v7591_v13  ;;  %v7247_v9 = vpop.f32.mrb[79].mxu0 }
0x1fe6   :  { %v7248_v7 = vadd.f32 %v7591_v13, %v7247_v9 }
0x1fe7   :  { %v7259_v8 = vadd.f32 %v7253_v10, %v9670_v16 }
0x1fe8   :  { %v7258_v12 = vadd.f32 %v7248_v7, %v9666_v18 }
0x1fe9   :  { %v7273_v61 = vsel %vm88_vm0, %v7259_v8, 0.0 }
0x1fea   :  { %7274 = vadd.xlane.f32.xlu0 %v7273_v61  ;;  %v7270_v3 = vsel %vm88_vm0, %v7258_v12, 0.0 }
0x1fee   :  { %7271 = vadd.xlane.f32.xlu0 %v7270_v3 }
0x206c   :  { %v7269_v1 = vpop.xlane.xlu1 %7268 }
0x206d   :  { %v7277_v37 = vmul.f32 0.03125, %v7269_v1 }
0x206f   :  { %v7281_v27 = vsub.f32 %v7257_v34, %v7277_v37 }
0x2070   :  { %v7266_v26 = vpop.xlane.xlu1 %7265 }
0x2071   :  { %v7276_v29 = vmul.f32 0.03125, %v7266_v26  ;;  %v7285_v22 = vmul.f32 %v7281_v27, %v7281_v27 }
0x2073   :  { %v7280_v23 = vsub.f32 %v7256_v47, %v7276_v29  ;;  %v7291_v30 = vsel %vm88_vm0, %v7285_v22, 0.0 }
0x2074   :  { %7292 = vadd.xlane.f32.xlu1 %v7291_v30 }
0x2075   :  { %v7284_v17 = vmul.f32 %v7280_v23, %v7280_v23 }
0x2077   :  { %v7275_v16 = vpop.xlane.xlu0 %7274  ;;  %v7288_v18 = vsel %vm88_vm0, %v7284_v17, 0.0 }
0x2078   :  { %v7279_v39 = vmul.f32 0.03125, %v7275_v16  ;;  %7289 = vadd.xlane.f32.xlu1 %v7288_v18 }
0x207a   :  { %v7283_v31 = vsub.f32 %v7259_v8, %v7279_v39 }
0x207b   :  { %v7272_v36 = vpop.xlane.xlu0 %7271 }
0x207c   :  { %v7278_v32 = vmul.f32 0.03125, %v7272_v36  ;;  %v7287_v40 = vmul.f32 %v7283_v31, %v7283_v31 }
0x207e   :  { %v7282_v33 = vsub.f32 %v7258_v12, %v7278_v32  ;;  %v7297_v63 = vsel %vm88_vm0, %v7287_v40, 0.0 }
0x207f   :  { %7298 = vadd.xlane.f32.xlu0 %v7297_v63 }
0x2080   :  { %v7286_v5 = vmul.f32 %v7282_v33, %v7282_v33 }
0x2082   :  { %v7294_v35 = vsel %vm88_vm0, %v7286_v5, 0.0 }
0x2083   :  { %7295 = vadd.xlane.f32.xlu0 %v7294_v35 }
0x2101   :  { %v7293_v38 = vpop.xlane.xlu1 %7292 }
0x2102   :  { %v7301_v15 = vmul.f32 0.03125, %v7293_v38 }
0x2104   :  { %v7305_v43 = vadd.f32 1e-06, %v7301_v15 }
0x2105   :  { %v7290_v20 = vpop.xlane.xlu1 %7289 }
0x2106   :  { %v7300_v42 = vmul.f32 0.03125, %v7290_v20  ;;  %8588 = vrsqrt.f32 %v7305_v43 }
0x2108   :  { %v7304_v44 = vadd.f32 1e-06, %v7300_v42 }
0x210a   :  { %8590 = vrsqrt.f32 %v7304_v44 }
0x210c   :  { %v7299_v45 = vpop.xlane.xlu0 %7298 }
0x210d   :  { %v7303_v48 = vmul.f32 0.03125, %v7299_v45 }
0x210f   :  { %v7307_v49 = vadd.f32 1e-06, %v7303_v48 }
0x2110   :  { %v7296_v50 = vpop.xlane.xlu0 %7295  ;;  %v8589_v53 = vpop.eup %8588 }
0x2111   :  { %8592 = vrsqrt.f32 %v7307_v49  ;;  %v7302_v51 = vmul.f32 0.03125, %v7296_v50  ;;  %v7313_v28 = vmul.f32 %v8589_v53, %v7281_v27 }
0x2113   :  { %v7306_v52 = vadd.f32 1e-06, %v7302_v51  ;;  %v7323_v58 = vmul.f32 %v7598_v54, %v7313_v28 }
0x2114   :  { %v8591_v62 = vpop.eup %8590 }
0x2115   :  { %8594 = vrsqrt.f32 %v7306_v52  ;;  %v7312_v56 = vmul.f32 %v8591_v62, %v7280_v23  ;;  %v7333_v6 = vadd.f32 %v7599_v59, %v7323_v58 }
0x2117   :  { %v7322_v11 = vmul.f32 %v7598_v54, %v7312_v56  ;;  %v7340_v47 = vrot.slane %v7333_v6, 7 }
0x2119   :  { %v7332_v19 = vadd.f32 %v7599_v59, %v7322_v11 }
0x211b   :  { %v8593_v55 = vpop.eup %8592  ;;  %v7342_v10 = vsel %vm7341_vm4, %v7340_v47, %v7332_v19 }
0x211c   :  { %v7315_v57 = vmul.f32 %v8593_v55, %v7283_v31 }
0x211e   :  { %v7325_v60 = vmul.f32 %v7598_v54, %v7315_v57 }
0x211f   :  { %v8595_v0 = vpop.eup %8594 }
0x2120   :  { %v7314_v4 = vmul.f32 %v8595_v0, %v7282_v33  ;;  %v7335_v2 = vadd.f32 %v7599_v59, %v7325_v60 }
0x2122   :  { %v7324_v13 = vmul.f32 %v7598_v54, %v7314_v4  ;;  %v7353_v41 = vsub.f32 %v7333_v6, %v7335_v2  ;;  %v7346_v9 = vrot.slane %v7335_v2, 5 }
0x2124   :  { %v7334_v14 = vadd.f32 %v7599_v59, %v7324_v13  ;;  %v7355_v34 = vmul.f32 %v7353_v41, %v7353_v41 }
0x2126   :  { %v7352_v21 = vsub.f32 %v7332_v19, %v7334_v14  ;;  %v7364_v24 = vmul.f32 %v7600_v46, %v7355_v34  ;;  %v7343_v25 = vrot.slane %v7334_v14, 6 }
0x2128   :  { %v7354_v7 = vmul.f32 %v7352_v21, %v7352_v21  ;;  %v7345_v8 = vsel %vm7344_vm5, %v7343_v25, %v7342_v10  ;;  %v7367_v3 = vrot.slane %v7364_v24, 7 }
0x2129   :  { %v7348_v12 = vsel %vm7347_vm6, %v7346_v9, %v7345_v8 }
0x212a   :  { %v7363_v61 = vmul.f32 %v7600_v46, %v7354_v7  ;;  %7351 = vst.msk [vmem:[#allocation6] sm:$0xf] %vm7350_vm7, %v7348_v12 }
0x212c   :  { %v7368_v1 = vsel %vm7341_vm4, %v7367_v3, %v7363_v61 }
0x212d   :  { %v7371_v37 = vsel %vm7370_vm8, %v7368_v1, 0.0 }
0x212e   :  { %7372 = vadd.xlane.f32.xlu1 %v7371_v37 }
0x212f   :  { %8633 = shalt.err (!%p8630_p12)
}
0x2130   :  { %s8634_s25 = scalar_lea.hbm %s9763_s17, 64 }
0x2131   :  { %p8635_p13 = scmp.ne.s32.totalorder %s9763_s17, %s8634_s25  ;;  %p8638_p0 = scmp.lt.u32.totalorder %s8634_s25, %s9763_s17 }
0x2133   :  { %p8640_p1 = pnand %p8638_p0, %p8635_p13 }
0x2135   :  { %8643 = shalt.err (!%p8640_p1)
}
0x2136   :  { %7395 = dma.vmem_to_hbm [thread:$0]  %s7393_s13, 64, %s9763_s17, [#allocation5]   ;;  %v7601_v27 = vld [vmem:[#allocation2] ss:$0 sm:$0xff]  ;;  %vm7382_vm9 = vcmask 1024  }
0x21bb   :  { %v7373_v26 = vpop.xlane.xlu1 %7372 }
0x21bc   :  { %v7381_v29 = vadd.f32 %v7601_v27, %v7373_v26 }
0x21be   :  { %7383 = vst.msk [vmem:[%s9762_s16] sm:$0x3] %vm7382_vm9, %v7381_v29 }
0x21bf   :  { %8646 = dma.done.wait [#allocation5], 64  }
0x21c0   :  { %8647 = vsyncadd [#allocation5], 4294967232 }
0x21c1   :  { %7401 = vsyncpa [#allocation4], 1 }
0x21c2   :  { %7402 = vsyncpa [#allocation5], 1 }

</bundles_post_ra>
